<compile_context>
chip_gen: v7x
topology: tpu7x:2x2x1
jax: 0.10.0
libtpu: 0.0.40
codegen_flags: <defaults>
</compile_context>

<pallas_src>
import math

import jax
import jax.numpy as jnp
from jax import lax
from jax.experimental import pallas as pl
from jax.experimental.pallas import tpu as pltpu

# ---- problem sizes (small, consistent with the module defaults) ----
B = 2            # batch
T_SEQ = 8        # len_seq
VOCAB = 13       # embedding rows (default embeding_shape[0])
EMB = 50         # embedding dim (default embeding_shape[1]) -> MAN in_size
HID = 32         # hidden_size
MEM = 100        # MAN memory_size (ManNet passes memory_size=100)
MEMP = 128       # MEM padded to a full lane width
FEAT = 59        # feat_size
FEATR = FEAT // 2
ALPHA_SIG = -0.4
GAMMA = 0.3
GATE = 1.0 / (1.0 + math.exp(-ALPHA_SIG))
LANES = 4 * HID  # 128 -- gate width == lane width

# ---- packed parameter-slab row offsets (all 8-row aligned) ----
R_EMBP = 0      # 13 rows : emb @ W_ih^T              (VOCAB, 128)
R_BIAS = 16     # 1 row   : b_ih + b_hh               (1, 128)
R_WHH = 24      # 32 rows : W_hh^T                    (HID, 128)
R_W1A = 56      # 32 rows : W1[:, :HID]^T             (HID, 32 real lanes)
R_W1B = 88      # 32 rows : W1[:, HID:]^T             (HID, 32 real lanes)
R_B1 = 120      # 1 row   : b1                        (1, 32 real lanes)
R_WF = 128      # 59 rows : Wf^T                      (FEAT, 29 real lanes)
R_BF = 192      # 1 row   : bf                        (1, 29 real lanes)
R_W2A = 200     # 32 rows : W2[:, :HID]^T             (HID, 2 real lanes)
R_W2B = 232     # 29 rows : W2[:, HID:]^T             (FEATR, 2 real lanes)
R_B2 = 264      # 1 row   : b2                        (1, 2 real lanes)
SLAB_ROWS = 272


def mannet_kernel(ids_ref, feat_ref, p_ref, out_ref):
    f32 = jnp.float32

    # ---- unpack packed parameter slab (static slices of one VMEM ref) ----
    emb_proj = p_ref[R_EMBP:R_EMBP + VOCAB, :]            # (13, 128)
    bias = p_ref[R_BIAS:R_BIAS + 1, :]                    # (1, 128)
    whh = p_ref[R_WHH:R_WHH + HID, :]                     # (32, 128)

    # ---- all-timestep input projection (off the recurrence chain) ----
    ids = ids_ref[...]                                     # (T*B, 1) int32, time-major
    vocab_iota = lax.broadcasted_iota(jnp.int32, (T_SEQ * B, VOCAB), 1)
    onehot = (ids == vocab_iota).astype(f32)               # (T*B, VOCAB)
    gx_all = jnp.dot(onehot, emb_proj,
                     preferred_element_type=f32) + bias    # (T*B, 128)

    # ---- feature branch (independent of the recurrence) ----
    wf = p_ref[R_WF:R_WF + FEAT, :]                        # (59, 128), real cols [:29]
    bf = p_ref[R_BF:R_BF + 1, :]
    f_red = jnp.maximum(
        jnp.dot(feat_ref[...], wf, preferred_element_type=f32) + bf, 0.0)  # (B, 128)

    # ---- hoisted constants (iota/masks built once; JAX does not CSE these) ----
    lane_i = lax.broadcasted_iota(jnp.int32, (B, MEMP), 1)
    lane_f = lane_i.astype(f32)
    valid = (lane_i < MEM).astype(f32)                     # softmax mask for padded lanes
    gate_lane = lax.broadcasted_iota(jnp.int32, (1, LANES), 1)
    g_scale = jnp.where((gate_lane >= 2 * HID) & (gate_lane < 3 * HID),
                        2.0, 1.0).astype(f32)              # 2x on the g-quarter
    ones_h = jnp.ones((1, HID), f32)                       # column-sum contraction vec
    BIG = 1e30
    EPS2 = 1e-24                                           # (F.normalize eps=1e-12)^2

    # ---- recurrent state (values/vregs for the whole kernel) ----
    h = jnp.zeros((B, HID), f32)
    c = jnp.zeros((B, HID), f32)
    Mt = jnp.zeros((HID, MEMP), f32)                       # memory, transposed + padded
    w_u = jnp.zeros((B, MEMP), f32)
    prev_wr = jnp.zeros((B, MEMP), f32)
    acc_h = jnp.zeros((B, HID), f32)                       # sum of h over time
    acc_r = jnp.zeros((B, HID), f32)                       # sum of read_i over time

    # Fully-unrolled time loop (full LLO visibility; Mt layout keeps vregs low).
    for t in range(T_SEQ):
        # -- LSTMCell: one fused sigmoid over the whole gate vreg --
        gates = gx_all[t * B:(t + 1) * B, :] + jnp.dot(
            h, whh, preferred_element_type=f32)            # (B, 128)
        s = jax.nn.sigmoid(gates * g_scale)
        i_g = s[:, 0 * HID:1 * HID]
        f_g = s[:, 1 * HID:2 * HID]
        g_a = 2.0 * s[:, 2 * HID:3 * HID] - 1.0            # tanh(g) = 2*sigmoid(2g)-1
        o_g = s[:, 3 * HID:4 * HID]
        c = f_g * c + i_g * g_a
        h = o_g * jnp.tanh(c)

        # -- read head: cosine similarity + softmax (max-sub dropped: |cos|<=1) --
        inner = jnp.dot(h, Mt, preferred_element_type=f32)             # (B, MEMP)
        hh = jnp.sum(h * h, axis=-1, keepdims=True)                    # (B, 1)
        mm = jnp.dot(ones_h, Mt * Mt, preferred_element_type=f32)      # (1, MEMP)
        cos = inner / (jnp.sqrt(hh * mm) + 1e-8)
        p = jnp.exp(cos) * valid                                       # mask padded lanes
        w_r = p / jnp.sum(p, axis=-1, keepdims=True)
        read_i = lax.dot_general(w_r, Mt, (((1,), (1,)), ((), ())),
                                 preferred_element_type=f32)           # (B, HID)
        acc_h = acc_h + h
        acc_r = acc_r + read_i

        # -- memory write (torch argmin semantics: first index of the minimum) --
        wu_m = jnp.where(lane_i < MEM, w_u, BIG)           # exclude padded lanes
        min_u = jnp.min(wu_m, axis=-1, keepdims=True)
        first_min = jnp.min(jnp.where(wu_m == min_u, lane_f, float(MEMP)),
                            axis=-1, keepdims=True)
        one_hot = (lane_f == first_min).astype(f32)
        w_w = GATE * prev_wr + (1.0 - GATE) * one_hot
        kwT = lax.dot_general(h, w_w, (((0,), (0,)), ((), ())),
                              preferred_element_type=f32)  # (HID, MEMP) == k_w^T
        Mt = Mt + kwT
        col_ss = jnp.dot(ones_h, Mt * Mt, preferred_element_type=f32)  # per-row |.|^2
        Mt = Mt * lax.rsqrt(jnp.maximum(col_ss, EPS2))     # F.normalize(M + k_w)
        w_u = GAMMA * w_u + w_r + w_w
        w_u = w_u * lax.rsqrt(jnp.maximum(
            jnp.sum(w_u * w_u, axis=-1, keepdims=True), EPS2))
        prev_wr = w_r

    # ---- finalize: mean over time, Dense1+ReLU, cat with FeatRed, Dense2 ----
    inv_t = 1.0 / T_SEQ
    mean_h = acc_h * inv_t
    mean_r = acc_r * inv_t
    w1a = p_ref[R_W1A:R_W1A + HID, :]
    w1b = p_ref[R_W1B:R_W1B + HID, :]
    b1 = p_ref[R_B1:R_B1 + 1, :]
    d1 = jnp.maximum(
        jnp.dot(mean_h, w1a, preferred_element_type=f32)
        + jnp.dot(mean_r, w1b, preferred_element_type=f32) + b1, 0.0)   # (B, 128)
    w2a = p_ref[R_W2A:R_W2A + HID, :]
    w2b = p_ref[R_W2B:R_W2B + FEATR, :]
    b2 = p_ref[R_B2:R_B2 + 1, :]
    res = (jnp.dot(d1[:, :HID], w2a, preferred_element_type=f32)
           + jnp.dot(f_red[:, :FEATR], w2b, preferred_element_type=f32) + b2)
    out_ref[...] = res[:, :2]


def mannet_forward(x_idx, feat, params):
    # TODO(synk): nn.Dropout is treated as identity (inference semantics).
    # Only preprocessing left in the wrapper: time-major flatten of the tiny
    # (B, T) int32 token-id array. Everything else is inside the kernel.
    ids_tm = jnp.transpose(x_idx).reshape(T_SEQ * B, 1).astype(jnp.int32)
    return pl.pallas_call(
        mannet_kernel,
        out_shape=jax.ShapeDtypeStruct((B, 2), jnp.float32),
        in_specs=[pl.BlockSpec(memory_space=pltpu.MemorySpace.VMEM)] * 3,
        out_specs=pl.BlockSpec(memory_space=pltpu.MemorySpace.VMEM),
    )(ids_tm, feat, params["slab"])


def init_params(key):
    ks = jax.random.split(key, 11)
    u = lambda k, shape, s=0.1: jax.random.uniform(k, shape, jnp.float32, -s, s)
    emb = u(ks[0], (VOCAB, EMB), 1.0)
    W_ih = u(ks[1], (4 * HID, EMB))
    W_hh = u(ks[2], (4 * HID, HID))
    b_ih = u(ks[3], (4 * HID,))
    b_hh = u(ks[4], (4 * HID,))
    W1 = u(ks[5], (HID, 2 * HID))
    b1 = u(ks[6], (HID,))
    Wf = u(ks[7], (FEATR, FEAT))
    bf = u(ks[8], (FEATR,))
    W2 = u(ks[9], (2, HID + FEATR))
    b2 = u(ks[10], (2,))

    wih_t = W_ih.T
    whh_t = W_hh.T
    w1a_t = W1[:, :HID].T
    w1b_t = W1[:, HID:].T
    wf_t = Wf.T
    w2a_t = W2[:, :HID].T
    w2b_t = W2[:, HID:].T

    # Pre-fold the embedding through the LSTM input projection (exact: the
    # composition is linear; done once at init, not in the forward path).
    emb_proj = jnp.dot(emb, wih_t, precision=lax.Precision.HIGHEST)   # (VOCAB, 4H)
    bias_sum = (b_ih + b_hh).reshape(1, -1)

    # One lane-dense (SLAB_ROWS, 128) f32 slab -> one prologue DMA in the kernel.
    slab = jnp.zeros((SLAB_ROWS, LANES), jnp.float32)

    def put(s, r, m):
        m = jnp.asarray(m, jnp.float32)
        return s.at[r:r + m.shape[0], :m.shape[1]].set(m)

    slab = put(slab, R_EMBP, emb_proj)
    slab = put(slab, R_BIAS, bias_sum)
    slab = put(slab, R_WHH, whh_t)
    slab = put(slab, R_W1A, w1a_t)
    slab = put(slab, R_W1B, w1b_t)
    slab = put(slab, R_B1, b1.reshape(1, -1))
    slab = put(slab, R_WF, wf_t)
    slab = put(slab, R_BF, bf.reshape(1, -1))
    slab = put(slab, R_W2A, w2a_t)
    slab = put(slab, R_W2B, w2b_t)
    slab = put(slab, R_B2, b2.reshape(1, -1))

    return dict(
        slab=slab,
        # raw tensors kept only for the pure-JAX reference check
        emb=emb, wih_t=wih_t, whh_t=whh_t,
        bih=b_ih.reshape(1, -1), bhh=b_hh.reshape(1, -1),
        w1a_t=w1a_t, w1b_t=w1b_t, b1=b1.reshape(1, -1),
        wf_t=wf_t, bf=bf.reshape(1, -1),
        w2a_t=w2a_t, w2b_t=w2b_t, b2=b2.reshape(1, -1),
    )


def _l2_normalize(x, eps=1e-12):
    # matches torch.nn.functional.normalize(p=2, dim=-1, eps=1e-12)
    n = jnp.sqrt(jnp.sum(x * x, axis=-1, keepdims=True))
    return x / jnp.maximum(n, eps)


def reference(x_idx, feat, params):
    """Pure-JAX replica of the PyTorch forward (eval mode) for validation."""
    x_emb = params["emb"][x_idx]
    h = jnp.zeros((B, HID), jnp.float32)
    c = jnp.zeros((B, HID), jnp.float32)
    M = jnp.zeros((MEM, HID), jnp.float32)
    w_u = jnp.zeros((B, MEM), jnp.float32)
    prev_wr = jnp.zeros((B, MEM), jnp.float32)
    outs = []
    for i in range(T_SEQ):
        x_t = x_emb[:, i, :]
        gates = (x_t @ params["wih_t"] + params["bih"]
                 + h @ params["whh_t"] + params["bhh"])
        i_g = jax.nn.sigmoid(gates[:, :HID])
        f_g = jax.nn.sigmoid(gates[:, HID:2 * HID])
        g_g = jnp.tanh(gates[:, 2 * HID:3 * HID])
        o_g = jax.nn.sigmoid(gates[:, 3 * HID:])
        c = f_g * c + i_g * g_g
        h = o_g * jnp.tanh(c)
        inner = h @ M.T
        k_sq = jnp.sqrt(jnp.sum(h * h, -1, keepdims=True))
        m_sq = jnp.sqrt(jnp.sum(M * M, -1, keepdims=True))
        cos = inner / (k_sq @ m_sq.T + 1e-8)
        w_r = jax.nn.softmax(cos, axis=-1)
        read_i = w_r @ M
        outs.append(jnp.concatenate([h, read_i], axis=-1))
        idx = jnp.argmin(w_u, axis=-1)
        one_hot = jax.nn.one_hot(idx, MEM, dtype=jnp.float32)
        w_w = GATE * prev_wr + (1.0 - GATE) * one_hot
        k_w = jnp.einsum('bi,bj->ij', w_w, h)
        M = _l2_normalize(M + k_w)
        prev_wr = w_r
        w_u = _l2_normalize(GAMMA * w_u + w_r + w_w)
    x = jnp.mean(jnp.stack(outs, axis=1), axis=1)
    d1 = jax.nn.relu(x[:, :HID] @ params["w1a_t"] + x[:, HID:] @ params["w1b_t"]
                     + params["b1"])
    f_red = jax.nn.relu(feat @ params["wf_t"] + params["bf"])
    return d1 @ params["w2a_t"] + f_red @ params["w2b_t"] + params["b2"]


if __name__ == "__main__":
    key = jax.random.PRNGKey(0)
    kp, kx, kf = jax.random.split(key, 3)
    params = init_params(kp)
    x_idx = jax.random.randint(kx, (B, T_SEQ), 0, VOCAB)       # token ids
    feat = jax.random.normal(kf, (B, FEAT), jnp.float32)       # dense features

    fwd = jax.jit(mannet_forward)
    out = jax.block_until_ready(fwd(x_idx, feat, params))
    assert out.shape == (B, 2)

    with jax.default_matmul_precision("highest"):
        ref = reference(x_idx, feat, params)

    import numpy as np
    np.testing.assert_allclose(np.asarray(out), np.asarray(ref), rtol=2e-3, atol=2e-4)
    print("KERNEL_OK")
</pallas_src>

<mosaic_0001>
module attributes {stable_mosaic.version = 11 : i64} {
  func.func @mannet_kernel(%arg0: memref<16x1xi32, #tpu.memory_space<vmem>>, %arg1: memref<2x59xf32, #tpu.memory_space<vmem>>, %arg2: memref<272x128xf32, #tpu.memory_space<vmem>>, %arg3: memref<2x2xf32, #tpu.memory_space<vmem>>) attributes {dimension_semantics = [], scalar_prefetch = 0 : i64, scratch_operands = 0 : i64, tpu.core_type = #tpu.core_type<tc>} {
    %c0 = arith.constant 0 : index
    %c0_0 = arith.constant 0 : index
    %0 = vector.load %arg2[%c0, %c0_0] : memref<272x128xf32, #tpu.memory_space<vmem>>, vector<13x128xf32>
    %c16 = arith.constant 16 : index
    %c0_1 = arith.constant 0 : index
    %1 = vector.load %arg2[%c16, %c0_1] : memref<272x128xf32, #tpu.memory_space<vmem>>, vector<1x128xf32>
    %c24 = arith.constant 24 : index
    %c0_2 = arith.constant 0 : index
    %2 = vector.load %arg2[%c24, %c0_2] : memref<272x128xf32, #tpu.memory_space<vmem>>, vector<32x128xf32>
    %c0_3 = arith.constant 0 : index
    %c0_4 = arith.constant 0 : index
    %3 = vector.load %arg0[%c0_3, %c0_4] : memref<16x1xi32, #tpu.memory_space<vmem>>, vector<16x1xi32>
    %4 = tpu.iota {dimensions = array<i32: 1>} : vector<16x13xi32>
    %5 = vector.broadcast %3 : vector<16x1xi32> to vector<16x13xi32>
    %6 = arith.cmpi eq, %5, %4 : vector<16x13xi32>
    %7 = arith.extui %6 : vector<16x13xi1> to vector<16x13xi32>
    %8 = arith.sitofp %7 : vector<16x13xi32> to vector<16x13xf32>
    %cst = arith.constant dense<0.000000e+00> : vector<16x128xf32>
    %9 = tpu.matmul %8, %0, %cst {dimension_numbers = #tpu.dot_dimension_numbers<[1], [0], [0], [1], [0, 0, 1, 1], [], []>} : vector<16x13xf32>, vector<13x128xf32>, vector<16x128xf32> -> vector<16x128xf32>
    %10 = vector.broadcast %1 : vector<1x128xf32> to vector<16x128xf32>
    %11 = arith.addf %9, %10 : vector<16x128xf32>
    %c128 = arith.constant 128 : index
    %c0_5 = arith.constant 0 : index
    %12 = vector.load %arg2[%c128, %c0_5] : memref<272x128xf32, #tpu.memory_space<vmem>>, vector<59x128xf32>
    %c192 = arith.constant 192 : index
    %c0_6 = arith.constant 0 : index
    %13 = vector.load %arg2[%c192, %c0_6] : memref<272x128xf32, #tpu.memory_space<vmem>>, vector<1x128xf32>
    %c0_7 = arith.constant 0 : index
    %c0_8 = arith.constant 0 : index
    %14 = vector.load %arg1[%c0_7, %c0_8] : memref<2x59xf32, #tpu.memory_space<vmem>>, vector<2x59xf32>
    %cst_9 = arith.constant dense<0.000000e+00> : vector<2x128xf32>
    %15 = tpu.matmul %14, %12, %cst_9 {dimension_numbers = #tpu.dot_dimension_numbers<[1], [0], [0], [1], [0, 0, 1, 1], [], []>} : vector<2x59xf32>, vector<59x128xf32>, vector<2x128xf32> -> vector<2x128xf32>
    %16 = vector.broadcast %13 : vector<1x128xf32> to vector<2x128xf32>
    %17 = arith.addf %15, %16 : vector<2x128xf32>
    %cst_10 = arith.constant 0.000000e+00 : f32
    %18 = vector.broadcast %cst_10 : f32 to vector<2x128xf32>
    %19 = arith.maximumf %17, %18 : vector<2x128xf32>
    %20 = tpu.iota {dimensions = array<i32: 1>} : vector<2x128xi32>
    %21 = arith.sitofp %20 : vector<2x128xi32> to vector<2x128xf32>
    %c100_i32 = arith.constant 100 : i32
    %22 = vector.broadcast %c100_i32 : i32 to vector<2x128xi32>
    %23 = arith.cmpi slt, %20, %22 : vector<2x128xi32>
    %24 = arith.extui %23 : vector<2x128xi1> to vector<2x128xi32>
    %25 = arith.sitofp %24 : vector<2x128xi32> to vector<2x128xf32>
    %26 = tpu.iota {dimensions = array<i32: 1>} : vector<1x128xi32>
    %c64_i32 = arith.constant 64 : i32
    %27 = vector.broadcast %c64_i32 : i32 to vector<1x128xi32>
    %28 = arith.cmpi sge, %26, %27 : vector<1x128xi32>
    %c96_i32 = arith.constant 96 : i32
    %29 = vector.broadcast %c96_i32 : i32 to vector<1x128xi32>
    %30 = arith.cmpi slt, %26, %29 : vector<1x128xi32>
    %31 = arith.andi %28, %30 : vector<1x128xi1>
    %cst_11 = arith.constant 2.000000e+00 : f32
    %cst_12 = arith.constant 1.000000e+00 : f32
    %32 = vector.broadcast %cst_11 : f32 to vector<1x128xf32>
    %33 = vector.broadcast %cst_12 : f32 to vector<1x128xf32>
    %34 = arith.select %31, %32, %33 : vector<1x128xi1>, vector<1x128xf32>
    %cst_13 = arith.constant 1.000000e+00 : f32
    %35 = vector.broadcast %cst_13 : f32 to vector<1x32xf32>
    %cst_14 = arith.constant 0.000000e+00 : f32
    %36 = vector.broadcast %cst_14 : f32 to vector<2x32xf32>
    %cst_15 = arith.constant 0.000000e+00 : f32
    %37 = vector.broadcast %cst_15 : f32 to vector<2x32xf32>
    %cst_16 = arith.constant 0.000000e+00 : f32
    %38 = vector.broadcast %cst_16 : f32 to vector<32x128xf32>
    %cst_17 = arith.constant 0.000000e+00 : f32
    %39 = vector.broadcast %cst_17 : f32 to vector<2x128xf32>
    %cst_18 = arith.constant 0.000000e+00 : f32
    %40 = vector.broadcast %cst_18 : f32 to vector<2x128xf32>
    %cst_19 = arith.constant 0.000000e+00 : f32
    %41 = vector.broadcast %cst_19 : f32 to vector<2x32xf32>
    %cst_20 = arith.constant 0.000000e+00 : f32
    %42 = vector.broadcast %cst_20 : f32 to vector<2x32xf32>
    %43 = vector.extract_strided_slice %11 {offsets = [0, 0], sizes = [2, 128], strides = [1, 1]} : vector<16x128xf32> to vector<2x128xf32>
    %cst_21 = arith.constant dense<0.000000e+00> : vector<2x128xf32>
    %44 = tpu.matmul %36, %2, %cst_21 {dimension_numbers = #tpu.dot_dimension_numbers<[1], [0], [0], [1], [0, 0, 1, 1], [], []>} : vector<2x32xf32>, vector<32x128xf32>, vector<2x128xf32> -> vector<2x128xf32>
    %45 = arith.addf %43, %44 : vector<2x128xf32>
    %46 = vector.broadcast %34 : vector<1x128xf32> to vector<2x128xf32>
    %47 = arith.mulf %45, %46 : vector<2x128xf32>
    %48 = arith.negf %47 : vector<2x128xf32>
    %49 = math.exp %48 : vector<2x128xf32>
    %cst_22 = arith.constant 1.000000e+00 : f32
    %50 = vector.broadcast %cst_22 : f32 to vector<2x128xf32>
    %51 = arith.addf %50, %49 : vector<2x128xf32>
    %52 = arith.divf %50, %51 : vector<2x128xf32>
    %53 = vector.extract_strided_slice %52 {offsets = [0, 0], sizes = [2, 32], strides = [1, 1]} : vector<2x128xf32> to vector<2x32xf32>
    %54 = vector.extract_strided_slice %52 {offsets = [0, 32], sizes = [2, 32], strides = [1, 1]} : vector<2x128xf32> to vector<2x32xf32>
    %55 = vector.extract_strided_slice %52 {offsets = [0, 64], sizes = [2, 32], strides = [1, 1]} : vector<2x128xf32> to vector<2x32xf32>
    %cst_23 = arith.constant 2.000000e+00 : f32
    %56 = vector.broadcast %cst_23 : f32 to vector<2x32xf32>
    %57 = arith.mulf %56, %55 : vector<2x32xf32>
    %cst_24 = arith.constant 1.000000e+00 : f32
    %58 = vector.broadcast %cst_24 : f32 to vector<2x32xf32>
    %59 = arith.subf %57, %58 : vector<2x32xf32>
    %60 = vector.extract_strided_slice %52 {offsets = [0, 96], sizes = [2, 32], strides = [1, 1]} : vector<2x128xf32> to vector<2x32xf32>
    %61 = arith.mulf %54, %37 : vector<2x32xf32>
    %62 = arith.mulf %53, %59 : vector<2x32xf32>
    %63 = arith.addf %61, %62 : vector<2x32xf32>
    %64 = math.tanh %63 : vector<2x32xf32>
    %65 = arith.mulf %60, %64 : vector<2x32xf32>
    %cst_25 = arith.constant dense<0.000000e+00> : vector<2x128xf32>
    %66 = tpu.matmul %65, %38, %cst_25 {dimension_numbers = #tpu.dot_dimension_numbers<[1], [0], [0], [1], [0, 0, 1, 1], [], []>} : vector<2x32xf32>, vector<32x128xf32>, vector<2x128xf32> -> vector<2x128xf32>
    %67 = arith.mulf %65, %65 : vector<2x32xf32>
    %cst_26 = arith.constant dense<0.000000e+00> : vector<2xf32>
    %68 = vector.multi_reduction <add>, %67, %cst_26 [1] : vector<2x32xf32> to vector<2xf32>
    %69 = vector.shape_cast %68 : vector<2xf32> to vector<2x1xf32>
    %70 = arith.mulf %38, %38 : vector<32x128xf32>
    %cst_27 = arith.constant dense<0.000000e+00> : vector<1x128xf32>
    %71 = tpu.matmul %35, %70, %cst_27 {dimension_numbers = #tpu.dot_dimension_numbers<[1], [0], [0], [1], [0, 0, 1, 1], [], []>} : vector<1x32xf32>, vector<32x128xf32>, vector<1x128xf32> -> vector<1x128xf32>
    %72 = vector.broadcast %69 : vector<2x1xf32> to vector<2x128xf32>
    %73 = vector.broadcast %71 : vector<1x128xf32> to vector<2x128xf32>
    %74 = arith.mulf %72, %73 : vector<2x128xf32>
    %75 = math.sqrt %74 : vector<2x128xf32>
    %cst_28 = arith.constant 9.99999993E-9 : f32
    %76 = vector.broadcast %cst_28 : f32 to vector<2x128xf32>
    %77 = arith.addf %75, %76 : vector<2x128xf32>
    %78 = arith.divf %66, %77 : vector<2x128xf32>
    %79 = math.exp %78 : vector<2x128xf32>
    %80 = arith.mulf %79, %25 : vector<2x128xf32>
    %cst_29 = arith.constant dense<0.000000e+00> : vector<2xf32>
    %81 = vector.multi_reduction <add>, %80, %cst_29 [1] : vector<2x128xf32> to vector<2xf32>
    %82 = vector.shape_cast %81 : vector<2xf32> to vector<2x1xf32>
    %83 = vector.broadcast %82 : vector<2x1xf32> to vector<2x128xf32>
    %84 = arith.divf %80, %83 : vector<2x128xf32>
    %cst_30 = arith.constant dense<0.000000e+00> : vector<2x32xf32>
    %85 = tpu.matmul %84, %38, %cst_30 {dimension_numbers = #tpu.dot_dimension_numbers<[1], [1], [0], [0], [0, 0, 1, 0], [], []>} : vector<2x128xf32>, vector<32x128xf32>, vector<2x32xf32> -> vector<2x32xf32>
    %86 = arith.addf %41, %65 : vector<2x32xf32>
    %87 = arith.addf %42, %85 : vector<2x32xf32>
    %c100_i32_31 = arith.constant 100 : i32
    %88 = vector.broadcast %c100_i32_31 : i32 to vector<2x128xi32>
    %89 = arith.cmpi slt, %20, %88 : vector<2x128xi32>
    %cst_32 = arith.constant 1.000000e+30 : f32
    %90 = vector.broadcast %cst_32 : f32 to vector<2x128xf32>
    %91 = arith.select %89, %39, %90 : vector<2x128xi1>, vector<2x128xf32>
    %cst_33 = arith.constant dense<0x7F800000> : vector<2xf32>
    %92 = vector.multi_reduction <minimumf>, %91, %cst_33 [1] : vector<2x128xf32> to vector<2xf32>
    %93 = vector.shape_cast %92 : vector<2xf32> to vector<2x1xf32>
    %94 = vector.broadcast %93 : vector<2x1xf32> to vector<2x128xf32>
    %95 = arith.cmpf oeq, %91, %94 : vector<2x128xf32>
    %cst_34 = arith.constant 1.280000e+02 : f32
    %96 = vector.broadcast %cst_34 : f32 to vector<2x128xf32>
    %97 = arith.select %95, %21, %96 : vector<2x128xi1>, vector<2x128xf32>
    %cst_35 = arith.constant dense<0x7F800000> : vector<2xf32>
    %98 = vector.multi_reduction <minimumf>, %97, %cst_35 [1] : vector<2x128xf32> to vector<2xf32>
    %99 = vector.shape_cast %98 : vector<2xf32> to vector<2x1xf32>
    %100 = vector.broadcast %99 : vector<2x1xf32> to vector<2x128xf32>
    %101 = arith.cmpf oeq, %21, %100 : vector<2x128xf32>
    %102 = arith.extui %101 : vector<2x128xi1> to vector<2x128xi32>
    %103 = arith.sitofp %102 : vector<2x128xi32> to vector<2x128xf32>
    %cst_36 = arith.constant 0.401312351 : f32
    %104 = vector.broadcast %cst_36 : f32 to vector<2x128xf32>
    %105 = arith.mulf %104, %40 : vector<2x128xf32>
    %cst_37 = arith.constant 0.598687648 : f32
    %106 = vector.broadcast %cst_37 : f32 to vector<2x128xf32>
    %107 = arith.mulf %106, %103 : vector<2x128xf32>
    %108 = arith.addf %105, %107 : vector<2x128xf32>
    %cst_38 = arith.constant dense<0.000000e+00> : vector<32x128xf32>
    %109 = tpu.matmul %65, %108, %cst_38 {dimension_numbers = #tpu.dot_dimension_numbers<[0], [0], [1], [1], [0, 1, 1, 1], [], []>} : vector<2x32xf32>, vector<2x128xf32>, vector<32x128xf32> -> vector<32x128xf32>
    %110 = arith.addf %38, %109 : vector<32x128xf32>
    %111 = arith.mulf %110, %110 : vector<32x128xf32>
    %cst_39 = arith.constant dense<0.000000e+00> : vector<1x128xf32>
    %112 = tpu.matmul %35, %111, %cst_39 {dimension_numbers = #tpu.dot_dimension_numbers<[1], [0], [0], [1], [0, 0, 1, 1], [], []>} : vector<1x32xf32>, vector<32x128xf32>, vector<1x128xf32> -> vector<1x128xf32>
    %cst_40 = arith.constant 1.000000e-24 : f32
    %113 = vector.broadcast %cst_40 : f32 to vector<1x128xf32>
    %114 = arith.maximumf %112, %113 : vector<1x128xf32>
    %115 = math.rsqrt %114 : vector<1x128xf32>
    %116 = vector.broadcast %115 : vector<1x128xf32> to vector<32x128xf32>
    %117 = arith.mulf %110, %116 : vector<32x128xf32>
    %cst_41 = arith.constant 3.000000e-01 : f32
    %118 = vector.broadcast %cst_41 : f32 to vector<2x128xf32>
    %119 = arith.mulf %118, %39 : vector<2x128xf32>
    %120 = arith.addf %119, %84 : vector<2x128xf32>
    %121 = arith.addf %120, %108 : vector<2x128xf32>
    %122 = arith.mulf %121, %121 : vector<2x128xf32>
    %cst_42 = arith.constant dense<0.000000e+00> : vector<2xf32>
    %123 = vector.multi_reduction <add>, %122, %cst_42 [1] : vector<2x128xf32> to vector<2xf32>
    %124 = vector.shape_cast %123 : vector<2xf32> to vector<2x1xf32>
    %cst_43 = arith.constant 1.000000e-24 : f32
    %125 = vector.broadcast %cst_43 : f32 to vector<2x1xf32>
    %126 = arith.maximumf %124, %125 : vector<2x1xf32>
    %127 = math.rsqrt %126 : vector<2x1xf32>
    %128 = vector.broadcast %127 : vector<2x1xf32> to vector<2x128xf32>
    %129 = arith.mulf %121, %128 : vector<2x128xf32>
    %130 = vector.extract_strided_slice %11 {offsets = [2, 0], sizes = [2, 128], strides = [1, 1]} : vector<16x128xf32> to vector<2x128xf32>
    %cst_44 = arith.constant dense<0.000000e+00> : vector<2x128xf32>
    %131 = tpu.matmul %65, %2, %cst_44 {dimension_numbers = #tpu.dot_dimension_numbers<[1], [0], [0], [1], [0, 0, 1, 1], [], []>} : vector<2x32xf32>, vector<32x128xf32>, vector<2x128xf32> -> vector<2x128xf32>
    %132 = arith.addf %130, %131 : vector<2x128xf32>
    %133 = vector.broadcast %34 : vector<1x128xf32> to vector<2x128xf32>
    %134 = arith.mulf %132, %133 : vector<2x128xf32>
    %135 = arith.negf %134 : vector<2x128xf32>
    %136 = math.exp %135 : vector<2x128xf32>
    %cst_45 = arith.constant 1.000000e+00 : f32
    %137 = vector.broadcast %cst_45 : f32 to vector<2x128xf32>
    %138 = arith.addf %137, %136 : vector<2x128xf32>
    %139 = arith.divf %137, %138 : vector<2x128xf32>
    %140 = vector.extract_strided_slice %139 {offsets = [0, 0], sizes = [2, 32], strides = [1, 1]} : vector<2x128xf32> to vector<2x32xf32>
    %141 = vector.extract_strided_slice %139 {offsets = [0, 32], sizes = [2, 32], strides = [1, 1]} : vector<2x128xf32> to vector<2x32xf32>
    %142 = vector.extract_strided_slice %139 {offsets = [0, 64], sizes = [2, 32], strides = [1, 1]} : vector<2x128xf32> to vector<2x32xf32>
    %cst_46 = arith.constant 2.000000e+00 : f32
    %143 = vector.broadcast %cst_46 : f32 to vector<2x32xf32>
    %144 = arith.mulf %143, %142 : vector<2x32xf32>
    %cst_47 = arith.constant 1.000000e+00 : f32
    %145 = vector.broadcast %cst_47 : f32 to vector<2x32xf32>
    %146 = arith.subf %144, %145 : vector<2x32xf32>
    %147 = vector.extract_strided_slice %139 {offsets = [0, 96], sizes = [2, 32], strides = [1, 1]} : vector<2x128xf32> to vector<2x32xf32>
    %148 = arith.mulf %141, %63 : vector<2x32xf32>
    %149 = arith.mulf %140, %146 : vector<2x32xf32>
    %150 = arith.addf %148, %149 : vector<2x32xf32>
    %151 = math.tanh %150 : vector<2x32xf32>
    %152 = arith.mulf %147, %151 : vector<2x32xf32>
    %cst_48 = arith.constant dense<0.000000e+00> : vector<2x128xf32>
    %153 = tpu.matmul %152, %117, %cst_48 {dimension_numbers = #tpu.dot_dimension_numbers<[1], [0], [0], [1], [0, 0, 1, 1], [], []>} : vector<2x32xf32>, vector<32x128xf32>, vector<2x128xf32> -> vector<2x128xf32>
    %154 = arith.mulf %152, %152 : vector<2x32xf32>
    %cst_49 = arith.constant dense<0.000000e+00> : vector<2xf32>
    %155 = vector.multi_reduction <add>, %154, %cst_49 [1] : vector<2x32xf32> to vector<2xf32>
    %156 = vector.shape_cast %155 : vector<2xf32> to vector<2x1xf32>
    %157 = arith.mulf %117, %117 : vector<32x128xf32>
    %cst_50 = arith.constant dense<0.000000e+00> : vector<1x128xf32>
    %158 = tpu.matmul %35, %157, %cst_50 {dimension_numbers = #tpu.dot_dimension_numbers<[1], [0], [0], [1], [0, 0, 1, 1], [], []>} : vector<1x32xf32>, vector<32x128xf32>, vector<1x128xf32> -> vector<1x128xf32>
    %159 = vector.broadcast %156 : vector<2x1xf32> to vector<2x128xf32>
    %160 = vector.broadcast %158 : vector<1x128xf32> to vector<2x128xf32>
    %161 = arith.mulf %159, %160 : vector<2x128xf32>
    %162 = math.sqrt %161 : vector<2x128xf32>
    %cst_51 = arith.constant 9.99999993E-9 : f32
    %163 = vector.broadcast %cst_51 : f32 to vector<2x128xf32>
    %164 = arith.addf %162, %163 : vector<2x128xf32>
    %165 = arith.divf %153, %164 : vector<2x128xf32>
    %166 = math.exp %165 : vector<2x128xf32>
    %167 = arith.mulf %166, %25 : vector<2x128xf32>
    %cst_52 = arith.constant dense<0.000000e+00> : vector<2xf32>
    %168 = vector.multi_reduction <add>, %167, %cst_52 [1] : vector<2x128xf32> to vector<2xf32>
    %169 = vector.shape_cast %168 : vector<2xf32> to vector<2x1xf32>
    %170 = vector.broadcast %169 : vector<2x1xf32> to vector<2x128xf32>
    %171 = arith.divf %167, %170 : vector<2x128xf32>
    %cst_53 = arith.constant dense<0.000000e+00> : vector<2x32xf32>
    %172 = tpu.matmul %171, %117, %cst_53 {dimension_numbers = #tpu.dot_dimension_numbers<[1], [1], [0], [0], [0, 0, 1, 0], [], []>} : vector<2x128xf32>, vector<32x128xf32>, vector<2x32xf32> -> vector<2x32xf32>
    %173 = arith.addf %86, %152 : vector<2x32xf32>
    %174 = arith.addf %87, %172 : vector<2x32xf32>
    %c100_i32_54 = arith.constant 100 : i32
    %175 = vector.broadcast %c100_i32_54 : i32 to vector<2x128xi32>
    %176 = arith.cmpi slt, %20, %175 : vector<2x128xi32>
    %cst_55 = arith.constant 1.000000e+30 : f32
    %177 = vector.broadcast %cst_55 : f32 to vector<2x128xf32>
    %178 = arith.select %176, %129, %177 : vector<2x128xi1>, vector<2x128xf32>
    %cst_56 = arith.constant dense<0x7F800000> : vector<2xf32>
    %179 = vector.multi_reduction <minimumf>, %178, %cst_56 [1] : vector<2x128xf32> to vector<2xf32>
    %180 = vector.shape_cast %179 : vector<2xf32> to vector<2x1xf32>
    %181 = vector.broadcast %180 : vector<2x1xf32> to vector<2x128xf32>
    %182 = arith.cmpf oeq, %178, %181 : vector<2x128xf32>
    %cst_57 = arith.constant 1.280000e+02 : f32
    %183 = vector.broadcast %cst_57 : f32 to vector<2x128xf32>
    %184 = arith.select %182, %21, %183 : vector<2x128xi1>, vector<2x128xf32>
    %cst_58 = arith.constant dense<0x7F800000> : vector<2xf32>
    %185 = vector.multi_reduction <minimumf>, %184, %cst_58 [1] : vector<2x128xf32> to vector<2xf32>
    %186 = vector.shape_cast %185 : vector<2xf32> to vector<2x1xf32>
    %187 = vector.broadcast %186 : vector<2x1xf32> to vector<2x128xf32>
    %188 = arith.cmpf oeq, %21, %187 : vector<2x128xf32>
    %189 = arith.extui %188 : vector<2x128xi1> to vector<2x128xi32>
    %190 = arith.sitofp %189 : vector<2x128xi32> to vector<2x128xf32>
    %cst_59 = arith.constant 0.401312351 : f32
    %191 = vector.broadcast %cst_59 : f32 to vector<2x128xf32>
    %192 = arith.mulf %191, %84 : vector<2x128xf32>
    %cst_60 = arith.constant 0.598687648 : f32
    %193 = vector.broadcast %cst_60 : f32 to vector<2x128xf32>
    %194 = arith.mulf %193, %190 : vector<2x128xf32>
    %195 = arith.addf %192, %194 : vector<2x128xf32>
    %cst_61 = arith.constant dense<0.000000e+00> : vector<32x128xf32>
    %196 = tpu.matmul %152, %195, %cst_61 {dimension_numbers = #tpu.dot_dimension_numbers<[0], [0], [1], [1], [0, 1, 1, 1], [], []>} : vector<2x32xf32>, vector<2x128xf32>, vector<32x128xf32> -> vector<32x128xf32>
    %197 = arith.addf %117, %196 : vector<32x128xf32>
    %198 = arith.mulf %197, %197 : vector<32x128xf32>
    %cst_62 = arith.constant dense<0.000000e+00> : vector<1x128xf32>
    %199 = tpu.matmul %35, %198, %cst_62 {dimension_numbers = #tpu.dot_dimension_numbers<[1], [0], [0], [1], [0, 0, 1, 1], [], []>} : vector<1x32xf32>, vector<32x128xf32>, vector<1x128xf32> -> vector<1x128xf32>
    %cst_63 = arith.constant 1.000000e-24 : f32
    %200 = vector.broadcast %cst_63 : f32 to vector<1x128xf32>
    %201 = arith.maximumf %199, %200 : vector<1x128xf32>
    %202 = math.rsqrt %201 : vector<1x128xf32>
    %203 = vector.broadcast %202 : vector<1x128xf32> to vector<32x128xf32>
    %204 = arith.mulf %197, %203 : vector<32x128xf32>
    %cst_64 = arith.constant 3.000000e-01 : f32
    %205 = vector.broadcast %cst_64 : f32 to vector<2x128xf32>
    %206 = arith.mulf %205, %129 : vector<2x128xf32>
    %207 = arith.addf %206, %171 : vector<2x128xf32>
    %208 = arith.addf %207, %195 : vector<2x128xf32>
    %209 = arith.mulf %208, %208 : vector<2x128xf32>
    %cst_65 = arith.constant dense<0.000000e+00> : vector<2xf32>
    %210 = vector.multi_reduction <add>, %209, %cst_65 [1] : vector<2x128xf32> to vector<2xf32>
    %211 = vector.shape_cast %210 : vector<2xf32> to vector<2x1xf32>
    %cst_66 = arith.constant 1.000000e-24 : f32
    %212 = vector.broadcast %cst_66 : f32 to vector<2x1xf32>
    %213 = arith.maximumf %211, %212 : vector<2x1xf32>
    %214 = math.rsqrt %213 : vector<2x1xf32>
    %215 = vector.broadcast %214 : vector<2x1xf32> to vector<2x128xf32>
    %216 = arith.mulf %208, %215 : vector<2x128xf32>
    %217 = vector.extract_strided_slice %11 {offsets = [4, 0], sizes = [2, 128], strides = [1, 1]} : vector<16x128xf32> to vector<2x128xf32>
    %cst_67 = arith.constant dense<0.000000e+00> : vector<2x128xf32>
    %218 = tpu.matmul %152, %2, %cst_67 {dimension_numbers = #tpu.dot_dimension_numbers<[1], [0], [0], [1], [0, 0, 1, 1], [], []>} : vector<2x32xf32>, vector<32x128xf32>, vector<2x128xf32> -> vector<2x128xf32>
    %219 = arith.addf %217, %218 : vector<2x128xf32>
    %220 = vector.broadcast %34 : vector<1x128xf32> to vector<2x128xf32>
    %221 = arith.mulf %219, %220 : vector<2x128xf32>
    %222 = arith.negf %221 : vector<2x128xf32>
    %223 = math.exp %222 : vector<2x128xf32>
    %cst_68 = arith.constant 1.000000e+00 : f32
    %224 = vector.broadcast %cst_68 : f32 to vector<2x128xf32>
    %225 = arith.addf %224, %223 : vector<2x128xf32>
    %226 = arith.divf %224, %225 : vector<2x128xf32>
    %227 = vector.extract_strided_slice %226 {offsets = [0, 0], sizes = [2, 32], strides = [1, 1]} : vector<2x128xf32> to vector<2x32xf32>
    %228 = vector.extract_strided_slice %226 {offsets = [0, 32], sizes = [2, 32], strides = [1, 1]} : vector<2x128xf32> to vector<2x32xf32>
    %229 = vector.extract_strided_slice %226 {offsets = [0, 64], sizes = [2, 32], strides = [1, 1]} : vector<2x128xf32> to vector<2x32xf32>
    %cst_69 = arith.constant 2.000000e+00 : f32
    %230 = vector.broadcast %cst_69 : f32 to vector<2x32xf32>
    %231 = arith.mulf %230, %229 : vector<2x32xf32>
    %cst_70 = arith.constant 1.000000e+00 : f32
    %232 = vector.broadcast %cst_70 : f32 to vector<2x32xf32>
    %233 = arith.subf %231, %232 : vector<2x32xf32>
    %234 = vector.extract_strided_slice %226 {offsets = [0, 96], sizes = [2, 32], strides = [1, 1]} : vector<2x128xf32> to vector<2x32xf32>
    %235 = arith.mulf %228, %150 : vector<2x32xf32>
    %236 = arith.mulf %227, %233 : vector<2x32xf32>
    %237 = arith.addf %235, %236 : vector<2x32xf32>
    %238 = math.tanh %237 : vector<2x32xf32>
    %239 = arith.mulf %234, %238 : vector<2x32xf32>
    %cst_71 = arith.constant dense<0.000000e+00> : vector<2x128xf32>
    %240 = tpu.matmul %239, %204, %cst_71 {dimension_numbers = #tpu.dot_dimension_numbers<[1], [0], [0], [1], [0, 0, 1, 1], [], []>} : vector<2x32xf32>, vector<32x128xf32>, vector<2x128xf32> -> vector<2x128xf32>
    %241 = arith.mulf %239, %239 : vector<2x32xf32>
    %cst_72 = arith.constant dense<0.000000e+00> : vector<2xf32>
    %242 = vector.multi_reduction <add>, %241, %cst_72 [1] : vector<2x32xf32> to vector<2xf32>
    %243 = vector.shape_cast %242 : vector<2xf32> to vector<2x1xf32>
    %244 = arith.mulf %204, %204 : vector<32x128xf32>
    %cst_73 = arith.constant dense<0.000000e+00> : vector<1x128xf32>
    %245 = tpu.matmul %35, %244, %cst_73 {dimension_numbers = #tpu.dot_dimension_numbers<[1], [0], [0], [1], [0, 0, 1, 1], [], []>} : vector<1x32xf32>, vector<32x128xf32>, vector<1x128xf32> -> vector<1x128xf32>
    %246 = vector.broadcast %243 : vector<2x1xf32> to vector<2x128xf32>
    %247 = vector.broadcast %245 : vector<1x128xf32> to vector<2x128xf32>
    %248 = arith.mulf %246, %247 : vector<2x128xf32>
    %249 = math.sqrt %248 : vector<2x128xf32>
    %cst_74 = arith.constant 9.99999993E-9 : f32
    %250 = vector.broadcast %cst_74 : f32 to vector<2x128xf32>
    %251 = arith.addf %249, %250 : vector<2x128xf32>
    %252 = arith.divf %240, %251 : vector<2x128xf32>
    %253 = math.exp %252 : vector<2x128xf32>
    %254 = arith.mulf %253, %25 : vector<2x128xf32>
    %cst_75 = arith.constant dense<0.000000e+00> : vector<2xf32>
    %255 = vector.multi_reduction <add>, %254, %cst_75 [1] : vector<2x128xf32> to vector<2xf32>
    %256 = vector.shape_cast %255 : vector<2xf32> to vector<2x1xf32>
    %257 = vector.broadcast %256 : vector<2x1xf32> to vector<2x128xf32>
    %258 = arith.divf %254, %257 : vector<2x128xf32>
    %cst_76 = arith.constant dense<0.000000e+00> : vector<2x32xf32>
    %259 = tpu.matmul %258, %204, %cst_76 {dimension_numbers = #tpu.dot_dimension_numbers<[1], [1], [0], [0], [0, 0, 1, 0], [], []>} : vector<2x128xf32>, vector<32x128xf32>, vector<2x32xf32> -> vector<2x32xf32>
    %260 = arith.addf %173, %239 : vector<2x32xf32>
    %261 = arith.addf %174, %259 : vector<2x32xf32>
    %c100_i32_77 = arith.constant 100 : i32
    %262 = vector.broadcast %c100_i32_77 : i32 to vector<2x128xi32>
    %263 = arith.cmpi slt, %20, %262 : vector<2x128xi32>
    %cst_78 = arith.constant 1.000000e+30 : f32
    %264 = vector.broadcast %cst_78 : f32 to vector<2x128xf32>
    %265 = arith.select %263, %216, %264 : vector<2x128xi1>, vector<2x128xf32>
    %cst_79 = arith.constant dense<0x7F800000> : vector<2xf32>
    %266 = vector.multi_reduction <minimumf>, %265, %cst_79 [1] : vector<2x128xf32> to vector<2xf32>
    %267 = vector.shape_cast %266 : vector<2xf32> to vector<2x1xf32>
    %268 = vector.broadcast %267 : vector<2x1xf32> to vector<2x128xf32>
    %269 = arith.cmpf oeq, %265, %268 : vector<2x128xf32>
    %cst_80 = arith.constant 1.280000e+02 : f32
    %270 = vector.broadcast %cst_80 : f32 to vector<2x128xf32>
    %271 = arith.select %269, %21, %270 : vector<2x128xi1>, vector<2x128xf32>
    %cst_81 = arith.constant dense<0x7F800000> : vector<2xf32>
    %272 = vector.multi_reduction <minimumf>, %271, %cst_81 [1] : vector<2x128xf32> to vector<2xf32>
    %273 = vector.shape_cast %272 : vector<2xf32> to vector<2x1xf32>
    %274 = vector.broadcast %273 : vector<2x1xf32> to vector<2x128xf32>
    %275 = arith.cmpf oeq, %21, %274 : vector<2x128xf32>
    %276 = arith.extui %275 : vector<2x128xi1> to vector<2x128xi32>
    %277 = arith.sitofp %276 : vector<2x128xi32> to vector<2x128xf32>
    %cst_82 = arith.constant 0.401312351 : f32
    %278 = vector.broadcast %cst_82 : f32 to vector<2x128xf32>
    %279 = arith.mulf %278, %171 : vector<2x128xf32>
    %cst_83 = arith.constant 0.598687648 : f32
    %280 = vector.broadcast %cst_83 : f32 to vector<2x128xf32>
    %281 = arith.mulf %280, %277 : vector<2x128xf32>
    %282 = arith.addf %279, %281 : vector<2x128xf32>
    %cst_84 = arith.constant dense<0.000000e+00> : vector<32x128xf32>
    %283 = tpu.matmul %239, %282, %cst_84 {dimension_numbers = #tpu.dot_dimension_numbers<[0], [0], [1], [1], [0, 1, 1, 1], [], []>} : vector<2x32xf32>, vector<2x128xf32>, vector<32x128xf32> -> vector<32x128xf32>
    %284 = arith.addf %204, %283 : vector<32x128xf32>
    %285 = arith.mulf %284, %284 : vector<32x128xf32>
    %cst_85 = arith.constant dense<0.000000e+00> : vector<1x128xf32>
    %286 = tpu.matmul %35, %285, %cst_85 {dimension_numbers = #tpu.dot_dimension_numbers<[1], [0], [0], [1], [0, 0, 1, 1], [], []>} : vector<1x32xf32>, vector<32x128xf32>, vector<1x128xf32> -> vector<1x128xf32>
    %cst_86 = arith.constant 1.000000e-24 : f32
    %287 = vector.broadcast %cst_86 : f32 to vector<1x128xf32>
    %288 = arith.maximumf %286, %287 : vector<1x128xf32>
    %289 = math.rsqrt %288 : vector<1x128xf32>
    %290 = vector.broadcast %289 : vector<1x128xf32> to vector<32x128xf32>
    %291 = arith.mulf %284, %290 : vector<32x128xf32>
    %cst_87 = arith.constant 3.000000e-01 : f32
    %292 = vector.broadcast %cst_87 : f32 to vector<2x128xf32>
    %293 = arith.mulf %292, %216 : vector<2x128xf32>
    %294 = arith.addf %293, %258 : vector<2x128xf32>
    %295 = arith.addf %294, %282 : vector<2x128xf32>
    %296 = arith.mulf %295, %295 : vector<2x128xf32>
    %cst_88 = arith.constant dense<0.000000e+00> : vector<2xf32>
    %297 = vector.multi_reduction <add>, %296, %cst_88 [1] : vector<2x128xf32> to vector<2xf32>
    %298 = vector.shape_cast %297 : vector<2xf32> to vector<2x1xf32>
    %cst_89 = arith.constant 1.000000e-24 : f32
    %299 = vector.broadcast %cst_89 : f32 to vector<2x1xf32>
    %300 = arith.maximumf %298, %299 : vector<2x1xf32>
    %301 = math.rsqrt %300 : vector<2x1xf32>
    %302 = vector.broadcast %301 : vector<2x1xf32> to vector<2x128xf32>
    %303 = arith.mulf %295, %302 : vector<2x128xf32>
    %304 = vector.extract_strided_slice %11 {offsets = [6, 0], sizes = [2, 128], strides = [1, 1]} : vector<16x128xf32> to vector<2x128xf32>
    %cst_90 = arith.constant dense<0.000000e+00> : vector<2x128xf32>
    %305 = tpu.matmul %239, %2, %cst_90 {dimension_numbers = #tpu.dot_dimension_numbers<[1], [0], [0], [1], [0, 0, 1, 1], [], []>} : vector<2x32xf32>, vector<32x128xf32>, vector<2x128xf32> -> vector<2x128xf32>
    %306 = arith.addf %304, %305 : vector<2x128xf32>
    %307 = vector.broadcast %34 : vector<1x128xf32> to vector<2x128xf32>
    %308 = arith.mulf %306, %307 : vector<2x128xf32>
    %309 = arith.negf %308 : vector<2x128xf32>
    %310 = math.exp %309 : vector<2x128xf32>
    %cst_91 = arith.constant 1.000000e+00 : f32
    %311 = vector.broadcast %cst_91 : f32 to vector<2x128xf32>
    %312 = arith.addf %311, %310 : vector<2x128xf32>
    %313 = arith.divf %311, %312 : vector<2x128xf32>
    %314 = vector.extract_strided_slice %313 {offsets = [0, 0], sizes = [2, 32], strides = [1, 1]} : vector<2x128xf32> to vector<2x32xf32>
    %315 = vector.extract_strided_slice %313 {offsets = [0, 32], sizes = [2, 32], strides = [1, 1]} : vector<2x128xf32> to vector<2x32xf32>
    %316 = vector.extract_strided_slice %313 {offsets = [0, 64], sizes = [2, 32], strides = [1, 1]} : vector<2x128xf32> to vector<2x32xf32>
    %cst_92 = arith.constant 2.000000e+00 : f32
    %317 = vector.broadcast %cst_92 : f32 to vector<2x32xf32>
    %318 = arith.mulf %317, %316 : vector<2x32xf32>
    %cst_93 = arith.constant 1.000000e+00 : f32
    %319 = vector.broadcast %cst_93 : f32 to vector<2x32xf32>
    %320 = arith.subf %318, %319 : vector<2x32xf32>
    %321 = vector.extract_strided_slice %313 {offsets = [0, 96], sizes = [2, 32], strides = [1, 1]} : vector<2x128xf32> to vector<2x32xf32>
    %322 = arith.mulf %315, %237 : vector<2x32xf32>
    %323 = arith.mulf %314, %320 : vector<2x32xf32>
    %324 = arith.addf %322, %323 : vector<2x32xf32>
    %325 = math.tanh %324 : vector<2x32xf32>
    %326 = arith.mulf %321, %325 : vector<2x32xf32>
    %cst_94 = arith.constant dense<0.000000e+00> : vector<2x128xf32>
    %327 = tpu.matmul %326, %291, %cst_94 {dimension_numbers = #tpu.dot_dimension_numbers<[1], [0], [0], [1], [0, 0, 1, 1], [], []>} : vector<2x32xf32>, vector<32x128xf32>, vector<2x128xf32> -> vector<2x128xf32>
    %328 = arith.mulf %326, %326 : vector<2x32xf32>
    %cst_95 = arith.constant dense<0.000000e+00> : vector<2xf32>
    %329 = vector.multi_reduction <add>, %328, %cst_95 [1] : vector<2x32xf32> to vector<2xf32>
    %330 = vector.shape_cast %329 : vector<2xf32> to vector<2x1xf32>
    %331 = arith.mulf %291, %291 : vector<32x128xf32>
    %cst_96 = arith.constant dense<0.000000e+00> : vector<1x128xf32>
    %332 = tpu.matmul %35, %331, %cst_96 {dimension_numbers = #tpu.dot_dimension_numbers<[1], [0], [0], [1], [0, 0, 1, 1], [], []>} : vector<1x32xf32>, vector<32x128xf32>, vector<1x128xf32> -> vector<1x128xf32>
    %333 = vector.broadcast %330 : vector<2x1xf32> to vector<2x128xf32>
    %334 = vector.broadcast %332 : vector<1x128xf32> to vector<2x128xf32>
    %335 = arith.mulf %333, %334 : vector<2x128xf32>
    %336 = math.sqrt %335 : vector<2x128xf32>
    %cst_97 = arith.constant 9.99999993E-9 : f32
    %337 = vector.broadcast %cst_97 : f32 to vector<2x128xf32>
    %338 = arith.addf %336, %337 : vector<2x128xf32>
    %339 = arith.divf %327, %338 : vector<2x128xf32>
    %340 = math.exp %339 : vector<2x128xf32>
    %341 = arith.mulf %340, %25 : vector<2x128xf32>
    %cst_98 = arith.constant dense<0.000000e+00> : vector<2xf32>
    %342 = vector.multi_reduction <add>, %341, %cst_98 [1] : vector<2x128xf32> to vector<2xf32>
    %343 = vector.shape_cast %342 : vector<2xf32> to vector<2x1xf32>
    %344 = vector.broadcast %343 : vector<2x1xf32> to vector<2x128xf32>
    %345 = arith.divf %341, %344 : vector<2x128xf32>
    %cst_99 = arith.constant dense<0.000000e+00> : vector<2x32xf32>
    %346 = tpu.matmul %345, %291, %cst_99 {dimension_numbers = #tpu.dot_dimension_numbers<[1], [1], [0], [0], [0, 0, 1, 0], [], []>} : vector<2x128xf32>, vector<32x128xf32>, vector<2x32xf32> -> vector<2x32xf32>
    %347 = arith.addf %260, %326 : vector<2x32xf32>
    %348 = arith.addf %261, %346 : vector<2x32xf32>
    %c100_i32_100 = arith.constant 100 : i32
    %349 = vector.broadcast %c100_i32_100 : i32 to vector<2x128xi32>
    %350 = arith.cmpi slt, %20, %349 : vector<2x128xi32>
    %cst_101 = arith.constant 1.000000e+30 : f32
    %351 = vector.broadcast %cst_101 : f32 to vector<2x128xf32>
    %352 = arith.select %350, %303, %351 : vector<2x128xi1>, vector<2x128xf32>
    %cst_102 = arith.constant dense<0x7F800000> : vector<2xf32>
    %353 = vector.multi_reduction <minimumf>, %352, %cst_102 [1] : vector<2x128xf32> to vector<2xf32>
    %354 = vector.shape_cast %353 : vector<2xf32> to vector<2x1xf32>
    %355 = vector.broadcast %354 : vector<2x1xf32> to vector<2x128xf32>
    %356 = arith.cmpf oeq, %352, %355 : vector<2x128xf32>
    %cst_103 = arith.constant 1.280000e+02 : f32
    %357 = vector.broadcast %cst_103 : f32 to vector<2x128xf32>
    %358 = arith.select %356, %21, %357 : vector<2x128xi1>, vector<2x128xf32>
    %cst_104 = arith.constant dense<0x7F800000> : vector<2xf32>
    %359 = vector.multi_reduction <minimumf>, %358, %cst_104 [1] : vector<2x128xf32> to vector<2xf32>
    %360 = vector.shape_cast %359 : vector<2xf32> to vector<2x1xf32>
    %361 = vector.broadcast %360 : vector<2x1xf32> to vector<2x128xf32>
    %362 = arith.cmpf oeq, %21, %361 : vector<2x128xf32>
    %363 = arith.extui %362 : vector<2x128xi1> to vector<2x128xi32>
    %364 = arith.sitofp %363 : vector<2x128xi32> to vector<2x128xf32>
    %cst_105 = arith.constant 0.401312351 : f32
    %365 = vector.broadcast %cst_105 : f32 to vector<2x128xf32>
    %366 = arith.mulf %365, %258 : vector<2x128xf32>
    %cst_106 = arith.constant 0.598687648 : f32
    %367 = vector.broadcast %cst_106 : f32 to vector<2x128xf32>
    %368 = arith.mulf %367, %364 : vector<2x128xf32>
    %369 = arith.addf %366, %368 : vector<2x128xf32>
    %cst_107 = arith.constant dense<0.000000e+00> : vector<32x128xf32>
    %370 = tpu.matmul %326, %369, %cst_107 {dimension_numbers = #tpu.dot_dimension_numbers<[0], [0], [1], [1], [0, 1, 1, 1], [], []>} : vector<2x32xf32>, vector<2x128xf32>, vector<32x128xf32> -> vector<32x128xf32>
    %371 = arith.addf %291, %370 : vector<32x128xf32>
    %372 = arith.mulf %371, %371 : vector<32x128xf32>
    %cst_108 = arith.constant dense<0.000000e+00> : vector<1x128xf32>
    %373 = tpu.matmul %35, %372, %cst_108 {dimension_numbers = #tpu.dot_dimension_numbers<[1], [0], [0], [1], [0, 0, 1, 1], [], []>} : vector<1x32xf32>, vector<32x128xf32>, vector<1x128xf32> -> vector<1x128xf32>
    %cst_109 = arith.constant 1.000000e-24 : f32
    %374 = vector.broadcast %cst_109 : f32 to vector<1x128xf32>
    %375 = arith.maximumf %373, %374 : vector<1x128xf32>
    %376 = math.rsqrt %375 : vector<1x128xf32>
    %377 = vector.broadcast %376 : vector<1x128xf32> to vector<32x128xf32>
    %378 = arith.mulf %371, %377 : vector<32x128xf32>
    %cst_110 = arith.constant 3.000000e-01 : f32
    %379 = vector.broadcast %cst_110 : f32 to vector<2x128xf32>
    %380 = arith.mulf %379, %303 : vector<2x128xf32>
    %381 = arith.addf %380, %345 : vector<2x128xf32>
    %382 = arith.addf %381, %369 : vector<2x128xf32>
    %383 = arith.mulf %382, %382 : vector<2x128xf32>
    %cst_111 = arith.constant dense<0.000000e+00> : vector<2xf32>
    %384 = vector.multi_reduction <add>, %383, %cst_111 [1] : vector<2x128xf32> to vector<2xf32>
    %385 = vector.shape_cast %384 : vector<2xf32> to vector<2x1xf32>
    %cst_112 = arith.constant 1.000000e-24 : f32
    %386 = vector.broadcast %cst_112 : f32 to vector<2x1xf32>
    %387 = arith.maximumf %385, %386 : vector<2x1xf32>
    %388 = math.rsqrt %387 : vector<2x1xf32>
    %389 = vector.broadcast %388 : vector<2x1xf32> to vector<2x128xf32>
    %390 = arith.mulf %382, %389 : vector<2x128xf32>
    %391 = vector.extract_strided_slice %11 {offsets = [8, 0], sizes = [2, 128], strides = [1, 1]} : vector<16x128xf32> to vector<2x128xf32>
    %cst_113 = arith.constant dense<0.000000e+00> : vector<2x128xf32>
    %392 = tpu.matmul %326, %2, %cst_113 {dimension_numbers = #tpu.dot_dimension_numbers<[1], [0], [0], [1], [0, 0, 1, 1], [], []>} : vector<2x32xf32>, vector<32x128xf32>, vector<2x128xf32> -> vector<2x128xf32>
    %393 = arith.addf %391, %392 : vector<2x128xf32>
    %394 = vector.broadcast %34 : vector<1x128xf32> to vector<2x128xf32>
    %395 = arith.mulf %393, %394 : vector<2x128xf32>
    %396 = arith.negf %395 : vector<2x128xf32>
    %397 = math.exp %396 : vector<2x128xf32>
    %cst_114 = arith.constant 1.000000e+00 : f32
    %398 = vector.broadcast %cst_114 : f32 to vector<2x128xf32>
    %399 = arith.addf %398, %397 : vector<2x128xf32>
    %400 = arith.divf %398, %399 : vector<2x128xf32>
    %401 = vector.extract_strided_slice %400 {offsets = [0, 0], sizes = [2, 32], strides = [1, 1]} : vector<2x128xf32> to vector<2x32xf32>
    %402 = vector.extract_strided_slice %400 {offsets = [0, 32], sizes = [2, 32], strides = [1, 1]} : vector<2x128xf32> to vector<2x32xf32>
    %403 = vector.extract_strided_slice %400 {offsets = [0, 64], sizes = [2, 32], strides = [1, 1]} : vector<2x128xf32> to vector<2x32xf32>
    %cst_115 = arith.constant 2.000000e+00 : f32
    %404 = vector.broadcast %cst_115 : f32 to vector<2x32xf32>
    %405 = arith.mulf %404, %403 : vector<2x32xf32>
    %cst_116 = arith.constant 1.000000e+00 : f32
    %406 = vector.broadcast %cst_116 : f32 to vector<2x32xf32>
    %407 = arith.subf %405, %406 : vector<2x32xf32>
    %408 = vector.extract_strided_slice %400 {offsets = [0, 96], sizes = [2, 32], strides = [1, 1]} : vector<2x128xf32> to vector<2x32xf32>
    %409 = arith.mulf %402, %324 : vector<2x32xf32>
    %410 = arith.mulf %401, %407 : vector<2x32xf32>
    %411 = arith.addf %409, %410 : vector<2x32xf32>
    %412 = math.tanh %411 : vector<2x32xf32>
    %413 = arith.mulf %408, %412 : vector<2x32xf32>
    %cst_117 = arith.constant dense<0.000000e+00> : vector<2x128xf32>
    %414 = tpu.matmul %413, %378, %cst_117 {dimension_numbers = #tpu.dot_dimension_numbers<[1], [0], [0], [1], [0, 0, 1, 1], [], []>} : vector<2x32xf32>, vector<32x128xf32>, vector<2x128xf32> -> vector<2x128xf32>
    %415 = arith.mulf %413, %413 : vector<2x32xf32>
    %cst_118 = arith.constant dense<0.000000e+00> : vector<2xf32>
    %416 = vector.multi_reduction <add>, %415, %cst_118 [1] : vector<2x32xf32> to vector<2xf32>
    %417 = vector.shape_cast %416 : vector<2xf32> to vector<2x1xf32>
    %418 = arith.mulf %378, %378 : vector<32x128xf32>
    %cst_119 = arith.constant dense<0.000000e+00> : vector<1x128xf32>
    %419 = tpu.matmul %35, %418, %cst_119 {dimension_numbers = #tpu.dot_dimension_numbers<[1], [0], [0], [1], [0, 0, 1, 1], [], []>} : vector<1x32xf32>, vector<32x128xf32>, vector<1x128xf32> -> vector<1x128xf32>
    %420 = vector.broadcast %417 : vector<2x1xf32> to vector<2x128xf32>
    %421 = vector.broadcast %419 : vector<1x128xf32> to vector<2x128xf32>
    %422 = arith.mulf %420, %421 : vector<2x128xf32>
    %423 = math.sqrt %422 : vector<2x128xf32>
    %cst_120 = arith.constant 9.99999993E-9 : f32
    %424 = vector.broadcast %cst_120 : f32 to vector<2x128xf32>
    %425 = arith.addf %423, %424 : vector<2x128xf32>
    %426 = arith.divf %414, %425 : vector<2x128xf32>
    %427 = math.exp %426 : vector<2x128xf32>
    %428 = arith.mulf %427, %25 : vector<2x128xf32>
    %cst_121 = arith.constant dense<0.000000e+00> : vector<2xf32>
    %429 = vector.multi_reduction <add>, %428, %cst_121 [1] : vector<2x128xf32> to vector<2xf32>
    %430 = vector.shape_cast %429 : vector<2xf32> to vector<2x1xf32>
    %431 = vector.broadcast %430 : vector<2x1xf32> to vector<2x128xf32>
    %432 = arith.divf %428, %431 : vector<2x128xf32>
    %cst_122 = arith.constant dense<0.000000e+00> : vector<2x32xf32>
    %433 = tpu.matmul %432, %378, %cst_122 {dimension_numbers = #tpu.dot_dimension_numbers<[1], [1], [0], [0], [0, 0, 1, 0], [], []>} : vector<2x128xf32>, vector<32x128xf32>, vector<2x32xf32> -> vector<2x32xf32>
    %434 = arith.addf %347, %413 : vector<2x32xf32>
    %435 = arith.addf %348, %433 : vector<2x32xf32>
    %c100_i32_123 = arith.constant 100 : i32
    %436 = vector.broadcast %c100_i32_123 : i32 to vector<2x128xi32>
    %437 = arith.cmpi slt, %20, %436 : vector<2x128xi32>
    %cst_124 = arith.constant 1.000000e+30 : f32
    %438 = vector.broadcast %cst_124 : f32 to vector<2x128xf32>
    %439 = arith.select %437, %390, %438 : vector<2x128xi1>, vector<2x128xf32>
    %cst_125 = arith.constant dense<0x7F800000> : vector<2xf32>
    %440 = vector.multi_reduction <minimumf>, %439, %cst_125 [1] : vector<2x128xf32> to vector<2xf32>
    %441 = vector.shape_cast %440 : vector<2xf32> to vector<2x1xf32>
    %442 = vector.broadcast %441 : vector<2x1xf32> to vector<2x128xf32>
    %443 = arith.cmpf oeq, %439, %442 : vector<2x128xf32>
    %cst_126 = arith.constant 1.280000e+02 : f32
    %444 = vector.broadcast %cst_126 : f32 to vector<2x128xf32>
    %445 = arith.select %443, %21, %444 : vector<2x128xi1>, vector<2x128xf32>
    %cst_127 = arith.constant dense<0x7F800000> : vector<2xf32>
    %446 = vector.multi_reduction <minimumf>, %445, %cst_127 [1] : vector<2x128xf32> to vector<2xf32>
    %447 = vector.shape_cast %446 : vector<2xf32> to vector<2x1xf32>
    %448 = vector.broadcast %447 : vector<2x1xf32> to vector<2x128xf32>
    %449 = arith.cmpf oeq, %21, %448 : vector<2x128xf32>
    %450 = arith.extui %449 : vector<2x128xi1> to vector<2x128xi32>
    %451 = arith.sitofp %450 : vector<2x128xi32> to vector<2x128xf32>
    %cst_128 = arith.constant 0.401312351 : f32
    %452 = vector.broadcast %cst_128 : f32 to vector<2x128xf32>
    %453 = arith.mulf %452, %345 : vector<2x128xf32>
    %cst_129 = arith.constant 0.598687648 : f32
    %454 = vector.broadcast %cst_129 : f32 to vector<2x128xf32>
    %455 = arith.mulf %454, %451 : vector<2x128xf32>
    %456 = arith.addf %453, %455 : vector<2x128xf32>
    %cst_130 = arith.constant dense<0.000000e+00> : vector<32x128xf32>
    %457 = tpu.matmul %413, %456, %cst_130 {dimension_numbers = #tpu.dot_dimension_numbers<[0], [0], [1], [1], [0, 1, 1, 1], [], []>} : vector<2x32xf32>, vector<2x128xf32>, vector<32x128xf32> -> vector<32x128xf32>
    %458 = arith.addf %378, %457 : vector<32x128xf32>
    %459 = arith.mulf %458, %458 : vector<32x128xf32>
    %cst_131 = arith.constant dense<0.000000e+00> : vector<1x128xf32>
    %460 = tpu.matmul %35, %459, %cst_131 {dimension_numbers = #tpu.dot_dimension_numbers<[1], [0], [0], [1], [0, 0, 1, 1], [], []>} : vector<1x32xf32>, vector<32x128xf32>, vector<1x128xf32> -> vector<1x128xf32>
    %cst_132 = arith.constant 1.000000e-24 : f32
    %461 = vector.broadcast %cst_132 : f32 to vector<1x128xf32>
    %462 = arith.maximumf %460, %461 : vector<1x128xf32>
    %463 = math.rsqrt %462 : vector<1x128xf32>
    %464 = vector.broadcast %463 : vector<1x128xf32> to vector<32x128xf32>
    %465 = arith.mulf %458, %464 : vector<32x128xf32>
    %cst_133 = arith.constant 3.000000e-01 : f32
    %466 = vector.broadcast %cst_133 : f32 to vector<2x128xf32>
    %467 = arith.mulf %466, %390 : vector<2x128xf32>
    %468 = arith.addf %467, %432 : vector<2x128xf32>
    %469 = arith.addf %468, %456 : vector<2x128xf32>
    %470 = arith.mulf %469, %469 : vector<2x128xf32>
    %cst_134 = arith.constant dense<0.000000e+00> : vector<2xf32>
    %471 = vector.multi_reduction <add>, %470, %cst_134 [1] : vector<2x128xf32> to vector<2xf32>
    %472 = vector.shape_cast %471 : vector<2xf32> to vector<2x1xf32>
    %cst_135 = arith.constant 1.000000e-24 : f32
    %473 = vector.broadcast %cst_135 : f32 to vector<2x1xf32>
    %474 = arith.maximumf %472, %473 : vector<2x1xf32>
    %475 = math.rsqrt %474 : vector<2x1xf32>
    %476 = vector.broadcast %475 : vector<2x1xf32> to vector<2x128xf32>
    %477 = arith.mulf %469, %476 : vector<2x128xf32>
    %478 = vector.extract_strided_slice %11 {offsets = [10, 0], sizes = [2, 128], strides = [1, 1]} : vector<16x128xf32> to vector<2x128xf32>
    %cst_136 = arith.constant dense<0.000000e+00> : vector<2x128xf32>
    %479 = tpu.matmul %413, %2, %cst_136 {dimension_numbers = #tpu.dot_dimension_numbers<[1], [0], [0], [1], [0, 0, 1, 1], [], []>} : vector<2x32xf32>, vector<32x128xf32>, vector<2x128xf32> -> vector<2x128xf32>
    %480 = arith.addf %478, %479 : vector<2x128xf32>
    %481 = vector.broadcast %34 : vector<1x128xf32> to vector<2x128xf32>
    %482 = arith.mulf %480, %481 : vector<2x128xf32>
    %483 = arith.negf %482 : vector<2x128xf32>
    %484 = math.exp %483 : vector<2x128xf32>
    %cst_137 = arith.constant 1.000000e+00 : f32
    %485 = vector.broadcast %cst_137 : f32 to vector<2x128xf32>
    %486 = arith.addf %485, %484 : vector<2x128xf32>
    %487 = arith.divf %485, %486 : vector<2x128xf32>
    %488 = vector.extract_strided_slice %487 {offsets = [0, 0], sizes = [2, 32], strides = [1, 1]} : vector<2x128xf32> to vector<2x32xf32>
    %489 = vector.extract_strided_slice %487 {offsets = [0, 32], sizes = [2, 32], strides = [1, 1]} : vector<2x128xf32> to vector<2x32xf32>
    %490 = vector.extract_strided_slice %487 {offsets = [0, 64], sizes = [2, 32], strides = [1, 1]} : vector<2x128xf32> to vector<2x32xf32>
    %cst_138 = arith.constant 2.000000e+00 : f32
    %491 = vector.broadcast %cst_138 : f32 to vector<2x32xf32>
    %492 = arith.mulf %491, %490 : vector<2x32xf32>
    %cst_139 = arith.constant 1.000000e+00 : f32
    %493 = vector.broadcast %cst_139 : f32 to vector<2x32xf32>
    %494 = arith.subf %492, %493 : vector<2x32xf32>
    %495 = vector.extract_strided_slice %487 {offsets = [0, 96], sizes = [2, 32], strides = [1, 1]} : vector<2x128xf32> to vector<2x32xf32>
    %496 = arith.mulf %489, %411 : vector<2x32xf32>
    %497 = arith.mulf %488, %494 : vector<2x32xf32>
    %498 = arith.addf %496, %497 : vector<2x32xf32>
    %499 = math.tanh %498 : vector<2x32xf32>
    %500 = arith.mulf %495, %499 : vector<2x32xf32>
    %cst_140 = arith.constant dense<0.000000e+00> : vector<2x128xf32>
    %501 = tpu.matmul %500, %465, %cst_140 {dimension_numbers = #tpu.dot_dimension_numbers<[1], [0], [0], [1], [0, 0, 1, 1], [], []>} : vector<2x32xf32>, vector<32x128xf32>, vector<2x128xf32> -> vector<2x128xf32>
    %502 = arith.mulf %500, %500 : vector<2x32xf32>
    %cst_141 = arith.constant dense<0.000000e+00> : vector<2xf32>
    %503 = vector.multi_reduction <add>, %502, %cst_141 [1] : vector<2x32xf32> to vector<2xf32>
    %504 = vector.shape_cast %503 : vector<2xf32> to vector<2x1xf32>
    %505 = arith.mulf %465, %465 : vector<32x128xf32>
    %cst_142 = arith.constant dense<0.000000e+00> : vector<1x128xf32>
    %506 = tpu.matmul %35, %505, %cst_142 {dimension_numbers = #tpu.dot_dimension_numbers<[1], [0], [0], [1], [0, 0, 1, 1], [], []>} : vector<1x32xf32>, vector<32x128xf32>, vector<1x128xf32> -> vector<1x128xf32>
    %507 = vector.broadcast %504 : vector<2x1xf32> to vector<2x128xf32>
    %508 = vector.broadcast %506 : vector<1x128xf32> to vector<2x128xf32>
    %509 = arith.mulf %507, %508 : vector<2x128xf32>
    %510 = math.sqrt %509 : vector<2x128xf32>
    %cst_143 = arith.constant 9.99999993E-9 : f32
    %511 = vector.broadcast %cst_143 : f32 to vector<2x128xf32>
    %512 = arith.addf %510, %511 : vector<2x128xf32>
    %513 = arith.divf %501, %512 : vector<2x128xf32>
    %514 = math.exp %513 : vector<2x128xf32>
    %515 = arith.mulf %514, %25 : vector<2x128xf32>
    %cst_144 = arith.constant dense<0.000000e+00> : vector<2xf32>
    %516 = vector.multi_reduction <add>, %515, %cst_144 [1] : vector<2x128xf32> to vector<2xf32>
    %517 = vector.shape_cast %516 : vector<2xf32> to vector<2x1xf32>
    %518 = vector.broadcast %517 : vector<2x1xf32> to vector<2x128xf32>
    %519 = arith.divf %515, %518 : vector<2x128xf32>
    %cst_145 = arith.constant dense<0.000000e+00> : vector<2x32xf32>
    %520 = tpu.matmul %519, %465, %cst_145 {dimension_numbers = #tpu.dot_dimension_numbers<[1], [1], [0], [0], [0, 0, 1, 0], [], []>} : vector<2x128xf32>, vector<32x128xf32>, vector<2x32xf32> -> vector<2x32xf32>
    %521 = arith.addf %434, %500 : vector<2x32xf32>
    %522 = arith.addf %435, %520 : vector<2x32xf32>
    %c100_i32_146 = arith.constant 100 : i32
    %523 = vector.broadcast %c100_i32_146 : i32 to vector<2x128xi32>
    %524 = arith.cmpi slt, %20, %523 : vector<2x128xi32>
    %cst_147 = arith.constant 1.000000e+30 : f32
    %525 = vector.broadcast %cst_147 : f32 to vector<2x128xf32>
    %526 = arith.select %524, %477, %525 : vector<2x128xi1>, vector<2x128xf32>
    %cst_148 = arith.constant dense<0x7F800000> : vector<2xf32>
    %527 = vector.multi_reduction <minimumf>, %526, %cst_148 [1] : vector<2x128xf32> to vector<2xf32>
    %528 = vector.shape_cast %527 : vector<2xf32> to vector<2x1xf32>
    %529 = vector.broadcast %528 : vector<2x1xf32> to vector<2x128xf32>
    %530 = arith.cmpf oeq, %526, %529 : vector<2x128xf32>
    %cst_149 = arith.constant 1.280000e+02 : f32
    %531 = vector.broadcast %cst_149 : f32 to vector<2x128xf32>
    %532 = arith.select %530, %21, %531 : vector<2x128xi1>, vector<2x128xf32>
    %cst_150 = arith.constant dense<0x7F800000> : vector<2xf32>
    %533 = vector.multi_reduction <minimumf>, %532, %cst_150 [1] : vector<2x128xf32> to vector<2xf32>
    %534 = vector.shape_cast %533 : vector<2xf32> to vector<2x1xf32>
    %535 = vector.broadcast %534 : vector<2x1xf32> to vector<2x128xf32>
    %536 = arith.cmpf oeq, %21, %535 : vector<2x128xf32>
    %537 = arith.extui %536 : vector<2x128xi1> to vector<2x128xi32>
    %538 = arith.sitofp %537 : vector<2x128xi32> to vector<2x128xf32>
    %cst_151 = arith.constant 0.401312351 : f32
    %539 = vector.broadcast %cst_151 : f32 to vector<2x128xf32>
    %540 = arith.mulf %539, %432 : vector<2x128xf32>
    %cst_152 = arith.constant 0.598687648 : f32
    %541 = vector.broadcast %cst_152 : f32 to vector<2x128xf32>
    %542 = arith.mulf %541, %538 : vector<2x128xf32>
    %543 = arith.addf %540, %542 : vector<2x128xf32>
    %cst_153 = arith.constant dense<0.000000e+00> : vector<32x128xf32>
    %544 = tpu.matmul %500, %543, %cst_153 {dimension_numbers = #tpu.dot_dimension_numbers<[0], [0], [1], [1], [0, 1, 1, 1], [], []>} : vector<2x32xf32>, vector<2x128xf32>, vector<32x128xf32> -> vector<32x128xf32>
    %545 = arith.addf %465, %544 : vector<32x128xf32>
    %546 = arith.mulf %545, %545 : vector<32x128xf32>
    %cst_154 = arith.constant dense<0.000000e+00> : vector<1x128xf32>
    %547 = tpu.matmul %35, %546, %cst_154 {dimension_numbers = #tpu.dot_dimension_numbers<[1], [0], [0], [1], [0, 0, 1, 1], [], []>} : vector<1x32xf32>, vector<32x128xf32>, vector<1x128xf32> -> vector<1x128xf32>
    %cst_155 = arith.constant 1.000000e-24 : f32
    %548 = vector.broadcast %cst_155 : f32 to vector<1x128xf32>
    %549 = arith.maximumf %547, %548 : vector<1x128xf32>
    %550 = math.rsqrt %549 : vector<1x128xf32>
    %551 = vector.broadcast %550 : vector<1x128xf32> to vector<32x128xf32>
    %552 = arith.mulf %545, %551 : vector<32x128xf32>
    %cst_156 = arith.constant 3.000000e-01 : f32
    %553 = vector.broadcast %cst_156 : f32 to vector<2x128xf32>
    %554 = arith.mulf %553, %477 : vector<2x128xf32>
    %555 = arith.addf %554, %519 : vector<2x128xf32>
    %556 = arith.addf %555, %543 : vector<2x128xf32>
    %557 = arith.mulf %556, %556 : vector<2x128xf32>
    %cst_157 = arith.constant dense<0.000000e+00> : vector<2xf32>
    %558 = vector.multi_reduction <add>, %557, %cst_157 [1] : vector<2x128xf32> to vector<2xf32>
    %559 = vector.shape_cast %558 : vector<2xf32> to vector<2x1xf32>
    %cst_158 = arith.constant 1.000000e-24 : f32
    %560 = vector.broadcast %cst_158 : f32 to vector<2x1xf32>
    %561 = arith.maximumf %559, %560 : vector<2x1xf32>
    %562 = math.rsqrt %561 : vector<2x1xf32>
    %563 = vector.broadcast %562 : vector<2x1xf32> to vector<2x128xf32>
    %564 = arith.mulf %556, %563 : vector<2x128xf32>
    %565 = vector.extract_strided_slice %11 {offsets = [12, 0], sizes = [2, 128], strides = [1, 1]} : vector<16x128xf32> to vector<2x128xf32>
    %cst_159 = arith.constant dense<0.000000e+00> : vector<2x128xf32>
    %566 = tpu.matmul %500, %2, %cst_159 {dimension_numbers = #tpu.dot_dimension_numbers<[1], [0], [0], [1], [0, 0, 1, 1], [], []>} : vector<2x32xf32>, vector<32x128xf32>, vector<2x128xf32> -> vector<2x128xf32>
    %567 = arith.addf %565, %566 : vector<2x128xf32>
    %568 = vector.broadcast %34 : vector<1x128xf32> to vector<2x128xf32>
    %569 = arith.mulf %567, %568 : vector<2x128xf32>
    %570 = arith.negf %569 : vector<2x128xf32>
    %571 = math.exp %570 : vector<2x128xf32>
    %cst_160 = arith.constant 1.000000e+00 : f32
    %572 = vector.broadcast %cst_160 : f32 to vector<2x128xf32>
    %573 = arith.addf %572, %571 : vector<2x128xf32>
    %574 = arith.divf %572, %573 : vector<2x128xf32>
    %575 = vector.extract_strided_slice %574 {offsets = [0, 0], sizes = [2, 32], strides = [1, 1]} : vector<2x128xf32> to vector<2x32xf32>
    %576 = vector.extract_strided_slice %574 {offsets = [0, 32], sizes = [2, 32], strides = [1, 1]} : vector<2x128xf32> to vector<2x32xf32>
    %577 = vector.extract_strided_slice %574 {offsets = [0, 64], sizes = [2, 32], strides = [1, 1]} : vector<2x128xf32> to vector<2x32xf32>
    %cst_161 = arith.constant 2.000000e+00 : f32
    %578 = vector.broadcast %cst_161 : f32 to vector<2x32xf32>
    %579 = arith.mulf %578, %577 : vector<2x32xf32>
    %cst_162 = arith.constant 1.000000e+00 : f32
    %580 = vector.broadcast %cst_162 : f32 to vector<2x32xf32>
    %581 = arith.subf %579, %580 : vector<2x32xf32>
    %582 = vector.extract_strided_slice %574 {offsets = [0, 96], sizes = [2, 32], strides = [1, 1]} : vector<2x128xf32> to vector<2x32xf32>
    %583 = arith.mulf %576, %498 : vector<2x32xf32>
    %584 = arith.mulf %575, %581 : vector<2x32xf32>
    %585 = arith.addf %583, %584 : vector<2x32xf32>
    %586 = math.tanh %585 : vector<2x32xf32>
    %587 = arith.mulf %582, %586 : vector<2x32xf32>
    %cst_163 = arith.constant dense<0.000000e+00> : vector<2x128xf32>
    %588 = tpu.matmul %587, %552, %cst_163 {dimension_numbers = #tpu.dot_dimension_numbers<[1], [0], [0], [1], [0, 0, 1, 1], [], []>} : vector<2x32xf32>, vector<32x128xf32>, vector<2x128xf32> -> vector<2x128xf32>
    %589 = arith.mulf %587, %587 : vector<2x32xf32>
    %cst_164 = arith.constant dense<0.000000e+00> : vector<2xf32>
    %590 = vector.multi_reduction <add>, %589, %cst_164 [1] : vector<2x32xf32> to vector<2xf32>
    %591 = vector.shape_cast %590 : vector<2xf32> to vector<2x1xf32>
    %592 = arith.mulf %552, %552 : vector<32x128xf32>
    %cst_165 = arith.constant dense<0.000000e+00> : vector<1x128xf32>
    %593 = tpu.matmul %35, %592, %cst_165 {dimension_numbers = #tpu.dot_dimension_numbers<[1], [0], [0], [1], [0, 0, 1, 1], [], []>} : vector<1x32xf32>, vector<32x128xf32>, vector<1x128xf32> -> vector<1x128xf32>
    %594 = vector.broadcast %591 : vector<2x1xf32> to vector<2x128xf32>
    %595 = vector.broadcast %593 : vector<1x128xf32> to vector<2x128xf32>
    %596 = arith.mulf %594, %595 : vector<2x128xf32>
    %597 = math.sqrt %596 : vector<2x128xf32>
    %cst_166 = arith.constant 9.99999993E-9 : f32
    %598 = vector.broadcast %cst_166 : f32 to vector<2x128xf32>
    %599 = arith.addf %597, %598 : vector<2x128xf32>
    %600 = arith.divf %588, %599 : vector<2x128xf32>
    %601 = math.exp %600 : vector<2x128xf32>
    %602 = arith.mulf %601, %25 : vector<2x128xf32>
    %cst_167 = arith.constant dense<0.000000e+00> : vector<2xf32>
    %603 = vector.multi_reduction <add>, %602, %cst_167 [1] : vector<2x128xf32> to vector<2xf32>
    %604 = vector.shape_cast %603 : vector<2xf32> to vector<2x1xf32>
    %605 = vector.broadcast %604 : vector<2x1xf32> to vector<2x128xf32>
    %606 = arith.divf %602, %605 : vector<2x128xf32>
    %cst_168 = arith.constant dense<0.000000e+00> : vector<2x32xf32>
    %607 = tpu.matmul %606, %552, %cst_168 {dimension_numbers = #tpu.dot_dimension_numbers<[1], [1], [0], [0], [0, 0, 1, 0], [], []>} : vector<2x128xf32>, vector<32x128xf32>, vector<2x32xf32> -> vector<2x32xf32>
    %608 = arith.addf %521, %587 : vector<2x32xf32>
    %609 = arith.addf %522, %607 : vector<2x32xf32>
    %c100_i32_169 = arith.constant 100 : i32
    %610 = vector.broadcast %c100_i32_169 : i32 to vector<2x128xi32>
    %611 = arith.cmpi slt, %20, %610 : vector<2x128xi32>
    %cst_170 = arith.constant 1.000000e+30 : f32
    %612 = vector.broadcast %cst_170 : f32 to vector<2x128xf32>
    %613 = arith.select %611, %564, %612 : vector<2x128xi1>, vector<2x128xf32>
    %cst_171 = arith.constant dense<0x7F800000> : vector<2xf32>
    %614 = vector.multi_reduction <minimumf>, %613, %cst_171 [1] : vector<2x128xf32> to vector<2xf32>
    %615 = vector.shape_cast %614 : vector<2xf32> to vector<2x1xf32>
    %616 = vector.broadcast %615 : vector<2x1xf32> to vector<2x128xf32>
    %617 = arith.cmpf oeq, %613, %616 : vector<2x128xf32>
    %cst_172 = arith.constant 1.280000e+02 : f32
    %618 = vector.broadcast %cst_172 : f32 to vector<2x128xf32>
    %619 = arith.select %617, %21, %618 : vector<2x128xi1>, vector<2x128xf32>
    %cst_173 = arith.constant dense<0x7F800000> : vector<2xf32>
    %620 = vector.multi_reduction <minimumf>, %619, %cst_173 [1] : vector<2x128xf32> to vector<2xf32>
    %621 = vector.shape_cast %620 : vector<2xf32> to vector<2x1xf32>
    %622 = vector.broadcast %621 : vector<2x1xf32> to vector<2x128xf32>
    %623 = arith.cmpf oeq, %21, %622 : vector<2x128xf32>
    %624 = arith.extui %623 : vector<2x128xi1> to vector<2x128xi32>
    %625 = arith.sitofp %624 : vector<2x128xi32> to vector<2x128xf32>
    %cst_174 = arith.constant 0.401312351 : f32
    %626 = vector.broadcast %cst_174 : f32 to vector<2x128xf32>
    %627 = arith.mulf %626, %519 : vector<2x128xf32>
    %cst_175 = arith.constant 0.598687648 : f32
    %628 = vector.broadcast %cst_175 : f32 to vector<2x128xf32>
    %629 = arith.mulf %628, %625 : vector<2x128xf32>
    %630 = arith.addf %627, %629 : vector<2x128xf32>
    %cst_176 = arith.constant dense<0.000000e+00> : vector<32x128xf32>
    %631 = tpu.matmul %587, %630, %cst_176 {dimension_numbers = #tpu.dot_dimension_numbers<[0], [0], [1], [1], [0, 1, 1, 1], [], []>} : vector<2x32xf32>, vector<2x128xf32>, vector<32x128xf32> -> vector<32x128xf32>
    %632 = arith.addf %552, %631 : vector<32x128xf32>
    %633 = arith.mulf %632, %632 : vector<32x128xf32>
    %cst_177 = arith.constant dense<0.000000e+00> : vector<1x128xf32>
    %634 = tpu.matmul %35, %633, %cst_177 {dimension_numbers = #tpu.dot_dimension_numbers<[1], [0], [0], [1], [0, 0, 1, 1], [], []>} : vector<1x32xf32>, vector<32x128xf32>, vector<1x128xf32> -> vector<1x128xf32>
    %cst_178 = arith.constant 1.000000e-24 : f32
    %635 = vector.broadcast %cst_178 : f32 to vector<1x128xf32>
    %636 = arith.maximumf %634, %635 : vector<1x128xf32>
    %637 = math.rsqrt %636 : vector<1x128xf32>
    %638 = vector.broadcast %637 : vector<1x128xf32> to vector<32x128xf32>
    %639 = arith.mulf %632, %638 : vector<32x128xf32>
    %640 = vector.extract_strided_slice %11 {offsets = [14, 0], sizes = [2, 128], strides = [1, 1]} : vector<16x128xf32> to vector<2x128xf32>
    %cst_179 = arith.constant dense<0.000000e+00> : vector<2x128xf32>
    %641 = tpu.matmul %587, %2, %cst_179 {dimension_numbers = #tpu.dot_dimension_numbers<[1], [0], [0], [1], [0, 0, 1, 1], [], []>} : vector<2x32xf32>, vector<32x128xf32>, vector<2x128xf32> -> vector<2x128xf32>
    %642 = arith.addf %640, %641 : vector<2x128xf32>
    %643 = vector.broadcast %34 : vector<1x128xf32> to vector<2x128xf32>
    %644 = arith.mulf %642, %643 : vector<2x128xf32>
    %645 = arith.negf %644 : vector<2x128xf32>
    %646 = math.exp %645 : vector<2x128xf32>
    %cst_180 = arith.constant 1.000000e+00 : f32
    %647 = vector.broadcast %cst_180 : f32 to vector<2x128xf32>
    %648 = arith.addf %647, %646 : vector<2x128xf32>
    %649 = arith.divf %647, %648 : vector<2x128xf32>
    %650 = vector.extract_strided_slice %649 {offsets = [0, 0], sizes = [2, 32], strides = [1, 1]} : vector<2x128xf32> to vector<2x32xf32>
    %651 = vector.extract_strided_slice %649 {offsets = [0, 32], sizes = [2, 32], strides = [1, 1]} : vector<2x128xf32> to vector<2x32xf32>
    %652 = vector.extract_strided_slice %649 {offsets = [0, 64], sizes = [2, 32], strides = [1, 1]} : vector<2x128xf32> to vector<2x32xf32>
    %cst_181 = arith.constant 2.000000e+00 : f32
    %653 = vector.broadcast %cst_181 : f32 to vector<2x32xf32>
    %654 = arith.mulf %653, %652 : vector<2x32xf32>
    %cst_182 = arith.constant 1.000000e+00 : f32
    %655 = vector.broadcast %cst_182 : f32 to vector<2x32xf32>
    %656 = arith.subf %654, %655 : vector<2x32xf32>
    %657 = vector.extract_strided_slice %649 {offsets = [0, 96], sizes = [2, 32], strides = [1, 1]} : vector<2x128xf32> to vector<2x32xf32>
    %658 = arith.mulf %651, %585 : vector<2x32xf32>
    %659 = arith.mulf %650, %656 : vector<2x32xf32>
    %660 = arith.addf %658, %659 : vector<2x32xf32>
    %661 = math.tanh %660 : vector<2x32xf32>
    %662 = arith.mulf %657, %661 : vector<2x32xf32>
    %cst_183 = arith.constant dense<0.000000e+00> : vector<2x128xf32>
    %663 = tpu.matmul %662, %639, %cst_183 {dimension_numbers = #tpu.dot_dimension_numbers<[1], [0], [0], [1], [0, 0, 1, 1], [], []>} : vector<2x32xf32>, vector<32x128xf32>, vector<2x128xf32> -> vector<2x128xf32>
    %664 = arith.mulf %662, %662 : vector<2x32xf32>
    %cst_184 = arith.constant dense<0.000000e+00> : vector<2xf32>
    %665 = vector.multi_reduction <add>, %664, %cst_184 [1] : vector<2x32xf32> to vector<2xf32>
    %666 = vector.shape_cast %665 : vector<2xf32> to vector<2x1xf32>
    %667 = arith.mulf %639, %639 : vector<32x128xf32>
    %cst_185 = arith.constant dense<0.000000e+00> : vector<1x128xf32>
    %668 = tpu.matmul %35, %667, %cst_185 {dimension_numbers = #tpu.dot_dimension_numbers<[1], [0], [0], [1], [0, 0, 1, 1], [], []>} : vector<1x32xf32>, vector<32x128xf32>, vector<1x128xf32> -> vector<1x128xf32>
    %669 = vector.broadcast %666 : vector<2x1xf32> to vector<2x128xf32>
    %670 = vector.broadcast %668 : vector<1x128xf32> to vector<2x128xf32>
    %671 = arith.mulf %669, %670 : vector<2x128xf32>
    %672 = math.sqrt %671 : vector<2x128xf32>
    %cst_186 = arith.constant 9.99999993E-9 : f32
    %673 = vector.broadcast %cst_186 : f32 to vector<2x128xf32>
    %674 = arith.addf %672, %673 : vector<2x128xf32>
    %675 = arith.divf %663, %674 : vector<2x128xf32>
    %676 = math.exp %675 : vector<2x128xf32>
    %677 = arith.mulf %676, %25 : vector<2x128xf32>
    %cst_187 = arith.constant dense<0.000000e+00> : vector<2xf32>
    %678 = vector.multi_reduction <add>, %677, %cst_187 [1] : vector<2x128xf32> to vector<2xf32>
    %679 = vector.shape_cast %678 : vector<2xf32> to vector<2x1xf32>
    %680 = vector.broadcast %679 : vector<2x1xf32> to vector<2x128xf32>
    %681 = arith.divf %677, %680 : vector<2x128xf32>
    %cst_188 = arith.constant dense<0.000000e+00> : vector<2x32xf32>
    %682 = tpu.matmul %681, %639, %cst_188 {dimension_numbers = #tpu.dot_dimension_numbers<[1], [1], [0], [0], [0, 0, 1, 0], [], []>} : vector<2x128xf32>, vector<32x128xf32>, vector<2x32xf32> -> vector<2x32xf32>
    %683 = arith.addf %608, %662 : vector<2x32xf32>
    %684 = arith.addf %609, %682 : vector<2x32xf32>
    %cst_189 = arith.constant 1.250000e-01 : f32
    %685 = vector.broadcast %cst_189 : f32 to vector<2x32xf32>
    %686 = arith.mulf %683, %685 : vector<2x32xf32>
    %cst_190 = arith.constant 1.250000e-01 : f32
    %687 = vector.broadcast %cst_190 : f32 to vector<2x32xf32>
    %688 = arith.mulf %684, %687 : vector<2x32xf32>
    %c56 = arith.constant 56 : index
    %c0_191 = arith.constant 0 : index
    %689 = vector.load %arg2[%c56, %c0_191] : memref<272x128xf32, #tpu.memory_space<vmem>>, vector<32x128xf32>
    %c88 = arith.constant 88 : index
    %c0_192 = arith.constant 0 : index
    %690 = vector.load %arg2[%c88, %c0_192] : memref<272x128xf32, #tpu.memory_space<vmem>>, vector<32x128xf32>
    %c120 = arith.constant 120 : index
    %c0_193 = arith.constant 0 : index
    %691 = vector.load %arg2[%c120, %c0_193] : memref<272x128xf32, #tpu.memory_space<vmem>>, vector<1x128xf32>
    %cst_194 = arith.constant dense<0.000000e+00> : vector<2x128xf32>
    %692 = tpu.matmul %686, %689, %cst_194 {dimension_numbers = #tpu.dot_dimension_numbers<[1], [0], [0], [1], [0, 0, 1, 1], [], []>} : vector<2x32xf32>, vector<32x128xf32>, vector<2x128xf32> -> vector<2x128xf32>
    %cst_195 = arith.constant dense<0.000000e+00> : vector<2x128xf32>
    %693 = tpu.matmul %688, %690, %cst_195 {dimension_numbers = #tpu.dot_dimension_numbers<[1], [0], [0], [1], [0, 0, 1, 1], [], []>} : vector<2x32xf32>, vector<32x128xf32>, vector<2x128xf32> -> vector<2x128xf32>
    %694 = arith.addf %692, %693 : vector<2x128xf32>
    %695 = vector.broadcast %691 : vector<1x128xf32> to vector<2x128xf32>
    %696 = arith.addf %694, %695 : vector<2x128xf32>
    %cst_196 = arith.constant 0.000000e+00 : f32
    %697 = vector.broadcast %cst_196 : f32 to vector<2x128xf32>
    %698 = arith.maximumf %696, %697 : vector<2x128xf32>
    %c200 = arith.constant 200 : index
    %c0_197 = arith.constant 0 : index
    %699 = vector.load %arg2[%c200, %c0_197] : memref<272x128xf32, #tpu.memory_space<vmem>>, vector<32x128xf32>
    %c232 = arith.constant 232 : index
    %c0_198 = arith.constant 0 : index
    %700 = vector.load %arg2[%c232, %c0_198] : memref<272x128xf32, #tpu.memory_space<vmem>>, vector<29x128xf32>
    %c264 = arith.constant 264 : index
    %c0_199 = arith.constant 0 : index
    %701 = vector.load %arg2[%c264, %c0_199] : memref<272x128xf32, #tpu.memory_space<vmem>>, vector<1x128xf32>
    %702 = vector.extract_strided_slice %698 {offsets = [0, 0], sizes = [2, 32], strides = [1, 1]} : vector<2x128xf32> to vector<2x32xf32>
    %cst_200 = arith.constant dense<0.000000e+00> : vector<2x128xf32>
    %703 = tpu.matmul %702, %699, %cst_200 {dimension_numbers = #tpu.dot_dimension_numbers<[1], [0], [0], [1], [0, 0, 1, 1], [], []>} : vector<2x32xf32>, vector<32x128xf32>, vector<2x128xf32> -> vector<2x128xf32>
    %704 = vector.extract_strided_slice %19 {offsets = [0, 0], sizes = [2, 29], strides = [1, 1]} : vector<2x128xf32> to vector<2x29xf32>
    %cst_201 = arith.constant dense<0.000000e+00> : vector<2x128xf32>
    %705 = tpu.matmul %704, %700, %cst_201 {dimension_numbers = #tpu.dot_dimension_numbers<[1], [0], [0], [1], [0, 0, 1, 1], [], []>} : vector<2x29xf32>, vector<29x128xf32>, vector<2x128xf32> -> vector<2x128xf32>
    %706 = arith.addf %703, %705 : vector<2x128xf32>
    %707 = vector.broadcast %701 : vector<1x128xf32> to vector<2x128xf32>
    %708 = arith.addf %706, %707 : vector<2x128xf32>
    %709 = vector.extract_strided_slice %708 {offsets = [0, 0], sizes = [2, 2], strides = [1, 1]} : vector<2x128xf32> to vector<2x2xf32>
    %c0_202 = arith.constant 0 : index
    %c0_203 = arith.constant 0 : index
    %710 = vector.load %arg3[%c0_202, %c0_203] : memref<2x2xf32, #tpu.memory_space<vmem>>, vector<2x2xf32>
    tpu.vector_store %arg3[%c0_202, %c0_203], %709 {strides = array<i32>} : memref<2x2xf32, #tpu.memory_space<vmem>>, vector<2x2xf32>,
    return
  }
}

</mosaic_0001>

<bundles_post_ra>
// kernel: mannet_forward.1
= control target key start
LH: loop header
LB: loop body
LE: loop exit
PB: predicated region body
PF: predicated region fallthrough
CT: control target
= control target key end

     0   :  { %8 = vsyncpa [#allocation3], 0  ;;  %s7390_s0 = inlined_call_operand.vmem [shape: s32[16,1], index: 0, kind: input, shape index: {}]   ;;  %s7391_s1 = inlined_call_operand.vmem [shape: f32[2,59], index: 1, kind: input, shape index: {}]   ;;  %s7392_s2 = inlined_call_operand.hbm [shape: f32[272,128], index: 2, kind: input, shape index: {}]   ;;  %s7393_s3 = inlined_call_operand.hbm [shape: f32[2,2], index: 3, kind: output, shape index: {}]  }
   0x1   :  { %9 = vsyncpa [#allocation4], 0  ;;  %s6531_s12 = smov [#allocation2]   ;;  %s6483_s16 = scalar_lea.hbm %s7392_s2, 4352 }
   0x2   :  { %s19_s13 = sshll.u32 %s6531_s12, 4  ;;  %p6484_p0 = scmp.ne.s32.totalorder %s7392_s2, %s6483_s16  ;;  %s20_s13 = int_to_ptr.vmem [resolvable:$true] %s19_s13 }
   0x3   :  { %p6487_p1 = scmp.lt.u32.totalorder %s6483_s16, %s7392_s2 }
   0x5   :  { %p6489_p2 = pnand %p6487_p1, %p6484_p0 }
   0x7   :  { %6492 = shalt.err (!%p6489_p2)
}
   0x8   :  { %s6493_s21 = scalar_lea.vmem %s20_s13, 4352  ;;  %p6498_p4 = scmp.lt.s32.totalorder %s20_s13, %s20_s13 }
   0x9   :  { %p6494_p3 = scmp.ne.s32.totalorder %s20_s13, %s6493_s21  ;;  %p6499_p5 = scmp.lt.s32.totalorder %s6493_s21, %s6493_s21 }
   0xb   :  { %p6500_p6 = por %p6499_p5, %p6498_p4 }
   0xd   :  { %p6501_p7 = pnand %p6500_p6, %p6494_p3 }
   0xf   :  { %6504 = shalt.err (!%p6501_p7)
}
  0x10   :  { %s6532_s22 = smov 128   ;;  %s6533_s23 = smov 8  }
  0x11   :  { %25 = dma.hbm_to_vmem [thread:$0]  %s7392_s2, 4352, %s20_s13, [#allocation3], %s6532_s22, %s6532_s22, %s6533_s23  }
  0x12   :  { %6527 = dma.done.wait [#allocation3], 4352  }
  0x13   :  { %6528 = vsyncadd [#allocation3], 4294962944  ;;  %v6534_v0 = vmov 0   ;;  %v36_v1 = vld [vmem:[%s7390_s0] sm:$0xff]  ;;  %vm63_vm0 = vcmask 1044480   ;;  %vm6535_vm1 = vmmov 1   ;;  %v38_v9 = vlaneseq }
  0x14   :  { %6344 = vset.pattern.permute.xlu0 %v6534_v0  ;;  %v29_v2 = vld [vmem:[#allocation2] sm:$0xff]  ;;  %v30_v3 = vld [vmem:[#allocation2 + $0x8] sm:$0x1f]  ;;  %vm6580_vm2 = vmpackc.low %vm63_vm0, %vm6535_vm1  ;;  %v6536_v7 = vmov 0.0|0.0   ;;  %vm6537_vm3 = vmmov 0   ;;  %v6538_v8 = vmov 0.0  }
  0x15   :  { %41 = vperm.xlu0 %6344, %v36_v1   ;;  %v37_v5 = vld [vmem:[%s7390_s0 + $0x8] sm:$0xff]  ;;  %v6057_v6 = vpack.c.bf16 %v30_v3, %v29_v2  ;;  %6063 = vmatprep.subr.bf16.mxu1 %v6536_v7  ;;  %v6596_v10 = vand.u32 127, %v38_v9  ;;  %vm56_vm4 = vcmask 105472   ;;  %v32_v12 = vld [vmem:[#allocation2 + $0x18] sm:$0xff]  ;;  %v33_v13 = vld [vmem:[#allocation2 + $0x20] sm:$0xff]  ;;  %v6539_v26 = vmov 1.0  }
  0x16   :  { %5543 = vmatprep.mubr.msk.f32.mxu1 %vm6537_vm3, %v6538_v8  ;;  %v6600_v16 = vpack.c.bf16 %v33_v13, %v32_v12  ;;  %v34_v17 = vld [vmem:[#allocation2 + $0x28] sm:$0xff]  ;;  %v35_v18 = vld [vmem:[#allocation2 + $0x30] sm:$0xff]  ;;  %s6540_s0 = smov 64   ;;  %s6541_s29 = smov 32   ;;  %v6542_v40 = vmov 1e+30  }
  0x17   :  { %6059 = vmatprep.subr.msk.bf16.mxu0 %vm6580_vm2, %v6057_v6  ;;  %v6605_v20 = vpack.c.bf16 %v35_v18, %v34_v17  ;;  %v5163_v21 = vld [vmem:[#allocation2 + $0x10] ss:$0 sm:$0xff]  ;;  %vm239_vm7 = vcmp.ge.s32.totalorder %v6596_v10, 64  ;;  %vm240_vm8 = vcmp.lt.s32.totalorder %v6596_v10, 96  ;;  %vm236_vm10 = vcmp.lt.s32.totalorder %v6596_v10, 100  ;;  %v142_v51 = vld [vmem:[#allocation2 + $0x80] sm:$0xff] }
  0x18   :  { %6062 = vmatpush3.bf16.msk.msra.mxu0 %vm6580_vm2, %v6057_v6  ;;  %vm241_vm9 = vmand %vm239_vm7, %vm240_vm8  ;;  %v526_v41 = vsel %vm236_vm10, 0.0, %v6542_v40  ;;  %v6642_v49 = vcvt.s32.f32 %v6596_v10  ;;  %v143_v52 = vld [vmem:[#allocation2 + $0x88] sm:$0xff]  ;;  %v144_v53 = vld [vmem:[#allocation2 + $0x90] sm:$0xff]  ;;  %vm160_vm12 = vcmask 1042432   ;;  %vm156_vm14 = vcmask 482304  }
  0x19   :  { %44 = vperm.xlu0 %6344, %v37_v5   ;;  %6076 = vmatprep.subr.bf16.mxu0 %v6536_v7  ;;  %v6624_v27 = vsel %vm241_vm9, 2.0, %v6539_v26  ;;  %v6064_v55 = vpack.c.bf16 %v143_v52, %v142_v51  ;;  %v145_v56 = vld [vmem:[#allocation2 + $0x98] sm:$0xff]  ;;  %v146_v58 = vld [vmem:[#allocation2 + $0xa0] sm:$0xff]  ;;  %v147_v59 = vld [vmem:[#allocation2 + $0xa8] sm:$0xff]  ;;  %vm243_vm15 = vcmask 261120  }
  0x1a   :  { %v6067_v57 = vpack.c.bf16 %v145_v56, %v144_v53  ;;  %v6070_v60 = vpack.c.bf16 %v147_v59, %v146_v58  ;;  %v148_v61 = vld [vmem:[#allocation2 + $0xb0] sm:$0xff]  ;;  %v149_v62 = vld [vmem:[#allocation2 + $0xb8] sm:$0x7]  ;;  %vm6074_vm13 = vmpackc.low %vm160_vm12, %vm6535_vm1  ;;  %vm424_vm1 = vcmask 254976  }
  0x1b   :  { %6065 = vmatpush3.bf16.msra.mxu1 %v6064_v55  ;;  %v6073_v63 = vpack.c.bf16 %v149_v62, %v148_v61  ;;  %v151_v0 = vld [vmem:[%s7391_s1] sm:$0x3]  ;;  %s6543_s1 = smov [#allocation5]  }
  0x1c   :  { %6066 = vmatprep.subr.bf16.mxu1 %v6536_v7  ;;  %s5152_s5 = sshll.u32 %s6543_s1, 4  ;;  %s5153_s5 = int_to_ptr.vmem [resolvable:$true] %s5152_s5 }
  0x1d   :  { %s6505_s6 = scalar_lea.vmem %s5153_s5, 32  ;;  %p6510_p9 = scmp.lt.s32.totalorder %s5153_s5, %s5153_s5 }
  0x1e   :  { %p6506_p8 = scmp.ne.s32.totalorder %s5153_s5, %s6505_s6  ;;  %p6511_p10 = scmp.lt.s32.totalorder %s6505_s6, %s6505_s6 }
  0x1f   :  { %6068 = vmatpush3.bf16.msra.mxu1 %v6067_v57 }
  0x20   :  { %6069 = vmatprep.subr.bf16.mxu1 %v6536_v7  ;;  %p6512_p11 = por %p6511_p10, %p6510_p9 }
  0x22   :  { %p6513_p12 = pnand %p6512_p11, %p6506_p8 }
  0x23   :  { %6071 = vmatpush3.bf16.msra.mxu1 %v6070_v60 }
  0x24   :  { %6072 = vmatprep.subr.bf16.mxu1 %v6536_v7 }
  0x27   :  { %6075 = vmatpush3.bf16.msk.msra.mxu1 %vm6074_vm13, %v6073_v63 }
  0x2a   :  { %5544 = vmatmul.mubr.msk.f32.vlgmr.msra.gmra.mrb[0].mxu1 %vm156_vm14, %v151_v0 }
  0x94   :  { %v42_v11 = vpop.permute.xlu0 %41 }
  0x95   :  { %vm46_vm5 = vcmp.eq.s32.totalorder %v42_v11, %v6596_v10 }
  0x96   :  { %v5161_v14 = vsel %vm46_vm5, 1.0, %v6538_v8  ;;  %vm571_vm5 = vcmask 15360  }
  0x97   :  { %5524 = vmatprep.mubr.msk.f32.mxu0 %vm56_vm4, %v5161_v14 }
  0x98   :  { %v45_v15 = vpop.permute.xlu0 %44 }
  0x99   :  { %vm47_vm6 = vcmp.eq.s32.totalorder %v45_v15, %v6596_v10 }
  0x9a   :  { %v5162_v19 = vsel %vm47_vm6, 1.0, %v6538_v8 }
  0x9b   :  { %5525 = vmatmul.mubr.msk.f32.vlgmr.msra.gmra.mrb[0].mxu0 %vm56_vm4, %v5162_v19  ;;  %vm519_vm4 = vcmask 1041408   ;;  %v502_v19 = vshrl.u32 %v38_v9, 7 }
  0x9c   :  { %6078 = vmatpush3.bf16.msra.mxu0 %v6600_v16  ;;  %5554 = vmatprep.mubr.msk.f32.mxu0 %vm6537_vm3, %v6538_v8 }
  0x9d   :  { %6079 = vmatprep.subr.bf16.mxu0 %v6536_v7 }
  0xa0   :  { %6081 = vmatpush3.bf16.msra.mxu0 %v6605_v20 }
  0xa1   :  { %5557 = vmatprep.subr.mxu0 %v6538_v8 }
  0xa3   :  { %5555 = vmatmul.mubr.f32.vlgmr.msra.gmra.mrb[2].mxu0 %v6538_v8 }
  0xa4   :  { %5558 = vmatpush3.msra.mxu0 %v6538_v8  ;;  %5559 = vmatprep.mubr.msk.f32.mxu0 %vm6537_vm3, %v6538_v8 }
  0xa5   :  { %5562 = vmatprep.subr.mxu0 %v6538_v8 }
  0xfd   :  { %v6687_v17 = vpop.f32.mrb[0].mxu1 }
  0xfe   :  { %v5545_v18 = vpop.f32.mrb[1].mxu1 }
 0x16e   :  { %v5526_v22 = vpop.f32.mrb[0].mxu0 }
 0x16f   :  { %v6617_v23 = vadd.f32 %v5526_v22, %v5163_v21  ;;  %v133_v24 = vpop.f32.mrb[1].mxu0  ;;  %v6690_v22 = vsub.s32 0, %v502_v19 }
 0x170   :  { %v6621_v25 = vadd.f32 %v5163_v21, %v133_v24 }
 0x176   :  { %v313_v28 = vpop.f32.mrb[2].mxu0 }
 0x177   :  { %v317_v29 = vadd.f32 %v313_v28, %v6621_v25  ;;  %v5556_v30 = vpop.f32.mrb[3].mxu0 }
 0x179   :  { %v318_v31 = vmul.f32 %v317_v29, %v6624_v27 }
 0x17b   :  { %v5171_v32 = vmul.f32 -1.442695, %v318_v31 }
 0x17d   :  { %6345 = vpow2.f32 %v5171_v32 }
 0x187   :  { %v6346_v33 = vpop.eup %6345 }
 0x188   :  { %v322_v34 = vadd.f32 1.0, %v6346_v33 }
 0x18a   :  { %6347 = vrcp.f32 %v322_v34 }
 0x194   :  { %v6348_v35 = vpop.eup %6347 }
 0x195   :  { %v325_v36 = vmul.f32 2.0, %v6348_v35  ;;  %v327_v42 = vmul.f32 0.0, %v6348_v35 }
 0x197   :  { %v5172_v37 = vadd.f32 -1.0, %v325_v36 }
 0x199   :  { %329 = vrot.lane.b32.xlu1 %v5172_v37, %s6540_s0 }
 0x20b   :  { %v330_v38 = vpop.permute.xlu1 %329 }
 0x20c   :  { %v332_v39 = vmul.f32 %v6348_v35, %v330_v38 }
 0x20e   :  { %334 = vrot.lane.b32.xlu1 %v332_v39, %s6541_s29 }
 0x232   :  { %527 = vmin.xlane.f32.xlu1 %v526_v41 }
 0x280   :  { %v335_v43 = vpop.permute.xlu1 %334 }
 0x281   :  { %v6633_v44 = vadd.f32 %v335_v43, %v327_v42 }
 0x283   :  { %6349 = vtanh.f32 %v6633_v44 }
 0x28d   :  { %v6350_v45 = vpop.eup %6349 }
 0x28e   :  { %340 = vrot.lane.b32.xlu0 %v6350_v45, %s6540_s0 }
 0x2bf   :  { %v528_v48 = vpop.xlane.xlu1 %527 }
 0x2c0   :  { %vm529_vm11 = vcmp.eq.f32.partialorder %v526_v41, %v528_v48  ;;  %v6696_v41 = vsel %vm236_vm10, 1.0, %v6538_v8 }
 0x2c1   :  { %v530_v50 = vsel %vm529_vm11, %v6642_v49, 128.0  ;;  %vm949_vm11 = vcmask 257026  }
 0x300   :  { %v341_v46 = vpop.permute.xlu0 %340 }
 0x301   :  { %v6637_v47 = vmul.f32 %v6348_v35, %v341_v46 }
 0x303   :  { %345 = vrot.lane.b32.xlu0 %v6637_v47, %s6541_s29  ;;  %v419_v54 = vmul.f32 %v6637_v47, %v6637_v47 }
 0x322   :  { %531 = vmin.xlane.f32.xlu0 %v530_v50 }
 0x338   :  { %421 = vrot.lane.b32.xlu0 %v419_v54, %s6541_s29 }
 0x375   :  { %v346_v1 = vpop.permute.xlu0 %345 }
 0x376   :  { %5560 = vmatmul.mubr.msk.f32.vlgmr.msra.gmra.mrb[4].mxu0 %vm243_vm15, %v346_v1  ;;  %539 = vxpose.xlu1.b32.start.end [1/1] (short) (narrow) %v346_v1, 32 }
 0x377   :  { %5563 = vmatpush3.msra.mxu0 %v6538_v8  ;;  %5564 = vmatprep.mubr.msk.f32.mxu0 %vm6537_vm3, %v6538_v8 }
 0x378   :  { %6082 = vmatprep.subr.bf16.mxu0 %v6536_v7 }
 0x37a   :  { %5565 = vmatmul.mubr.msk.f32.vlgmr.msra.gmra.mrb[6].mxu0 %vm243_vm15, %v6539_v26 }
 0x37b   :  { %5583 = vmatprep.mubr.msk.f32.mxu0 %vm6537_vm3, %v6538_v8 }
 0x3af   :  { %v532_v2 = vpop.xlane.xlu0 %531 }
 0x3b0   :  { %vm533_vm0 = vcmp.eq.f32.partialorder %v6642_v49, %v532_v2 }
 0x3b1   :  { %v5175_v3 = vsel %vm533_vm0, 1.0, %v6538_v8 }
 0x3b2   :  { %v6666_v5 = vmul.f32 0.59868765, %v5175_v3 }
 0x3b3   :  { %v422_v6 = vpop.permute.xlu0 %421 }
 0x3b4   :  { %v425_v11 = vsel %vm424_vm1, %v422_v6, 0.0  ;;  %5567 = vmatprep.subr.msk.mxu1 %vm519_vm4, %v6666_v5 }
 0x3b5   :  { %426 = vadd.xlane.f32.xlu0 %v425_v11  ;;  %5568 = vmatpush3.msk.msra.mxu1 %vm519_vm4, %v6666_v5 }
 0x3b6   :  { %6088 = vmatprep.subr.bf16.mxu1 %v6536_v7 }
 0x3f6   :  { %v555_v12 = vpop.trf.xlu1 }
 0x3f7   :  { %5569 = vmatprep.mubr.msk.f32.mxu1 %vm571_vm5, %v555_v12 }
 0x3fa   :  { %v556_v13 = vpop.trf.xlu1 }
 0x3fb   :  { %5570 = vmatmul.mubr.msk.f32.vlgmr.msra.gmra.mrb[2].mxu1 %vm571_vm5, %v556_v13 }
 0x3fc   :  { %6090 = vmatpush3.bf16.msra.mxu1 %v6600_v16 }
 0x3fd   :  { %6091 = vmatprep.subr.bf16.mxu1 %v6536_v7 }
 0x3fe   :  { %v557_v14 = vpop.trf.xlu1 }
 0x3ff   :  { %5572 = vmatprep.mubr.msk.f32.mxu1 %vm571_vm5, %v557_v14 }
 0x400   :  { %6093 = vmatpush3.bf16.msra.mxu1 %v6605_v20 }
 0x401   :  { %6100 = vmatprep.subr.bf16.mxu1 %v6536_v7 }
 0x402   :  { %v558_v15 = vpop.trf.xlu1 }
 0x403   :  { %5573 = vmatmul.mubr.msk.f32.gmra.mrb[4].mxu1 %vm571_vm5, %v558_v15 }
 0x404   :  { %5594 = vmatprep.mubr.msk.f32.mxu1 %vm6537_vm3, %v6538_v8 }
 0x407   :  { %5595 = vmatmul.mubr.msk.f32.vlgmr.msra.gmra.mrb[6].mxu1 %vm243_vm15, %v346_v1 }
 0x408   :  { %5616 = vmatprep.mubr.msk.f32.mxu1 %vm6537_vm3, %v6538_v8 }
 0x442   :  { %v427_v31 = vpop.xlane.xlu0 %426 }
 0x449   :  { %v415_v21 = vpop.f32.mrb[4].mxu0 }
 0x44a   :  { %v5561_v24 = vpop.f32.mrb[5].mxu0 }
 0x44d   :  { %v497_v28 = vpop.f32.mrb[6].mxu0 }
 0x44e   :  { %v504_v29 = vrot.slane %v497_v28, %v6690_v22  ;;  %v5566_v30 = vpop.f32.mrb[7].mxu0 }
 0x450   :  { %v505_v32 = vmul.f32 %v504_v29, %v427_v31 }
 0x452   :  { %6351 = vrsqrt.f32 %v505_v32  ;;  %vm508_vm6 = vcmp.eq.f32.partialorder %v505_v32, inf  ;;  %v511_v35 = vand.u32 2147483648, %v505_v32  ;;  %vm510_vm7 = vcmp.eq.f32.partialorder %v505_v32, 0.0 }
 0x45c   :  { %v6352_v33 = vpop.eup %6351 }
 0x45d   :  { %v507_v34 = vmul.f32 %v6352_v33, %v505_v32 }
 0x45f   :  { %v509_v36 = vsel %vm508_vm6, %v505_v32, %v507_v34  ;;  %vm1625_vm6 = vcmask 259076  }
 0x460   :  { %v512_v37 = vsel %vm510_vm7, %v511_v35, %v509_v36 }
 0x461   :  { %v513_v38 = vadd.f32 1e-08, %v512_v37 }
 0x463   :  { %6353 = vrcp.f32 %v513_v38 }
 0x46d   :  { %v6354_v9 = vpop.eup %6353 }
 0x46e   :  { %v515_v39 = vmul.f32 %v6354_v9, %v415_v21 }
 0x470   :  { %v516_v40 = vmul.f32 1.442695, %v515_v39 }
 0x472   :  { %6355 = vpow2.f32 %v516_v40 }
 0x47c   :  { %v6356_v42 = vpop.eup %6355 }
 0x47d   :  { %v518_v43 = vmul.f32 %v6356_v42, %v6696_v41 }
 0x47f   :  { %v520_v45 = vsel %vm519_vm4, %v518_v43, 0.0 }
 0x480   :  { %521 = vadd.xlane.f32.xlu1 %v520_v45 }
 0x4ce   :  { %v5571_v46 = vpop.f32.mrb[2].mxu1 }
 0x4cf   :  { %v673_v48 = vmul.f32 %v5571_v46, %v5571_v46  ;;  %v653_v50 = vpop.f32.mrb[3].mxu1 }
 0x4d0   :  { %v672_v51 = vmul.f32 %v653_v50, %v653_v50 }
 0x4d2   :  { %v6083_v52 = vpack.c.bf16 %v673_v48, %v672_v51 }
 0x4d4   :  { %6084 = vmatpush3.bf16.msra.mxu0 %v6083_v52  ;;  %v849_v52 = vrot.slane %v6633_v44, 6 }
 0x4d5   :  { %6085 = vmatprep.subr.bf16.mxu0 %v6536_v7 }
 0x4d6   :  { %v5574_v53 = vpop.f32.mrb[4].mxu1 }
 0x4d7   :  { %v675_v54 = vmul.f32 %v5574_v53, %v5574_v53  ;;  %v663_v55 = vpop.f32.mrb[5].mxu1 }
 0x4d8   :  { %v674_v56 = vmul.f32 %v663_v55, %v663_v55 }
 0x4da   :  { %v6086_v57 = vpack.c.bf16 %v675_v54, %v674_v56  ;;  %v831_v58 = vpop.f32.mrb[6].mxu1 }
 0x4db   :  { %v836_v59 = vrot.slane %v831_v58, 6  ;;  %v5596_v60 = vpop.f32.mrb[7].mxu1 }
 0x4dc   :  { %6087 = vmatpush3.bf16.msra.mxu0 %v6086_v57 }
 0x4dd   :  { %v838_v61 = vadd.f32 %v836_v59, %v6621_v25  ;;  %6094 = vmatprep.subr.bf16.mxu0 %v6536_v7 }
 0x4df   :  { %v839_v62 = vmul.f32 %v838_v61, %v6624_v27  ;;  %5584 = vmatmul.mubr.msk.f32.vlgmr.msra.gmra.mrb[8].mxu0 %vm243_vm15, %v6539_v26 }
 0x4e0   :  { %5605 = vmatprep.mubr.msk.f32.mxu0 %vm6537_vm3, %v6538_v8 }
 0x4e1   :  { %v5183_v63 = vmul.f32 -1.442695, %v839_v62 }
 0x4e3   :  { %6357 = vpow2.f32 %v5183_v63 }
 0x4ed   :  { %v6358_v0 = vpop.eup %6357 }
 0x4ee   :  { %v843_v1 = vadd.f32 1.0, %v6358_v0 }
 0x4f0   :  { %6359 = vrcp.f32 %v843_v1 }
 0x4fa   :  { %v6360_v2 = vpop.eup %6359 }
 0x4fb   :  { %v846_v3 = vmul.f32 2.0, %v6360_v2 }
 0x4fd   :  { %v5184_v6 = vadd.f32 -1.0, %v846_v3 }
 0x4ff   :  { %853 = vrot.lane.b32.xlu0 %v5184_v6, %s6540_s0 }
 0x50d   :  { %v522_v11 = vpop.xlane.xlu1 %521 }
 0x50e   :  { %6361 = vrcp.f32 %v522_v11 }
 0x518   :  { %v6362_v12 = vpop.eup %6361 }
 0x519   :  { %v6709_v13 = vmul.f32 %v6362_v12, %v518_v43 }
 0x51b   :  { %v757_v14 = vadd.f32 %v6666_v5, %v6709_v13  ;;  %v1207_v6 = vmul.f32 0.40131235, %v6709_v13 }
 0x51d   :  { %v758_v15 = vmul.f32 %v757_v14, %v757_v14 }
 0x51f   :  { %v759_v18 = vsel %vm519_vm4, %v758_v15, 0.0 }
 0x520   :  { %760 = vadd.xlane.f32.xlu0 %v759_v18 }
 0x571   :  { %v854_v19 = vpop.permute.xlu0 %853 }
 0x572   :  { %v856_v21 = vmul.f32 %v6360_v2, %v854_v19 }
 0x574   :  { %858 = vrot.lane.b32.xlu1 %v856_v21, %s6541_s29 }
 0x5ad   :  { %v761_v24 = vpop.xlane.xlu0 %760 }
 0x5ae   :  { %v762_v28 = vmax.f32 %v761_v24, 1e-24 }
 0x5b0   :  { %6363 = vrsqrt.f32 %v762_v28 }
 0x5b2   :  { %v742_v29 = vpop.f32.mrb[8].mxu0 }
 0x5b3   :  { %v746_v30 = vmax.f32 %v742_v29, 1e-24  ;;  %v5585_v31 = vpop.f32.mrb[9].mxu0 }
 0x5b5   :  { %6365 = vrsqrt.f32 %v746_v30 }
 0x5ba   :  { %v6364_v32 = vpop.eup %6363 }
 0x5bb   :  { %v6715_v33 = vmul.f32 %v6364_v32, %v757_v14 }
 0x5bd   :  { %v1195_v5 = vsel %vm236_vm10, %v6715_v33, 1e+30 }
 0x5be   :  { %v1196_v34 = vsel %vm519_vm4, %v1195_v5, inf }
 0x5bf   :  { %v6366_v35 = vpop.eup %6365  ;;  %1197 = vmin.xlane.f32.xlu1 %v1196_v34 }
 0x5c0   :  { %v751_v36 = vrot.slane %v6366_v35, %v6690_v22 }
 0x5c2   :  { %v6722_v37 = vmul.f32 %v751_v36, %v653_v50  ;;  %v6724_v38 = vmul.f32 %v5571_v46, %v751_v36  ;;  %v6726_v9 = vmul.f32 %v751_v36, %v663_v55  ;;  %v6728_v39 = vmul.f32 %v5574_v53, %v751_v36 }
 0x5c3   :  { %v851_v53 = vmul.f32 %v6360_v2, %v849_v52 }
 0x5c4   :  { %v6095_v40 = vpack.c.bf16 %v6724_v38, %v6722_v37  ;;  %v953_v42 = vmul.f32 %v6722_v37, %v6722_v37  ;;  %v954_v43 = vmul.f32 %v6724_v38, %v6724_v38  ;;  %v955_v48 = vmul.f32 %v6726_v9, %v6726_v9 }
 0x5c5   :  { %v956_v46 = vmul.f32 %v6728_v39, %v6728_v39  ;;  %v6098_v50 = vpack.c.bf16 %v6728_v39, %v6726_v9 }
 0x5c6   :  { %6096 = vmatpush3.bf16.msra.mxu0 %v6095_v40  ;;  %v6101_v45 = vpack.c.bf16 %v954_v43, %v953_v42 }
 0x5c7   :  { %6097 = vmatprep.subr.bf16.mxu0 %v6536_v7  ;;  %v6104_v51 = vpack.c.bf16 %v956_v46, %v955_v48 }
 0x5c8   :  { %6102 = vmatpush3.bf16.msra.mxu1 %v6101_v45 }
 0x5c9   :  { %6103 = vmatprep.subr.bf16.mxu1 %v6536_v7 }
 0x5ca   :  { %6099 = vmatpush3.bf16.msra.mxu0 %v6098_v50 }
 0x5cb   :  { %6106 = vmatprep.subr.bf16.mxu0 %v6536_v7 }
 0x5cc   :  { %6105 = vmatpush3.bf16.msra.mxu1 %v6104_v51 }
 0x5cf   :  { %5617 = vmatmul.mubr.msk.f32.vlgmr.msra.gmra.mrb[8].mxu1 %vm243_vm15, %v6539_v26 }
 0x5e6   :  { %v859_v54 = vpop.permute.xlu1 %858 }
 0x5e7   :  { %v6748_v55 = vadd.f32 %v859_v54, %v851_v53 }
 0x5e9   :  { %6367 = vtanh.f32 %v6748_v55 }
 0x5f3   :  { %v6368_v56 = vpop.eup %6367 }
 0x5f4   :  { %864 = vrot.lane.b32.xlu0 %v6368_v56, %s6540_s0 }
 0x64c   :  { %v1198_v60 = vpop.xlane.xlu1 %1197 }
 0x64d   :  { %vm1199_vm8 = vcmp.eq.f32.partialorder %v1195_v5, %v1198_v60 }
 0x64e   :  { %v1200_v44 = vsel %vm1199_vm8, %v6642_v49, 128.0 }
 0x64f   :  { %v1201_v61 = vsel %vm519_vm4, %v1200_v44, inf }
 0x666   :  { %v865_v57 = vpop.permute.xlu0 %864 }
 0x667   :  { %v6752_v58 = vmul.f32 %v6360_v2, %v865_v57 }
 0x669   :  { %v869_v59 = vrot.slane %v6752_v58, 2  ;;  %v944_v62 = vmul.f32 %v6752_v58, %v6752_v58 }
 0x66b   :  { %870 = vrot.lane.b32.xlu0 %v869_v59, %s6541_s29 }
 0x68a   :  { %1202 = vmin.xlane.f32.xlu0 %v1201_v61 }
 0x6a0   :  { %946 = vrot.lane.b32.xlu0 %v944_v62, %s6541_s29 }
 0x6a2   :  { %v1023_v0 = vpop.f32.mrb[8].mxu1 }
 0x6a3   :  { %v5618_v1 = vpop.f32.mrb[9].mxu1  ;;  %v1030_v28 = vrot.slane %v1023_v0, %v6690_v22 }
 0x6dd   :  { %v6763_v63 = vpop.permute.xlu0 %870 }
 0x6de   :  { %5606 = vmatmul.mubr.msk.f32.vlgmr.msra.gmra.mrb[10].mxu0 %vm243_vm15, %v6763_v63  ;;  %1211 = vxpose.xlu1.b32.start.end [1/1] (short) (narrow) %v6763_v63, 32 }
 0x6df   :  { %6108 = vmatpush3.bf16.xpose.msra.mxu0 %v6095_v40  ;;  %5627 = vmatprep.mubr.msk.f32.mxu0 %vm6537_vm3, %v6538_v8 }
 0x6e0   :  { %6109 = vmatprep.subr.bf16.mxu0 %v6536_v7 }
 0x6e7   :  { %6111 = vmatpush3.bf16.xpose.msra.mxu0 %v6098_v50 }
 0x6e8   :  { %5630 = vmatprep.subr.mxu0 %v6538_v8 }
 0x717   :  { %v1203_v2 = vpop.xlane.xlu0 %1202 }
 0x718   :  { %vm1204_vm9 = vcmp.eq.f32.partialorder %v6642_v49, %v1203_v2 }
 0x719   :  { %v5187_v3 = vsel %vm1204_vm9, 1.0, %v6538_v8  ;;  %vm2232_vm9 = vcmask 261126  }
 0x71a   :  { %v1208_v11 = vmul.f32 0.59868765, %v5187_v3 }
 0x71b   :  { %v947_v12 = vpop.permute.xlu0 %946 }
 0x71c   :  { %v6775_v14 = vadd.f32 %v1208_v11, %v1207_v6  ;;  %v950_v15 = vsel %vm949_vm11, %v947_v12, 0.0 }
 0x71d   :  { %951 = vadd.xlane.f32.xlu0 %v950_v15 }
 0x71e   :  { %5635 = vmatprep.subr.msk.mxu1 %vm519_vm4, %v6775_v14 }
 0x71f   :  { %5636 = vmatpush3.msk.msra.mxu1 %vm519_vm4, %v6775_v14 }
 0x720   :  { %6112 = vmatprep.subr.bf16.mxu1 %v6536_v7 }
 0x75e   :  { %v1227_v18 = vpop.trf.xlu1 }
 0x75f   :  { %5637 = vmatprep.mubr.msk.f32.mxu1 %vm571_vm5, %v1227_v18 }
 0x762   :  { %v1228_v19 = vpop.trf.xlu1 }
 0x763   :  { %5638 = vmatmul.mubr.msk.f32.vlgmr.msra.gmra.mrb[10].mxu1 %vm571_vm5, %v1228_v19 }
 0x766   :  { %v1229_v21 = vpop.trf.xlu1 }
 0x767   :  { %5640 = vmatprep.mubr.msk.f32.mxu1 %vm571_vm5, %v1229_v21 }
 0x76a   :  { %v1230_v24 = vpop.trf.xlu1 }
 0x76b   :  { %5641 = vmatmul.mubr.msk.f32.gmra.mrb[12].mxu1 %vm571_vm5, %v1230_v24 }
 0x76c   :  { %5651 = vmatprep.mubr.msk.f32.mxu1 %vm6537_vm3, %v6538_v8 }
 0x7aa   :  { %v952_v29 = vpop.xlane.xlu0 %951 }
 0x7ab   :  { %v1031_v30 = vmul.f32 %v1030_v28, %v952_v29 }
 0x7ad   :  { %6369 = vrsqrt.f32 %v1031_v30  ;;  %vm1034_vm12 = vcmp.eq.f32.partialorder %v1031_v30, inf  ;;  %v1037_v35 = vand.u32 2147483648, %v1031_v30  ;;  %vm1036_vm13 = vcmp.eq.f32.partialorder %v1031_v30, 0.0 }
 0x7b1   :  { %v940_v31 = vpop.f32.mrb[10].mxu0 }
 0x7b2   :  { %v5607_v32 = vpop.f32.mrb[11].mxu0 }
 0x7b7   :  { %v6370_v5 = vpop.eup %6369 }
 0x7b8   :  { %v1033_v34 = vmul.f32 %v6370_v5, %v1031_v30 }
 0x7ba   :  { %v1035_v36 = vsel %vm1034_vm12, %v1031_v30, %v1033_v34 }
 0x7bb   :  { %v1038_v40 = vsel %vm1036_vm13, %v1037_v35, %v1035_v36 }
 0x7bc   :  { %v1039_v42 = vadd.f32 1e-08, %v1038_v40 }
 0x7be   :  { %v1041_v43 = vrot.slane %v1039_v42, 2 }
 0x7c0   :  { %6371 = vrcp.f32 %v1041_v43 }
 0x7ca   :  { %v6372_v45 = vpop.eup %6371 }
 0x7cb   :  { %v1044_v48 = vmul.f32 %v6372_v45, %v940_v31 }
 0x7cd   :  { %v1045_v46 = vmul.f32 1.442695, %v1044_v48 }
 0x7cf   :  { %6373 = vpow2.f32 %v1045_v46 }
 0x7d9   :  { %v6374_v50 = vpop.eup %6373 }
 0x7da   :  { %v1047_v51 = vmul.f32 %v6374_v50, %v6696_v41 }
 0x7dc   :  { %v1048_v52 = vsel %vm519_vm4, %v1047_v51, 0.0 }
 0x7dd   :  { %1049 = vadd.xlane.f32.xlu1 %v1048_v52 }
 0x836   :  { %v5639_v53 = vpop.f32.mrb[10].mxu1 }
 0x837   :  { %v1344_v54 = vadd.f32 %v5639_v53, %v6724_v38  ;;  %v1324_v56 = vpop.f32.mrb[11].mxu1 }
 0x838   :  { %v1343_v57 = vadd.f32 %v1324_v56, %v6722_v37 }
 0x839   :  { %v1348_v60 = vmul.f32 %v1344_v54, %v1344_v54 }
 0x83a   :  { %v1347_v44 = vmul.f32 %v1343_v57, %v1343_v57 }
 0x83c   :  { %v6113_v61 = vpack.c.bf16 %v1348_v60, %v1347_v44 }
 0x83e   :  { %v5642_v62 = vpop.f32.mrb[12].mxu1  ;;  %6114 = vmatpush3.bf16.msra.mxu1 %v6113_v61 }
 0x83f   :  { %v1346_v0 = vadd.f32 %v5642_v62, %v6728_v39  ;;  %v1334_v1 = vpop.f32.mrb[13].mxu1  ;;  %6115 = vmatprep.subr.bf16.mxu1 %v6536_v7 }
 0x840   :  { %v1345_v2 = vadd.f32 %v1334_v1, %v6726_v9  ;;  %v1431_v9 = vmul.f32 0.3, %v6715_v33 }
 0x841   :  { %v1350_v3 = vmul.f32 %v1346_v0, %v1346_v0 }
 0x842   :  { %v1349_v6 = vmul.f32 %v1345_v2, %v1345_v2 }
 0x844   :  { %v6116_v11 = vpack.c.bf16 %v1350_v3, %v1349_v6  ;;  %v1525_v6 = vrot.slane %v6748_v55, 6 }
 0x846   :  { %6117 = vmatpush3.bf16.msra.mxu1 %v6116_v11 }
 0x847   :  { %6118 = vmatprep.subr.bf16.mxu1 %v6536_v7 }
 0x849   :  { %5652 = vmatmul.mubr.msk.f32.vlgmr.msra.gmra.mrb[14].mxu1 %vm243_vm15, %v6539_v26 }
 0x84a   :  { %6120 = vmatpush3.bf16.msra.mxu1 %v6600_v16  ;;  %5662 = vmatprep.mubr.msk.f32.mxu1 %vm6537_vm3, %v6538_v8 }
 0x84b   :  { %6121 = vmatprep.subr.bf16.mxu1 %v6536_v7 }
 0x84e   :  { %6123 = vmatpush3.bf16.msra.mxu1 %v6605_v20 }
 0x84f   :  { %6130 = vmatprep.subr.bf16.mxu1 %v6536_v7 }
 0x851   :  { %5663 = vmatmul.mubr.msk.f32.vlgmr.msra.gmra.mrb[16].mxu1 %vm243_vm15, %v6763_v63 }
 0x852   :  { %5684 = vmatprep.mubr.msk.f32.mxu1 %vm6537_vm3, %v6538_v8 }
 0x86a   :  { %v1050_v37 = vpop.xlane.xlu1 %1049 }
 0x86b   :  { %6375 = vrcp.f32 %v1050_v37 }
 0x875   :  { %v6376_v38 = vpop.eup %6375 }
 0x876   :  { %v6811_v39 = vmul.f32 %v6376_v38, %v1047_v51 }
 0x878   :  { %5628 = vmatmul.mubr.f32.vlgmr.msra.gmra.mrb[12].mxu0 %v6811_v39  ;;  %v1432_v12 = vadd.f32 %v1431_v9, %v6811_v39 }
 0x879   :  { %5631 = vmatpush3.xpose.msra.mxu0 %v6538_v8  ;;  %5632 = vmatprep.mubr.msk.f32.mxu0 %vm6537_vm3, %v6538_v8 }
 0x87a   :  { %6124 = vmatprep.subr.bf16.mxu0 %v6536_v7  ;;  %v1433_v56 = vadd.f32 %v1432_v12, %v6775_v14 }
 0x880   :  { %5633 = vmatmul.mubr.f32.vlgmr.msra.gmra.mrb[12].mxu0 %v6709_v13 }
 0x881   :  { %5673 = vmatprep.mubr.msk.f32.mxu0 %vm6537_vm3, %v6538_v8 }
 0x91c   :  { %v1417_v63 = vpop.f32.mrb[14].mxu1 }
 0x91d   :  { %v1421_v33 = vmax.f32 %v1417_v63, 1e-24  ;;  %v5653_v15 = vpop.f32.mrb[15].mxu1 }
 0x91f   :  { %6377 = vrsqrt.f32 %v1421_v33  ;;  %v1124_v33 = vadd.f32 %v869_v59, %v6637_v47  ;;  %v1814_v59 = vmul.f32 0.40131235, %v6811_v39 }
 0x924   :  { %v1507_v18 = vpop.f32.mrb[16].mxu1 }
 0x925   :  { %v1512_v19 = vrot.slane %v1507_v18, 4  ;;  %v5664_v21 = vpop.f32.mrb[17].mxu1 }
 0x927   :  { %v1514_v24 = vadd.f32 %v1512_v19, %v6621_v25 }
 0x929   :  { %v6378_v28 = vpop.eup %6377  ;;  %v1515_v29 = vmul.f32 %v1514_v24, %v6624_v27 }
 0x92a   :  { %v1426_v30 = vrot.slane %v6378_v28, %v6690_v22 }
 0x92b   :  { %v5195_v31 = vmul.f32 -1.442695, %v1515_v29 }
 0x92c   :  { %v6825_v32 = vmul.f32 %v1426_v30, %v1343_v57  ;;  %v6827_v13 = vmul.f32 %v1426_v30, %v1344_v54  ;;  %v6829_v5 = vmul.f32 %v1426_v30, %v1345_v2  ;;  %v6831_v34 = vmul.f32 %v1426_v30, %v1346_v0 }
 0x92d   :  { %6379 = vpow2.f32 %v5195_v31  ;;  %v1434_v57 = vmul.f32 %v1433_v56, %v1433_v56 }
 0x92e   :  { %v6125_v35 = vpack.c.bf16 %v6827_v13, %v6825_v32  ;;  %v1629_v36 = vmul.f32 %v6825_v32, %v6825_v32  ;;  %v1630_v40 = vmul.f32 %v6827_v13, %v6827_v13  ;;  %v1631_v43 = vmul.f32 %v6829_v5, %v6829_v5 }
 0x92f   :  { %v1632_v45 = vmul.f32 %v6831_v34, %v6831_v34  ;;  %v6128_v48 = vpack.c.bf16 %v6831_v34, %v6829_v5  ;;  %v1435_v60 = vsel %vm519_vm4, %v1434_v57, 0.0 }
 0x930   :  { %6126 = vmatpush3.bf16.msra.mxu0 %v6125_v35  ;;  %v6131_v42 = vpack.c.bf16 %v1630_v40, %v1629_v36 }
 0x931   :  { %6127 = vmatprep.subr.bf16.mxu0 %v6536_v7  ;;  %v6134_v46 = vpack.c.bf16 %v1632_v45, %v1631_v43 }
 0x932   :  { %6132 = vmatpush3.bf16.msra.mxu1 %v6131_v42 }
 0x933   :  { %6133 = vmatprep.subr.bf16.mxu1 %v6536_v7 }
 0x934   :  { %6129 = vmatpush3.bf16.msra.mxu0 %v6128_v48 }
 0x935   :  { %6136 = vmatprep.subr.bf16.mxu0 %v6536_v7 }
 0x936   :  { %6135 = vmatpush3.bf16.msra.mxu1 %v6134_v46 }
 0x937   :  { %v6380_v50 = vpop.eup %6379 }
 0x938   :  { %v1519_v51 = vadd.f32 1.0, %v6380_v50 }
 0x939   :  { %5685 = vmatmul.mubr.msk.f32.vlgmr.msra.gmra.mrb[18].mxu1 %vm243_vm15, %v6539_v26 }
 0x93a   :  { %6381 = vrcp.f32 %v1519_v51 }
 0x944   :  { %v6382_v52 = vpop.eup %6381 }
 0x945   :  { %v1522_v53 = vmul.f32 2.0, %v6382_v52  ;;  %v1527_v11 = vmul.f32 %v6382_v52, %v1525_v6 }
 0x947   :  { %v5196_v54 = vadd.f32 -1.0, %v1522_v53 }
 0x949   :  { %1529 = vrot.lane.b32.xlu0 %v5196_v54, %s6540_s0 }
 0x968   :  { %1436 = vadd.xlane.f32.xlu0 %v1435_v60 }
 0x9bb   :  { %v1530_v44 = vpop.permute.xlu0 %1529 }
 0x9bc   :  { %v1532_v61 = vmul.f32 %v6382_v52, %v1530_v44 }
 0x9be   :  { %1534 = vrot.lane.b32.xlu1 %v1532_v61, %s6541_s29 }
 0x9f5   :  { %v1437_v62 = vpop.xlane.xlu0 %1436 }
 0x9f6   :  { %v1438_v0 = vmax.f32 %v1437_v62, 1e-24 }
 0x9f8   :  { %6383 = vrsqrt.f32 %v1438_v0 }
 0xa02   :  { %v6384_v1 = vpop.eup %6383 }
 0xa03   :  { %v6854_v2 = vmul.f32 %v6384_v1, %v1433_v56 }
 0xa05   :  { %v1802_v3 = vsel %vm236_vm10, %v6854_v2, 1e+30 }
 0xa06   :  { %v1803_v14 = vsel %vm519_vm4, %v1802_v3, inf }
 0xa07   :  { %1804 = vmin.xlane.f32.xlu1 %v1803_v14 }
 0xa0c   :  { %v6889_v31 = vpop.f32.mrb[18].mxu1 }
 0xa30   :  { %v1535_v37 = vpop.permute.xlu1 %1534 }
 0xa31   :  { %v6861_v38 = vadd.f32 %v1535_v37, %v1527_v11 }
 0xa33   :  { %6385 = vtanh.f32 %v6861_v38 }
 0xa3d   :  { %v6386_v9 = vpop.eup %6385 }
 0xa3e   :  { %1540 = vrot.lane.b32.xlu0 %v6386_v9, %s6540_s0 }
 0xa94   :  { %v1805_v55 = vpop.xlane.xlu1 %1804 }
 0xa95   :  { %vm1806_vm14 = vcmp.eq.f32.partialorder %v1802_v3, %v1805_v55 }
 0xa96   :  { %v1807_v19 = vsel %vm1806_vm14, %v6642_v49, 128.0 }
 0xa97   :  { %v1808_v21 = vsel %vm519_vm4, %v1807_v19, inf }
 0xab0   :  { %v1541_v12 = vpop.permute.xlu0 %1540 }
 0xab1   :  { %v1543_v63 = vmul.f32 %v6382_v52, %v1541_v12 }
 0xab3   :  { %v1545_v15 = vrot.slane %v1543_v63, 4  ;;  %v1620_v24 = vmul.f32 %v1543_v63, %v1543_v63 }
 0xab5   :  { %v6868_v18 = vadd.f32 %v1545_v15, %v1124_v33  ;;  %1546 = vrot.lane.b32.xlu0 %v1545_v15, %s6541_s29 }
 0xad4   :  { %1809 = vmin.xlane.f32.xlu0 %v1808_v21 }
 0xaea   :  { %1622 = vrot.lane.b32.xlu0 %v1620_v24, %s6541_s29 }
 0xb27   :  { %v1547_v28 = vpop.permute.xlu0 %1546 }
 0xb28   :  { %5674 = vmatmul.mubr.msk.f32.vlgmr.msra.gmra.mrb[14].mxu0 %vm243_vm15, %v1547_v28  ;;  %1818 = vxpose.xlu1.b32.start.end [1/1] (short) (narrow) %v1547_v28, 32 }
 0xb29   :  { %6138 = vmatpush3.bf16.xpose.msra.mxu0 %v6125_v35  ;;  %5695 = vmatprep.mubr.msk.f32.mxu0 %vm6537_vm3, %v6538_v8  ;;  %v5686_v35 = vpop.f32.mrb[19].mxu1 }
 0xb2a   :  { %6139 = vmatprep.subr.bf16.mxu0 %v6536_v7 }
 0xb31   :  { %6141 = vmatpush3.bf16.xpose.msra.mxu0 %v6128_v48 }
 0xb32   :  { %6154 = vmatprep.subr.bf16.mxu0 %v6536_v7 }
 0xb61   :  { %v1810_v47 = vpop.xlane.xlu0 %1809 }
 0xb62   :  { %vm1811_vm0 = vcmp.eq.f32.partialorder %v6642_v49, %v1810_v47 }
 0xb63   :  { %v5199_v58 = vsel %vm1811_vm0, 1.0, %v6538_v8 }
 0xb64   :  { %v1815_v29 = vmul.f32 0.59868765, %v5199_v58 }
 0xb66   :  { %v6882_v30 = vadd.f32 %v1815_v29, %v1814_v59 }
 0xb68   :  { %5698 = vmatprep.subr.msk.mxu1 %vm519_vm4, %v6882_v30 }
 0xb69   :  { %5699 = vmatpush3.msk.msra.mxu1 %vm519_vm4, %v6882_v30 }
 0xb6a   :  { %6142 = vmatprep.subr.bf16.mxu1 %v6536_v7 }
 0xba8   :  { %v1834_v36 = vpop.trf.xlu1 }
 0xba9   :  { %5700 = vmatprep.mubr.msk.f32.mxu1 %vm571_vm5, %v1834_v36  ;;  %v1623_v36 = vpop.permute.xlu0 %1622 }
 0xbac   :  { %v1835_v40 = vpop.trf.xlu1 }
 0xbad   :  { %5701 = vmatmul.mubr.msk.f32.vlgmr.msra.gmra.mrb[20].mxu1 %vm571_vm5, %v1835_v40  ;;  %v1626_v40 = vsel %vm1625_vm6, %v1623_v36, 0.0 }
 0xbb0   :  { %v1836_v39 = vpop.trf.xlu1 }
 0xbb1   :  { %5703 = vmatprep.mubr.msk.f32.mxu1 %vm571_vm5, %v1836_v39 }
 0xbb4   :  { %v1837_v42 = vpop.trf.xlu1 }
 0xbb5   :  { %5704 = vmatmul.mubr.msk.f32.gmra.mrb[22].mxu1 %vm571_vm5, %v1837_v42 }
 0xbb6   :  { %5714 = vmatprep.mubr.msk.f32.mxu1 %vm6537_vm3, %v6538_v8 }
 0xbfb   :  { %v6897_v43 = vpop.f32.mrb[14].mxu0 }
 0xbfc   :  { %v5675_v45 = vpop.f32.mrb[15].mxu0 }
 0xbfd   :  { %v1706_v45 = vrot.slane %v6889_v31, %v6690_v22 }
 0xc80   :  { %v5702_v48 = vpop.f32.mrb[20].mxu1 }
 0xc81   :  { %v1951_v46 = vadd.f32 %v5702_v48, %v6827_v13  ;;  %v1931_v50 = vpop.f32.mrb[21].mxu1 }
 0xc82   :  { %v1950_v51 = vadd.f32 %v1931_v50, %v6825_v32 }
 0xc83   :  { %v1955_v52 = vmul.f32 %v1951_v46, %v1951_v46 }
 0xc84   :  { %v1954_v53 = vmul.f32 %v1950_v51, %v1950_v51 }
 0xc86   :  { %v6143_v54 = vpack.c.bf16 %v1955_v52, %v1954_v53 }
 0xc88   :  { %v5705_v56 = vpop.f32.mrb[22].mxu1  ;;  %6144 = vmatpush3.bf16.msra.mxu1 %v6143_v54 }
 0xc89   :  { %v1953_v57 = vadd.f32 %v5705_v56, %v6831_v34  ;;  %v1941_v60 = vpop.f32.mrb[23].mxu1  ;;  %6145 = vmatprep.subr.bf16.mxu1 %v6536_v7 }
 0xc8a   :  { %v1952_v44 = vadd.f32 %v1941_v60, %v6829_v5 }
 0xc8b   :  { %v1957_v61 = vmul.f32 %v1953_v57, %v1953_v57 }
 0xc8c   :  { %v1956_v62 = vmul.f32 %v1952_v44, %v1952_v44 }
 0xc8e   :  { %v6146_v0 = vpack.c.bf16 %v1957_v61, %v1956_v62 }
 0xc90   :  { %6147 = vmatpush3.bf16.msra.mxu1 %v6146_v0 }
 0xc91   :  { %6148 = vmatprep.subr.bf16.mxu1 %v6536_v7 }
 0xc93   :  { %5715 = vmatmul.mubr.msk.f32.vlgmr.msra.gmra.mrb[24].mxu1 %vm243_vm15, %v6539_v26 }
 0xc94   :  { %6150 = vmatpush3.bf16.msra.mxu1 %v6600_v16  ;;  %5725 = vmatprep.mubr.msk.f32.mxu1 %vm6537_vm3, %v6538_v8 }
 0xc95   :  { %6151 = vmatprep.subr.bf16.mxu1 %v6536_v7 }
 0xc98   :  { %6153 = vmatpush3.bf16.msra.mxu1 %v6605_v20 }
 0xc99   :  { %6160 = vmatprep.subr.bf16.mxu1 %v6536_v7 }
 0xc9b   :  { %5726 = vmatmul.mubr.msk.f32.vlgmr.msra.gmra.mrb[26].mxu1 %vm243_vm15, %v1547_v28 }
 0xc9c   :  { %5747 = vmatprep.mubr.msk.f32.mxu1 %vm6537_vm3, %v6538_v8 }
 0xd66   :  { %v2024_v32 = vpop.f32.mrb[24].mxu1 }
 0xd67   :  { %v2028_v13 = vmax.f32 %v2024_v32, 1e-24  ;;  %v5716_v5 = vpop.f32.mrb[25].mxu1  ;;  %v2132_v32 = vrot.slane %v6861_v38, 6 }
 0xd69   :  { %6387 = vrsqrt.f32 %v2028_v13 }
 0xd6e   :  { %v2114_v34 = vpop.f32.mrb[26].mxu1 }
 0xd6f   :  { %v2119_v1 = vrot.slane %v2114_v34, 2  ;;  %v5727_v3 = vpop.f32.mrb[27].mxu1 }
 0xd71   :  { %v2121_v14 = vadd.f32 %v2119_v1, %v6621_v25 }
 0xd73   :  { %v6388_v6 = vpop.eup %6387  ;;  %v2122_v11 = vmul.f32 %v2121_v14, %v6624_v27 }
 0xd74   :  { %v2033_v37 = vrot.slane %v6388_v6, %v6690_v22 }
 0xd75   :  { %v5207_v9 = vmul.f32 -1.442695, %v2122_v11 }
 0xd76   :  { %v6919_v12 = vmul.f32 %v2033_v37, %v1950_v51  ;;  %v6921_v63 = vmul.f32 %v2033_v37, %v1951_v46  ;;  %v6923_v33 = vmul.f32 %v2033_v37, %v1952_v44  ;;  %v6925_v15 = vmul.f32 %v2033_v37, %v1953_v57 }
 0xd77   :  { %6389 = vpow2.f32 %v5207_v9  ;;  %v2038_v9 = vmul.f32 0.3, %v6854_v2 }
 0xd78   :  { %v2236_v55 = vmul.f32 %v6919_v12, %v6919_v12  ;;  %v2237_v25 = vmul.f32 %v6921_v63, %v6921_v63  ;;  %v2238_v21 = vmul.f32 %v6923_v33, %v6923_v33  ;;  %v2239_v24 = vmul.f32 %v6925_v15, %v6925_v15 }
 0xd79   :  { %v6158_v2 = vpack.c.bf16 %v6925_v15, %v6923_v33 }
 0xd7a   :  { %v6161_v19 = vpack.c.bf16 %v2237_v25, %v2236_v55  ;;  %v6164_v28 = vpack.c.bf16 %v2239_v24, %v2238_v21  ;;  %v6155_v25 = vpack.c.bf16 %v6921_v63, %v6919_v12 }
 0xd7c   :  { %6162 = vmatpush3.bf16.msra.mxu1 %v6161_v19 }
 0xd7d   :  { %6163 = vmatprep.subr.bf16.mxu1 %v6536_v7 }
 0xd80   :  { %6165 = vmatpush3.bf16.msra.mxu1 %v6164_v28 }
 0xd81   :  { %v6390_v47 = vpop.eup %6389 }
 0xd82   :  { %v2126_v58 = vadd.f32 1.0, %v6390_v47 }
 0xd83   :  { %5748 = vmatmul.mubr.msk.f32.vlgmr.msra.gmra.mrb[28].mxu1 %vm243_vm15, %v6539_v26 }
 0xd84   :  { %6391 = vrcp.f32 %v2126_v58 }
 0xd8e   :  { %v6392_v59 = vpop.eup %6391 }
 0xd8f   :  { %v2129_v29 = vmul.f32 2.0, %v6392_v59  ;;  %v2134_v13 = vmul.f32 %v6392_v59, %v2132_v32 }
 0xd91   :  { %v5208_v35 = vadd.f32 -1.0, %v2129_v29 }
 0xd93   :  { %2136 = vrot.lane.b32.xlu0 %v5208_v35, %s6540_s0 }
 0xdb2   :  { %1627 = vadd.xlane.f32.xlu0 %v1626_v40 }
 0xe05   :  { %v2137_v39 = vpop.permute.xlu0 %2136 }
 0xe06   :  { %v2139_v42 = vmul.f32 %v6392_v59, %v2137_v39 }
 0xe08   :  { %2141 = vrot.lane.b32.xlu1 %v2139_v42, %s6541_s29 }
 0xe3f   :  { %v1628_v48 = vpop.xlane.xlu0 %1627 }
 0xe40   :  { %v1707_v46 = vmul.f32 %v1706_v45, %v1628_v48 }
 0xe42   :  { %6393 = vrsqrt.f32 %v1707_v46  ;;  %vm1710_vm7 = vcmp.eq.f32.partialorder %v1707_v46, inf  ;;  %v1713_v52 = vand.u32 2147483648, %v1707_v46  ;;  %vm1712_vm8 = vcmp.eq.f32.partialorder %v1707_v46, 0.0 }
 0xe4c   :  { %v6394_v50 = vpop.eup %6393 }
 0xe4d   :  { %v1709_v51 = vmul.f32 %v6394_v50, %v1707_v46 }
 0xe4f   :  { %v1711_v53 = vsel %vm1710_vm7, %v1707_v46, %v1709_v51 }
 0xe50   :  { %v1714_v54 = vsel %vm1712_vm8, %v1713_v52, %v1711_v53 }
 0xe51   :  { %v1715_v56 = vadd.f32 1e-08, %v1714_v54 }
 0xe53   :  { %v1717_v57 = vrot.slane %v1715_v56, 4 }
 0xe55   :  { %6395 = vrcp.f32 %v1717_v57 }
 0xe56   :  { %v2306_v28 = vpop.f32.mrb[28].mxu1 }
 0xe57   :  { %v5749_v47 = vpop.f32.mrb[29].mxu1  ;;  %v2313_v45 = vrot.slane %v2306_v28, %v6690_v22 }
 0xe5f   :  { %v6396_v60 = vpop.eup %6395 }
 0xe60   :  { %v1720_v44 = vmul.f32 %v6396_v60, %v6897_v43 }
 0xe62   :  { %v1721_v61 = vmul.f32 1.442695, %v1720_v44 }
 0xe64   :  { %6397 = vpow2.f32 %v1721_v61 }
 0xe6e   :  { %v6398_v62 = vpop.eup %6397 }
 0xe6f   :  { %v1723_v31 = vmul.f32 %v6398_v62, %v6696_v41 }
 0xe71   :  { %v1724_v0 = vsel %vm519_vm4, %v1723_v31, 0.0 }
 0xe72   :  { %1725 = vadd.xlane.f32.xlu1 %v1724_v0 }
 0xe7a   :  { %v2142_v5 = vpop.permute.xlu1 %2141 }
 0xe7b   :  { %v6947_v34 = vadd.f32 %v2142_v5, %v2134_v13 }
 0xe7d   :  { %6399 = vtanh.f32 %v6947_v34 }
 0xe87   :  { %v6400_v1 = vpop.eup %6399 }
 0xe88   :  { %2147 = vrot.lane.b32.xlu0 %v6400_v1, %s6540_s0 }
 0xefa   :  { %v2148_v43 = vpop.permute.xlu0 %2147 }
 0xefb   :  { %v2150_v3 = vmul.f32 %v6392_v59, %v2148_v43 }
 0xefd   :  { %v2152_v14 = vrot.slane %v2150_v3, 6  ;;  %v2227_v38 = vmul.f32 %v2150_v3, %v2150_v3 }
 0xeff   :  { %v6952_v6 = vadd.f32 %v2152_v14, %v6868_v18  ;;  %v1726_v11 = vpop.xlane.xlu1 %1725  ;;  %2153 = vrot.lane.b32.xlu0 %v2152_v14, %s6541_s29 }
 0xf00   :  { %6401 = vrcp.f32 %v1726_v11 }
 0xf03   :  { %2229 = vrot.lane.b32.xlu0 %v2227_v38, %s6541_s29 }
 0xf0a   :  { %v6402_v37 = vpop.eup %6401 }
 0xf0b   :  { %v6957_v55 = vmul.f32 %v6402_v37, %v1723_v31 }
 0xf0d   :  { %5696 = vmatmul.mubr.f32.vlgmr.msra.gmra.mrb[12].mxu0 %v6957_v55  ;;  %v2039_v18 = vadd.f32 %v2038_v9, %v6957_v55  ;;  %v2421_v9 = vmul.f32 0.40131235, %v6957_v55 }
 0xf0e   :  { %6156 = vmatpush3.bf16.msra.mxu0 %v6155_v25  ;;  %5736 = vmatprep.mubr.msk.f32.mxu0 %vm6537_vm3, %v6538_v8 }
 0xf0f   :  { %6157 = vmatprep.subr.bf16.mxu0 %v6536_v7  ;;  %v2040_v19 = vadd.f32 %v2039_v18, %v6882_v30 }
 0xf11   :  { %v2041_v21 = vmul.f32 %v2040_v19, %v2040_v19 }
 0xf12   :  { %6159 = vmatpush3.bf16.msra.mxu0 %v6158_v2 }
 0xf13   :  { %v2042_v24 = vsel %vm519_vm4, %v2041_v21, 0.0  ;;  %6166 = vmatprep.subr.bf16.mxu0 %v6536_v7 }
 0xf14   :  { %2043 = vadd.xlane.f32.xlu1 %v2042_v24 }
 0xf71   :  { %v6971_v58 = vpop.permute.xlu0 %2153 }
 0xf72   :  { %5737 = vmatmul.mubr.msk.f32.vlgmr.msra.gmra.mrb[16].mxu0 %vm243_vm15, %v6971_v58 }
 0xf73   :  { %6168 = vmatpush3.bf16.xpose.msra.mxu0 %v6155_v25  ;;  %5758 = vmatprep.mubr.msk.f32.mxu0 %vm6537_vm3, %v6538_v8 }
 0xf74   :  { %6169 = vmatprep.subr.bf16.mxu0 %v6536_v7 }
 0xf75   :  { %v2230_v30 = vpop.permute.xlu0 %2229 }
 0xf76   :  { %v2233_v59 = vsel %vm2232_vm9, %v2230_v30, 0.0 }
 0xf77   :  { %2234 = vadd.xlane.f32.xlu0 %v2233_v59 }
 0xf7b   :  { %6171 = vmatpush3.bf16.xpose.msra.mxu0 %v6158_v2 }
 0xf7c   :  { %6178 = vmatprep.subr.bf16.mxu0 %v6536_v7 }
 0xfa1   :  { %v2044_v29 = vpop.xlane.xlu1 %2043 }
 0xfa2   :  { %v2045_v35 = vmax.f32 %v2044_v29, 1e-24 }
 0xfa4   :  { %6403 = vrsqrt.f32 %v2045_v35 }
 0xfae   :  { %v6404_v36 = vpop.eup %6403 }
 0xfaf   :  { %v2047_v40 = vmul.f32 %v6404_v36, %v2040_v19 }
 0xfb1   :  { %v2409_v39 = vsel %vm236_vm10, %v2047_v40, 1e+30  ;;  %v2645_v21 = vmul.f32 0.3, %v2047_v40 }
 0xfb2   :  { %v2410_v42 = vsel %vm519_vm4, %v2409_v39, inf }
 0xfb3   :  { %2411 = vmin.xlane.f32.xlu0 %v2410_v42 }
 0xfe0   :  { %2425 = vxpose.xlu0.b32.start.end [1/1] (short) (narrow) %v6971_v58, 32 }
0x1004   :  { %v2235_v48 = vpop.xlane.xlu0 %2234 }
0x1005   :  { %v2314_v46 = vmul.f32 %v2313_v45, %v2235_v48 }
0x1007   :  { %6405 = vrsqrt.f32 %v2314_v46  ;;  %vm2317_vm12 = vcmp.eq.f32.partialorder %v2314_v46, inf  ;;  %v2320_v53 = vand.u32 2147483648, %v2314_v46  ;;  %vm2319_vm13 = vcmp.eq.f32.partialorder %v2314_v46, 0.0 }
0x1011   :  { %v6406_v50 = vpop.eup %6405 }
0x1012   :  { %v2316_v51 = vmul.f32 %v6406_v50, %v2314_v46 }
0x1014   :  { %v2318_v52 = vsel %vm2317_vm12, %v2314_v46, %v2316_v51 }
0x1015   :  { %v2321_v54 = vsel %vm2319_vm13, %v2320_v53, %v2318_v52 }
0x1016   :  { %v2322_v56 = vadd.f32 1e-08, %v2321_v54 }
0x1018   :  { %v2324_v57 = vrot.slane %v2322_v56, 6 }
0x101a   :  { %6407 = vrcp.f32 %v2324_v57 }
0x1024   :  { %v6408_v60 = vpop.eup %6407 }
0x1040   :  { %v2412_v0 = vpop.xlane.xlu0 %2411 }
0x1041   :  { %vm2413_vm14 = vcmp.eq.f32.partialorder %v2409_v39, %v2412_v0 }
0x1042   :  { %v2414_v1 = vsel %vm2413_vm14, %v6642_v49, 128.0 }
0x1043   :  { %v2415_v43 = vsel %vm519_vm4, %v2414_v1, inf }
0x1045   :  { %v2223_v44 = vpop.f32.mrb[16].mxu0 }
0x1046   :  { %v2327_v61 = vmul.f32 %v6408_v60, %v2223_v44  ;;  %v5738_v62 = vpop.f32.mrb[17].mxu0 }
0x1048   :  { %v2328_v31 = vmul.f32 1.442695, %v2327_v61 }
0x104a   :  { %6409 = vpow2.f32 %v2328_v31 }
0x1054   :  { %v6410_v32 = vpop.eup %6409 }
0x1055   :  { %v2330_v13 = vmul.f32 %v6410_v32, %v6696_v41 }
0x1057   :  { %v2331_v5 = vsel %vm519_vm4, %v2330_v13, 0.0 }
0x1058   :  { %2332 = vadd.xlane.f32.xlu1 %v2331_v5 }
0x105c   :  { %2416 = vmin.xlane.f32.xlu1 %v2415_v43 }
0x1060   :  { %v2441_v3 = vpop.trf.xlu0 }
0x1061   :  { %5763 = vmatprep.mubr.msk.f32.mxu1 %vm571_vm5, %v2441_v3 }
0x1064   :  { %v2442_v11 = vpop.trf.xlu0 }
0x1068   :  { %v2443_v18 = vpop.trf.xlu0 }
0x106c   :  { %v2444_v28 = vpop.trf.xlu0 }
0x10e5   :  { %v2333_v14 = vpop.xlane.xlu1 %2332 }
0x10e6   :  { %6411 = vrcp.f32 %v2333_v14 }
0x10e9   :  { %v2417_v38 = vpop.xlane.xlu1 %2416 }
0x10ea   :  { %vm2418_vm0 = vcmp.eq.f32.partialorder %v6642_v49, %v2417_v38 }
0x10eb   :  { %v5211_v37 = vsel %vm2418_vm0, 1.0, %v6538_v8 }
0x10ec   :  { %v2422_v25 = vmul.f32 0.59868765, %v5211_v37 }
0x10ee   :  { %v2423_v19 = vadd.f32 %v2422_v25, %v2421_v9 }
0x10f0   :  { %v6412_v2 = vpop.eup %6411  ;;  %5761 = vmatprep.subr.msk.mxu1 %vm519_vm4, %v2423_v19 }
0x10f1   :  { %5762 = vmatpush3.msk.msra.mxu1 %vm519_vm4, %v2423_v19  ;;  %v6995_v24 = vmul.f32 %v6412_v2, %v2330_v13 }
0x10f2   :  { %5764 = vmatmul.mubr.msk.f32.vlgmr.msra.gmra.mrb[30].mxu1 %vm571_vm5, %v2442_v11  ;;  %6172 = vmatprep.subr.bf16.mxu1 %v6536_v7 }
0x10f3   :  { %5759 = vmatmul.mubr.f32.vlgmr.msra.gmra.mrb[12].mxu0 %v6995_v24  ;;  %5766 = vmatprep.mubr.msk.f32.mxu1 %vm571_vm5, %v2443_v18  ;;  %v2646_v55 = vadd.f32 %v2645_v21, %v6995_v24 }
0x10f4   :  { %6180 = vmatpush3.bf16.msra.mxu0 %v6600_v16  ;;  %5788 = vmatprep.mubr.msk.f32.mxu0 %vm6537_vm3, %v6538_v8 }
0x10f5   :  { %6181 = vmatprep.subr.bf16.mxu0 %v6536_v7  ;;  %v7006_v47 = vadd.f32 %v2646_v55, %v2423_v19 }
0x10f6   :  { %5767 = vmatmul.mubr.msk.f32.gmra.mrb[32].mxu1 %vm571_vm5, %v2444_v28  ;;  %v2736_v28 = vrot.slane %v6947_v34, 6 }
0x10f7   :  { %5777 = vmatprep.mubr.msk.f32.mxu1 %vm6537_vm3, %v6538_v8  ;;  %v2648_v44 = vmul.f32 %v7006_v47, %v7006_v47 }
0x10f8   :  { %6183 = vmatpush3.bf16.msra.mxu0 %v6605_v20 }
0x10f9   :  { %6190 = vmatprep.subr.bf16.mxu0 %v6536_v7  ;;  %v2649_v61 = vsel %vm519_vm4, %v2648_v44, 0.0 }
0x10fb   :  { %5789 = vmatmul.mubr.msk.f32.vlgmr.msra.gmra.mrb[18].mxu0 %vm243_vm15, %v6971_v58 }
0x10fc   :  { %5810 = vmatprep.mubr.msk.f32.mxu0 %vm6537_vm3, %v6538_v8 }
0x11c5   :  { %v5765_v30 = vpop.f32.mrb[30].mxu1 }
0x11c6   :  { %v2558_v59 = vadd.f32 %v5765_v30, %v6921_v63  ;;  %v2538_v29 = vpop.f32.mrb[31].mxu1 }
0x11c7   :  { %v2557_v35 = vadd.f32 %v2538_v29, %v6919_v12 }
0x11c8   :  { %v2562_v36 = vmul.f32 %v2558_v59, %v2558_v59 }
0x11c9   :  { %v2561_v40 = vmul.f32 %v2557_v35, %v2557_v35  ;;  %v5768_v39 = vpop.f32.mrb[32].mxu1 }
0x11ca   :  { %v2560_v42 = vadd.f32 %v5768_v39, %v6925_v15  ;;  %v2548_v45 = vpop.f32.mrb[33].mxu1 }
0x11cb   :  { %v6173_v48 = vpack.c.bf16 %v2562_v36, %v2561_v40  ;;  %v2559_v46 = vadd.f32 %v2548_v45, %v6923_v33 }
0x11cc   :  { %v2564_v50 = vmul.f32 %v2560_v42, %v2560_v42 }
0x11cd   :  { %v2563_v58 = vmul.f32 %v2559_v46, %v2559_v46  ;;  %6174 = vmatpush3.bf16.msra.mxu1 %v6173_v48 }
0x11ce   :  { %v2721_v51 = vpop.f32.mrb[18].mxu0  ;;  %6175 = vmatprep.subr.bf16.mxu1 %v6536_v7 }
0x11cf   :  { %v6176_v52 = vpack.c.bf16 %v2564_v50, %v2563_v58  ;;  %v2725_v63 = vadd.f32 %v2721_v51, %v6617_v23  ;;  %v5790_v53 = vpop.f32.mrb[19].mxu0 }
0x11d1   :  { %v2726_v12 = vmul.f32 %v2725_v63, %v6624_v27  ;;  %6177 = vmatpush3.bf16.msra.mxu1 %v6176_v52 }
0x11d2   :  { %6184 = vmatprep.subr.bf16.mxu1 %v6536_v7 }
0x11d3   :  { %v5219_v15 = vmul.f32 -1.442695, %v2726_v12 }
0x11d4   :  { %5778 = vmatmul.mubr.msk.f32.vlgmr.msra.gmra.mrb[34].mxu1 %vm243_vm15, %v6539_v26 }
0x11d5   :  { %6413 = vpow2.f32 %v5219_v15  ;;  %5799 = vmatprep.mubr.msk.f32.mxu1 %vm6537_vm3, %v6538_v8  ;;  %v3019_v15 = vmul.f32 0.40131235, %v6995_v24 }
0x11df   :  { %v6414_v33 = vpop.eup %6413 }
0x11e0   :  { %v2730_v54 = vadd.f32 1.0, %v6414_v33 }
0x11e2   :  { %6415 = vrcp.f32 %v2730_v54 }
0x11ec   :  { %v6416_v56 = vpop.eup %6415 }
0x11ed   :  { %v2733_v57 = vmul.f32 2.0, %v6416_v56  ;;  %v2738_v55 = vmul.f32 %v6416_v56, %v2736_v28 }
0x11ef   :  { %v5220_v60 = vadd.f32 -1.0, %v2733_v57 }
0x11f1   :  { %2740 = vrot.lane.b32.xlu1 %v5220_v60, %s6540_s0 }
0x1215   :  { %2650 = vadd.xlane.f32.xlu1 %v2649_v61 }
0x1263   :  { %v2741_v62 = vpop.permute.xlu1 %2740 }
0x1264   :  { %v2743_v31 = vmul.f32 %v6416_v56, %v2741_v62 }
0x1266   :  { %2745 = vrot.lane.b32.xlu0 %v2743_v31, %s6541_s29 }
0x12a7   :  { %v2631_v0 = vpop.f32.mrb[34].mxu1 }
0x12a8   :  { %v2635_v32 = vmax.f32 %v2631_v0, 1e-24  ;;  %v5779_v13 = vpop.f32.mrb[35].mxu1 }
0x12aa   :  { %6417 = vrsqrt.f32 %v2635_v32 }
0x12b4   :  { %v6418_v5 = vpop.eup %6417 }
0x12b5   :  { %v2640_v1 = vrot.slane %v6418_v5, %v6690_v22 }
0x12b7   :  { %v7035_v43 = vmul.f32 %v2640_v1, %v2557_v35  ;;  %v7037_v3 = vmul.f32 %v2640_v1, %v2558_v59  ;;  %v7039_v14 = vmul.f32 %v2640_v1, %v2559_v46  ;;  %v7041_v11 = vmul.f32 %v2640_v1, %v2560_v42  ;;  %v2651_v35 = vpop.xlane.xlu1 %2650 }
0x12b8   :  { %v2652_v36 = vmax.f32 %v2651_v35, 1e-24 }
0x12b9   :  { %v6185_v38 = vpack.c.bf16 %v7037_v3, %v7035_v43  ;;  %v2838_v37 = vmul.f32 %v7035_v43, %v7035_v43  ;;  %v2839_v9 = vmul.f32 %v7037_v3, %v7037_v3  ;;  %v2840_v18 = vmul.f32 %v7039_v14, %v7039_v14 }
0x12ba   :  { %v2841_v19 = vmul.f32 %v7041_v11, %v7041_v11  ;;  %v6188_v2 = vpack.c.bf16 %v7041_v11, %v7039_v14 }
0x12bb   :  { %6186 = vmatpush3.bf16.msra.mxu1 %v6185_v38  ;;  %v6191_v25 = vpack.c.bf16 %v2839_v9, %v2838_v37 }
0x12bc   :  { %6187 = vmatprep.subr.bf16.mxu1 %v6536_v7  ;;  %v6194_v21 = vpack.c.bf16 %v2841_v19, %v2840_v18 }
0x12bd   :  { %6192 = vmatpush3.bf16.msra.mxu0 %v6191_v25 }
0x12be   :  { %6193 = vmatprep.subr.bf16.mxu0 %v6536_v7 }
0x12bf   :  { %6189 = vmatpush3.bf16.msra.mxu1 %v6188_v2 }
0x12c1   :  { %6195 = vmatpush3.bf16.msra.mxu0 %v6194_v21 }
0x12c2   :  { %6196 = vmatprep.subr.bf16.mxu0 %v6536_v7 }
0x12c4   :  { %5811 = vmatmul.mubr.msk.f32.vlgmr.msra.gmra.mrb[20].mxu0 %vm243_vm15, %v6539_v26 }
0x12c5   :  { %5821 = vmatprep.mubr.msk.f32.mxu0 %vm6537_vm3, %v6538_v8 }
0x12ca   :  { %6198 = vmatpush3.bf16.xpose.msra.mxu0 %v6185_v38 }
0x12cb   :  { %6199 = vmatprep.subr.bf16.mxu0 %v6536_v7 }
0x12d2   :  { %6201 = vmatpush3.bf16.xpose.msra.mxu0 %v6188_v2 }
0x12d3   :  { %6220 = vmatprep.subr.bf16.mxu0 %v6536_v7 }
0x12d8   :  { %v2746_v30 = vpop.permute.xlu0 %2745 }
0x12d9   :  { %v7065_v59 = vadd.f32 %v2746_v30, %v2738_v55 }
0x12db   :  { %6419 = vtanh.f32 %v7065_v59 }
0x12dc   :  { %6421 = vrsqrt.f32 %v2652_v36 }
0x12e5   :  { %v6420_v29 = vpop.eup %6419 }
0x12e6   :  { %2751 = vrot.lane.b32.xlu1 %v6420_v29, %s6540_s0  ;;  %v6422_v40 = vpop.eup %6421 }
0x12e7   :  { %v7070_v39 = vmul.f32 %v6422_v40, %v7006_v47 }
0x12e9   :  { %v3007_v34 = vsel %vm236_vm10, %v7070_v39, 1e+30 }
0x12ea   :  { %v3008_v42 = vsel %vm519_vm4, %v3007_v34, inf }
0x130a   :  { %3009 = vmin.xlane.f32.xlu1 %v3008_v42 }
0x1358   :  { %v2752_v45 = vpop.permute.xlu1 %2751 }
0x1359   :  { %v2754_v48 = vmul.f32 %v6416_v56, %v2752_v45 }
0x135b   :  { %v7077_v46 = vadd.f32 %v2754_v48, %v6952_v6  ;;  %2756 = vrot.lane.b32.xlu0 %v2754_v48, %s6541_s29  ;;  %v2830_v51 = vmul.f32 %v2754_v48, %v2754_v48 }
0x1397   :  { %v3010_v50 = vpop.xlane.xlu1 %3009  ;;  %v2908_v6 = vpop.f32.mrb[20].mxu0 }
0x1398   :  { %vm3011_vm7 = vcmp.eq.f32.partialorder %v3007_v34, %v3010_v50  ;;  %v5812_v63 = vpop.f32.mrb[21].mxu0  ;;  %v2915_v0 = vrot.slane %v2908_v6, %v6690_v22 }
0x1399   :  { %v3012_v58 = vsel %vm3011_vm7, %v6642_v49, 128.0 }
0x139a   :  { %v3013_v47 = vsel %vm519_vm4, %v3012_v58, inf }
0x139b   :  { %3014 = vmin.xlane.f32.xlu0 %v3013_v47 }
0x13b1   :  { %2832 = vrot.lane.b32.xlu0 %v2830_v51, %s6541_s29 }
0x13cd   :  { %v7083_v52 = vpop.permute.xlu0 %2756 }
0x13ce   :  { %3023 = vxpose.xlu1.b32.start.end [1/1] (short) (narrow) %v7083_v52, 32  ;;  %5800 = vmatmul.mubr.msk.f32.vlgmr.msra.gmra.mrb[36].mxu1 %vm243_vm15, %v7083_v52 }
0x1428   :  { %v3015_v53 = vpop.xlane.xlu0 %3014 }
0x1429   :  { %vm3016_vm8 = vcmp.eq.f32.partialorder %v6642_v49, %v3015_v53 }
0x142a   :  { %v5223_v12 = vsel %vm3016_vm8, 1.0, %v6538_v8 }
0x142b   :  { %v3020_v33 = vmul.f32 0.59868765, %v5223_v12 }
0x142c   :  { %v2833_v54 = vpop.permute.xlu0 %2832 }
0x142d   :  { %v7091_v56 = vadd.f32 %v3020_v33, %v3019_v15  ;;  %v2835_v57 = vsel %vm424_vm1, %v2833_v54, 0.0 }
0x142e   :  { %2836 = vadd.xlane.f32.xlu0 %v2835_v57 }
0x142f   :  { %5824 = vmatprep.subr.msk.mxu1 %vm519_vm4, %v7091_v56 }
0x1430   :  { %5825 = vmatpush3.msk.msra.mxu1 %vm519_vm4, %v7091_v56 }
0x1431   :  { %6202 = vmatprep.subr.bf16.mxu1 %v6536_v7 }
0x144e   :  { %v3039_v60 = vpop.trf.xlu1 }
0x144f   :  { %5826 = vmatprep.mubr.msk.f32.mxu1 %vm571_vm5, %v3039_v60 }
0x1452   :  { %v3040_v44 = vpop.trf.xlu1 }
0x1453   :  { %5827 = vmatmul.mubr.msk.f32.vlgmr.msra.gmra.mrb[38].mxu1 %vm571_vm5, %v3040_v44 }
0x1456   :  { %v3041_v24 = vpop.trf.xlu1 }
0x1457   :  { %5829 = vmatprep.mubr.msk.f32.mxu1 %vm571_vm5, %v3041_v24 }
0x145a   :  { %v3042_v61 = vpop.trf.xlu1 }
0x145b   :  { %5830 = vmatmul.mubr.msk.f32.gmra.mrb[40].mxu1 %vm571_vm5, %v3042_v61 }
0x145c   :  { %5840 = vmatprep.mubr.msk.f32.mxu1 %vm6537_vm3, %v6538_v8 }
0x14a1   :  { %v2826_v62 = vpop.f32.mrb[36].mxu1 }
0x14a2   :  { %v5801_v31 = vpop.f32.mrb[37].mxu1 }
0x14bb   :  { %v2837_v32 = vpop.xlane.xlu0 %2836 }
0x14bc   :  { %v2916_v13 = vmul.f32 %v2915_v0, %v2837_v32 }
0x14be   :  { %6423 = vrsqrt.f32 %v2916_v13  ;;  %vm2919_vm1 = vcmp.eq.f32.partialorder %v2916_v13, inf  ;;  %v2922_v38 = vand.u32 2147483648, %v2916_v13  ;;  %vm2921_vm12 = vcmp.eq.f32.partialorder %v2916_v13, 0.0 }
0x14c8   :  { %v6424_v5 = vpop.eup %6423 }
0x14c9   :  { %v2918_v1 = vmul.f32 %v6424_v5, %v2916_v13 }
0x14cb   :  { %v2920_v37 = vsel %vm2919_vm1, %v2916_v13, %v2918_v1 }
0x14cc   :  { %v2923_v9 = vsel %vm2921_vm12, %v2922_v38, %v2920_v37 }
0x14cd   :  { %v2924_v25 = vadd.f32 1e-08, %v2923_v9 }
0x14cf   :  { %6425 = vrcp.f32 %v2924_v25 }
0x14d9   :  { %v6426_v18 = vpop.eup %6425 }
0x14da   :  { %v2926_v19 = vmul.f32 %v6426_v18, %v2826_v62 }
0x14dc   :  { %v2927_v2 = vmul.f32 1.442695, %v2926_v19 }
0x14de   :  { %6427 = vpow2.f32 %v2927_v2 }
0x14e8   :  { %v6428_v21 = vpop.eup %6427 }
0x14e9   :  { %v2929_v28 = vmul.f32 %v6428_v21, %v6696_v41 }
0x14eb   :  { %v2930_v55 = vsel %vm519_vm4, %v2929_v28, 0.0 }
0x14ec   :  { %2931 = vadd.xlane.f32.xlu1 %v2930_v55 }
0x1526   :  { %v5828_v30 = vpop.f32.mrb[38].mxu1 }
0x1527   :  { %v3156_v29 = vadd.f32 %v5828_v30, %v7037_v3  ;;  %v3136_v35 = vpop.f32.mrb[39].mxu1 }
0x1528   :  { %v3155_v36 = vadd.f32 %v3136_v35, %v7035_v43 }
0x1529   :  { %v3160_v40 = vmul.f32 %v3156_v29, %v3156_v29 }
0x152a   :  { %v3159_v34 = vmul.f32 %v3155_v36, %v3155_v36 }
0x152c   :  { %v6203_v42 = vpack.c.bf16 %v3160_v40, %v3159_v34  ;;  %v3337_v40 = vrot.slane %v7065_v59, 6 }
0x152e   :  { %v5831_v45 = vpop.f32.mrb[40].mxu1  ;;  %6204 = vmatpush3.bf16.msra.mxu1 %v6203_v42 }
0x152f   :  { %v3158_v48 = vadd.f32 %v5831_v45, %v7041_v11  ;;  %v3146_v50 = vpop.f32.mrb[41].mxu1  ;;  %6205 = vmatprep.subr.bf16.mxu1 %v6536_v7 }
0x1530   :  { %v3157_v58 = vadd.f32 %v3146_v50, %v7039_v14  ;;  %v3243_v14 = vmul.f32 0.3, %v7070_v39 }
0x1531   :  { %v3162_v47 = vmul.f32 %v3158_v48, %v3158_v48 }
0x1532   :  { %v3161_v51 = vmul.f32 %v3157_v58, %v3157_v58 }
0x1534   :  { %v6206_v6 = vpack.c.bf16 %v3162_v47, %v3161_v51 }
0x1536   :  { %6207 = vmatpush3.bf16.msra.mxu1 %v6206_v6 }
0x1537   :  { %6208 = vmatprep.subr.bf16.mxu1 %v6536_v7 }
0x1539   :  { %5841 = vmatmul.mubr.msk.f32.vlgmr.msra.gmra.mrb[42].mxu1 %vm243_vm15, %v6539_v26 }
0x153a   :  { %6210 = vmatpush3.bf16.msra.mxu1 %v6600_v16  ;;  %5851 = vmatprep.mubr.msk.f32.mxu1 %vm6537_vm3, %v6538_v8 }
0x153b   :  { %6211 = vmatprep.subr.bf16.mxu1 %v6536_v7 }
0x153e   :  { %6213 = vmatpush3.bf16.msra.mxu1 %v6605_v20 }
0x153f   :  { %6214 = vmatprep.subr.bf16.mxu1 %v6536_v7 }
0x1541   :  { %5852 = vmatmul.mubr.msk.f32.vlgmr.msra.gmra.mrb[44].mxu1 %vm243_vm15, %v7083_v52 }
0x1542   :  { %5862 = vmatprep.mubr.msk.f32.mxu1 %vm6537_vm3, %v6538_v8 }
0x1579   :  { %v2932_v43 = vpop.xlane.xlu1 %2931 }
0x157a   :  { %6429 = vrcp.f32 %v2932_v43 }
0x1584   :  { %v6430_v3 = vpop.eup %6429 }
0x1585   :  { %v7127_v11 = vmul.f32 %v6430_v3, %v2929_v28 }
0x1587   :  { %5822 = vmatmul.mubr.f32.vlgmr.msra.gmra.mrb[12].mxu0 %v7127_v11  ;;  %v3244_v63 = vadd.f32 %v3243_v14, %v7127_v11 }
0x1588   :  { %5873 = vmatprep.mubr.msk.f32.mxu0 %vm6537_vm3, %v6538_v8 }
0x1589   :  { %v3245_v55 = vadd.f32 %v3244_v63, %v7091_v56 }
0x158b   :  { %v3246_v30 = vmul.f32 %v3245_v55, %v3245_v55 }
0x160c   :  { %v3229_v53 = vpop.f32.mrb[42].mxu1 }
0x160d   :  { %v3233_v12 = vmax.f32 %v3229_v53, 1e-24  ;;  %v5842_v52 = vpop.f32.mrb[43].mxu1 }
0x160f   :  { %6431 = vrsqrt.f32 %v3233_v12 }
0x1614   :  { %v3319_v15 = vpop.f32.mrb[44].mxu1 }
0x1615   :  { %v3324_v33 = vrot.slane %v3319_v15, 6  ;;  %v5853_v54 = vpop.f32.mrb[45].mxu1 }
0x1617   :  { %v3326_v57 = vadd.f32 %v3324_v33, %v6617_v23 }
0x1619   :  { %v6432_v60 = vpop.eup %6431  ;;  %v3327_v39 = vmul.f32 %v3326_v57, %v6624_v27 }
0x161a   :  { %v3238_v44 = vrot.slane %v6432_v60, %v6690_v22  ;;  %v3625_v60 = vmul.f32 0.40131235, %v7127_v11 }
0x161b   :  { %v5231_v24 = vmul.f32 -1.442695, %v3327_v39 }
0x161c   :  { %v7136_v61 = vmul.f32 %v3238_v44, %v3155_v36  ;;  %v7138_v62 = vmul.f32 %v3238_v44, %v3156_v29  ;;  %v7140_v31 = vmul.f32 %v3238_v44, %v3157_v58  ;;  %v7142_v0 = vmul.f32 %v3238_v44, %v3158_v48 }
0x161d   :  { %6433 = vpow2.f32 %v5231_v24  ;;  %v3247_v29 = vsel %vm519_vm4, %v3246_v30, 0.0 }
0x161e   :  { %v6215_v32 = vpack.c.bf16 %v7138_v62, %v7136_v61  ;;  %v3440_v13 = vmul.f32 %v7136_v61, %v7136_v61  ;;  %v3441_v5 = vmul.f32 %v7138_v62, %v7138_v62  ;;  %v3442_v38 = vmul.f32 %v7140_v31, %v7140_v31 }
0x161f   :  { %v3443_v37 = vmul.f32 %v7142_v0, %v7142_v0  ;;  %v6218_v9 = vpack.c.bf16 %v7142_v0, %v7140_v31 }
0x1620   :  { %6216 = vmatpush3.bf16.msra.mxu1 %v6215_v32  ;;  %v6221_v1 = vpack.c.bf16 %v3441_v5, %v3440_v13 }
0x1621   :  { %6217 = vmatprep.subr.bf16.mxu1 %v6536_v7  ;;  %v6224_v25 = vpack.c.bf16 %v3443_v37, %v3442_v38 }
0x1622   :  { %6222 = vmatpush3.bf16.msra.mxu0 %v6221_v1 }
0x1623   :  { %6223 = vmatprep.subr.bf16.mxu0 %v6536_v7 }
0x1624   :  { %6219 = vmatpush3.bf16.msra.mxu1 %v6218_v9 }
0x1626   :  { %6225 = vmatpush3.bf16.msra.mxu0 %v6224_v25 }
0x1627   :  { %v6434_v18 = vpop.eup %6433  ;;  %6226 = vmatprep.subr.bf16.mxu0 %v6536_v7 }
0x1628   :  { %v3331_v19 = vadd.f32 1.0, %v6434_v18 }
0x1629   :  { %5874 = vmatmul.mubr.msk.f32.vlgmr.msra.gmra.mrb[22].mxu0 %vm243_vm15, %v6539_v26 }
0x162a   :  { %6435 = vrcp.f32 %v3331_v19  ;;  %5884 = vmatprep.mubr.msk.f32.mxu0 %vm6537_vm3, %v6538_v8 }
0x162f   :  { %6228 = vmatpush3.bf16.xpose.msra.mxu0 %v6215_v32 }
0x1630   :  { %6229 = vmatprep.subr.bf16.mxu0 %v6536_v7 }
0x1634   :  { %v6436_v2 = vpop.eup %6435 }
0x1635   :  { %v3334_v21 = vmul.f32 2.0, %v6436_v2  ;;  %v3339_v34 = vmul.f32 %v6436_v2, %v3337_v40 }
0x1637   :  { %6231 = vmatpush3.bf16.xpose.msra.mxu0 %v6218_v9  ;;  %v5232_v28 = vadd.f32 -1.0, %v3334_v21 }
0x1638   :  { %6244 = vmatprep.subr.bf16.mxu0 %v6536_v7 }
0x1639   :  { %3341 = vrot.lane.b32.xlu0 %v5232_v28, %s6540_s0 }
0x1658   :  { %3248 = vadd.xlane.f32.xlu0 %v3247_v29 }
0x16ab   :  { %v3342_v35 = vpop.permute.xlu0 %3341 }
0x16ac   :  { %v3344_v36 = vmul.f32 %v6436_v2, %v3342_v35 }
0x16ae   :  { %3346 = vrot.lane.b32.xlu1 %v3344_v36, %s6541_s29 }
0x16e5   :  { %v3249_v56 = vpop.xlane.xlu0 %3248 }
0x16e6   :  { %v3250_v50 = vmax.f32 %v3249_v56, 1e-24 }
0x1720   :  { %v3347_v42 = vpop.permute.xlu1 %3346 }
0x1721   :  { %v7170_v45 = vadd.f32 %v3347_v42, %v3339_v34 }
0x1723   :  { %6437 = vtanh.f32 %v7170_v45 }
0x1724   :  { %6439 = vrsqrt.f32 %v3250_v50 }
0x172d   :  { %v6438_v48 = vpop.eup %6437 }
0x172e   :  { %3352 = vrot.lane.b32.xlu1 %v6438_v48, %s6540_s0  ;;  %v6440_v58 = vpop.eup %6439 }
0x172f   :  { %v7174_v47 = vmul.f32 %v6440_v58, %v3245_v55 }
0x1731   :  { %v3613_v51 = vsel %vm236_vm10, %v7174_v47, 1e+30 }
0x1732   :  { %v3614_v59 = vsel %vm519_vm4, %v3613_v51, inf }
0x1752   :  { %3615 = vmin.xlane.f32.xlu1 %v3614_v59 }
0x17a0   :  { %v3353_v6 = vpop.permute.xlu1 %3352 }
0x17a1   :  { %v3355_v43 = vmul.f32 %v6436_v2, %v3353_v6 }
0x17a3   :  { %v3357_v3 = vrot.slane %v3355_v43, 2  ;;  %v3432_v52 = vmul.f32 %v3355_v43, %v3355_v43 }
0x17a5   :  { %v7181_v14 = vadd.f32 %v3357_v3, %v7077_v46  ;;  %3358 = vrot.lane.b32.xlu0 %v3357_v3, %s6541_s29  ;;  %v3510_v46 = vpop.f32.mrb[22].mxu0 }
0x17a6   :  { %v5875_v33 = vpop.f32.mrb[23].mxu0  ;;  %v3517_v9 = vrot.slane %v3510_v46, %v6690_v22 }
0x17df   :  { %v3616_v63 = vpop.xlane.xlu1 %3615 }
0x17e0   :  { %vm3617_vm13 = vcmp.eq.f32.partialorder %v3613_v51, %v3616_v63 }
0x17e1   :  { %v3618_v53 = vsel %vm3617_vm13, %v6642_v49, 128.0 }
0x17e2   :  { %v3619_v12 = vsel %vm519_vm4, %v3618_v53, inf }
0x17e3   :  { %3620 = vmin.xlane.f32.xlu0 %v3619_v12 }
0x17f9   :  { %3434 = vrot.lane.b32.xlu0 %v3432_v52, %s6541_s29 }
0x1817   :  { %v7187_v15 = vpop.permute.xlu0 %3358 }
0x1818   :  { %5863 = vmatmul.mubr.msk.f32.vlgmr.msra.gmra.mrb[46].mxu1 %vm243_vm15, %v7187_v15  ;;  %3629 = vxpose.xlu1.b32.start.end [1/1] (short) (narrow) %v7187_v15, 32 }
0x1870   :  { %v3621_v54 = vpop.xlane.xlu0 %3620 }
0x1871   :  { %vm3622_vm14 = vcmp.eq.f32.partialorder %v6642_v49, %v3621_v54 }
0x1872   :  { %v5235_v57 = vsel %vm3622_vm14, 1.0, %v6538_v8 }
0x1873   :  { %v3626_v39 = vmul.f32 0.59868765, %v5235_v57 }
0x1874   :  { %v3435_v44 = vpop.permute.xlu0 %3434 }
0x1875   :  { %v7195_v24 = vadd.f32 %v3626_v39, %v3625_v60  ;;  %v3437_v32 = vsel %vm949_vm11, %v3435_v44, 0.0 }
0x1876   :  { %3438 = vadd.xlane.f32.xlu0 %v3437_v32 }
0x1877   :  { %5887 = vmatprep.subr.msk.mxu1 %vm519_vm4, %v7195_v24 }
0x1878   :  { %5888 = vmatpush3.msk.msra.mxu1 %vm519_vm4, %v7195_v24 }
0x1879   :  { %6232 = vmatprep.subr.bf16.mxu1 %v6536_v7 }
0x1898   :  { %v3645_v13 = vpop.trf.xlu1 }
0x1899   :  { %5889 = vmatprep.mubr.msk.f32.mxu1 %vm571_vm5, %v3645_v13 }
0x189c   :  { %v3646_v5 = vpop.trf.xlu1 }
0x189d   :  { %5890 = vmatmul.mubr.msk.f32.vlgmr.msra.gmra.mrb[48].mxu1 %vm571_vm5, %v3646_v5 }
0x18a0   :  { %v3647_v11 = vpop.trf.xlu1 }
0x18a1   :  { %5892 = vmatprep.mubr.msk.f32.mxu1 %vm571_vm5, %v3647_v11 }
0x18a4   :  { %v3648_v1 = vpop.trf.xlu1 }
0x18a5   :  { %5893 = vmatmul.mubr.msk.f32.gmra.mrb[50].mxu1 %vm571_vm5, %v3648_v1 }
0x18a6   :  { %5903 = vmatprep.mubr.msk.f32.mxu1 %vm6537_vm3, %v6538_v8 }
0x18eb   :  { %v3428_v38 = vpop.f32.mrb[46].mxu1 }
0x18ec   :  { %v5864_v37 = vpop.f32.mrb[47].mxu1 }
0x1903   :  { %v3439_v25 = vpop.xlane.xlu0 %3438 }
0x1904   :  { %v3518_v18 = vmul.f32 %v3517_v9, %v3439_v25 }
0x1906   :  { %6441 = vrsqrt.f32 %v3518_v18  ;;  %vm3521_vm11 = vcmp.eq.f32.partialorder %v3518_v18, inf  ;;  %v3524_v21 = vand.u32 2147483648, %v3518_v18  ;;  %vm3523_vm0 = vcmp.eq.f32.partialorder %v3518_v18, 0.0 }
0x1910   :  { %v6442_v19 = vpop.eup %6441 }
0x1911   :  { %v3520_v2 = vmul.f32 %v6442_v19, %v3518_v18 }
0x1913   :  { %v3522_v28 = vsel %vm3521_vm11, %v3518_v18, %v3520_v2 }
0x1914   :  { %v3525_v55 = vsel %vm3523_vm0, %v3524_v21, %v3522_v28 }
0x1915   :  { %v3526_v30 = vadd.f32 1e-08, %v3525_v55 }
0x1917   :  { %v3528_v29 = vrot.slane %v3526_v30, 2 }
0x1919   :  { %6443 = vrcp.f32 %v3528_v29 }
0x1923   :  { %v6444_v35 = vpop.eup %6443 }
0x1924   :  { %v3531_v36 = vmul.f32 %v6444_v35, %v3428_v38 }
0x1926   :  { %v3532_v40 = vmul.f32 1.442695, %v3531_v36 }
0x1928   :  { %6445 = vpow2.f32 %v3532_v40 }
0x1932   :  { %v6446_v34 = vpop.eup %6445 }
0x1933   :  { %v3534_v42 = vmul.f32 %v6446_v34, %v6696_v41 }
0x1935   :  { %v3535_v48 = vsel %vm519_vm4, %v3534_v42, 0.0 }
0x1936   :  { %3536 = vadd.xlane.f32.xlu1 %v3535_v48 }
0x1970   :  { %v5891_v56 = vpop.f32.mrb[48].mxu1 }
0x1971   :  { %v3762_v50 = vadd.f32 %v5891_v56, %v7138_v62  ;;  %v3742_v58 = vpop.f32.mrb[49].mxu1 }
0x1972   :  { %v3761_v51 = vadd.f32 %v3742_v58, %v7136_v61 }
0x1973   :  { %v3766_v59 = vmul.f32 %v3762_v50, %v3762_v50 }
0x1974   :  { %v3765_v6 = vmul.f32 %v3761_v51, %v3761_v51 }
0x1976   :  { %v6233_v43 = vpack.c.bf16 %v3766_v59, %v3765_v6  ;;  %v3943_v59 = vrot.slane %v7170_v45, 6 }
0x1978   :  { %v5894_v3 = vpop.f32.mrb[50].mxu1  ;;  %6234 = vmatpush3.bf16.msra.mxu1 %v6233_v43 }
0x1979   :  { %v3764_v63 = vadd.f32 %v5894_v3, %v7142_v0  ;;  %v3752_v53 = vpop.f32.mrb[51].mxu1  ;;  %6235 = vmatprep.subr.bf16.mxu1 %v6536_v7 }
0x197a   :  { %v3763_v12 = vadd.f32 %v3752_v53, %v7140_v31  ;;  %v3849_v31 = vmul.f32 0.3, %v7174_v47 }
0x197b   :  { %v3768_v52 = vmul.f32 %v3764_v63, %v3764_v63 }
0x197c   :  { %v3767_v46 = vmul.f32 %v3763_v12, %v3763_v12 }
0x197e   :  { %v6236_v33 = vpack.c.bf16 %v3768_v52, %v3767_v46 }
0x1980   :  { %6237 = vmatpush3.bf16.msra.mxu1 %v6236_v33 }
0x1981   :  { %6238 = vmatprep.subr.bf16.mxu1 %v6536_v7 }
0x1983   :  { %5904 = vmatmul.mubr.msk.f32.vlgmr.msra.gmra.mrb[52].mxu1 %vm243_vm15, %v6539_v26 }
0x1984   :  { %6240 = vmatpush3.bf16.msra.mxu1 %v6600_v16  ;;  %5914 = vmatprep.mubr.msk.f32.mxu1 %vm6537_vm3, %v6538_v8 }
0x1985   :  { %6241 = vmatprep.subr.bf16.mxu1 %v6536_v7 }
0x1988   :  { %6243 = vmatpush3.bf16.msra.mxu1 %v6605_v20 }
0x1989   :  { %6250 = vmatprep.subr.bf16.mxu1 %v6536_v7 }
0x198b   :  { %5915 = vmatmul.mubr.msk.f32.vlgmr.msra.gmra.mrb[54].mxu1 %vm243_vm15, %v7187_v15 }
0x198c   :  { %5936 = vmatprep.mubr.msk.f32.mxu1 %vm6537_vm3, %v6538_v8 }
0x19c3   :  { %v3537_v61 = vpop.xlane.xlu1 %3536 }
0x19c4   :  { %6447 = vrcp.f32 %v3537_v61 }
0x19ce   :  { %v6448_v62 = vpop.eup %6447 }
0x19cf   :  { %v7231_v0 = vmul.f32 %v6448_v62, %v3534_v42 }
0x19d1   :  { %5885 = vmatmul.mubr.f32.vlgmr.msra.gmra.mrb[12].mxu0 %v7231_v0  ;;  %v3850_v54 = vadd.f32 %v3849_v31, %v7231_v0 }
0x19d2   :  { %5925 = vmatprep.mubr.msk.f32.mxu0 %vm6537_vm3, %v6538_v8 }
0x19d3   :  { %v3851_v48 = vadd.f32 %v3850_v54, %v7195_v24 }
0x19d5   :  { %v3852_v56 = vmul.f32 %v3851_v48, %v3851_v48 }
0x1a56   :  { %v3835_v57 = vpop.f32.mrb[52].mxu1 }
0x1a57   :  { %v3839_v60 = vmax.f32 %v3835_v57, 1e-24  ;;  %v5905_v15 = vpop.f32.mrb[53].mxu1 }
0x1a59   :  { %6449 = vrsqrt.f32 %v3839_v60 }
0x1a5e   :  { %v3925_v39 = vpop.f32.mrb[54].mxu1 }
0x1a5f   :  { %v3930_v44 = vrot.slane %v3925_v39, 4  ;;  %v5916_v32 = vpop.f32.mrb[55].mxu1 }
0x1a61   :  { %v3932_v13 = vadd.f32 %v3930_v44, %v6617_v23 }
0x1a63   :  { %v6450_v5 = vpop.eup %6449  ;;  %v3933_v47 = vmul.f32 %v3932_v13, %v6624_v27  ;;  %v4231_v13 = vmul.f32 0.40131235, %v7231_v0 }
0x1a64   :  { %v3844_v11 = vrot.slane %v6450_v5, %v6690_v22 }
0x1a65   :  { %v5243_v1 = vmul.f32 -1.442695, %v3933_v47 }
0x1a66   :  { %v7240_v38 = vmul.f32 %v3844_v11, %v3761_v51  ;;  %v7242_v37 = vmul.f32 %v3844_v11, %v3762_v50  ;;  %v7244_v9 = vmul.f32 %v3844_v11, %v3763_v12  ;;  %v7246_v25 = vmul.f32 %v3844_v11, %v3764_v63 }
0x1a67   :  { %6451 = vpow2.f32 %v5243_v1  ;;  %v3853_v50 = vsel %vm519_vm4, %v3852_v56, 0.0 }
0x1a68   :  { %v6245_v18 = vpack.c.bf16 %v7242_v37, %v7240_v38  ;;  %v4046_v19 = vmul.f32 %v7240_v38, %v7240_v38  ;;  %v4047_v2 = vmul.f32 %v7242_v37, %v7242_v37  ;;  %v4048_v28 = vmul.f32 %v7244_v9, %v7244_v9 }
0x1a69   :  { %v4049_v55 = vmul.f32 %v7246_v25, %v7246_v25  ;;  %v6248_v30 = vpack.c.bf16 %v7246_v25, %v7244_v9 }
0x1a6a   :  { %6246 = vmatpush3.bf16.msra.mxu0 %v6245_v18  ;;  %v6251_v21 = vpack.c.bf16 %v4047_v2, %v4046_v19 }
0x1a6b   :  { %6247 = vmatprep.subr.bf16.mxu0 %v6536_v7  ;;  %v6254_v29 = vpack.c.bf16 %v4049_v55, %v4048_v28 }
0x1a6c   :  { %6252 = vmatpush3.bf16.msra.mxu1 %v6251_v21 }
0x1a6d   :  { %6253 = vmatprep.subr.bf16.mxu1 %v6536_v7 }
0x1a6e   :  { %6249 = vmatpush3.bf16.msra.mxu0 %v6248_v30 }
0x1a6f   :  { %6256 = vmatprep.subr.bf16.mxu0 %v6536_v7 }
0x1a70   :  { %6255 = vmatpush3.bf16.msra.mxu1 %v6254_v29 }
0x1a71   :  { %v6452_v35 = vpop.eup %6451 }
0x1a72   :  { %v3937_v36 = vadd.f32 1.0, %v6452_v35 }
0x1a73   :  { %5937 = vmatmul.mubr.msk.f32.vlgmr.msra.gmra.mrb[56].mxu1 %vm243_vm15, %v6539_v26 }
0x1a74   :  { %6453 = vrcp.f32 %v3937_v36 }
0x1a7e   :  { %v6454_v40 = vpop.eup %6453 }
0x1a7f   :  { %v3940_v34 = vmul.f32 2.0, %v6454_v40  ;;  %v3945_v6 = vmul.f32 %v6454_v40, %v3943_v59 }
0x1a81   :  { %v5244_v42 = vadd.f32 -1.0, %v3940_v34 }
0x1a83   :  { %3947 = vrot.lane.b32.xlu0 %v5244_v42, %s6540_s0 }
0x1aa2   :  { %3854 = vadd.xlane.f32.xlu0 %v3853_v50 }
0x1af5   :  { %v3948_v58 = vpop.permute.xlu0 %3947 }
0x1af6   :  { %v3950_v51 = vmul.f32 %v6454_v40, %v3948_v58 }
0x1af8   :  { %3952 = vrot.lane.b32.xlu1 %v3950_v51, %s6541_s29 }
0x1b2f   :  { %v3855_v24 = vpop.xlane.xlu0 %3854 }
0x1b30   :  { %v3856_v53 = vmax.f32 %v3855_v24, 1e-24 }
0x1b6a   :  { %v3953_v43 = vpop.permute.xlu1 %3952 }
0x1b6b   :  { %v7270_v3 = vadd.f32 %v3953_v43, %v3945_v6 }
0x1b6d   :  { %6455 = vtanh.f32 %v7270_v3 }
0x1b6e   :  { %6457 = vrsqrt.f32 %v3856_v53 }
0x1b77   :  { %v6456_v63 = vpop.eup %6455 }
0x1b78   :  { %3958 = vrot.lane.b32.xlu1 %v6456_v63, %s6540_s0  ;;  %v6458_v12 = vpop.eup %6457 }
0x1b79   :  { %v3858_v52 = vmul.f32 %v6458_v12, %v3851_v48 }
0x1b7b   :  { %v4219_v46 = vsel %vm236_vm10, %v3858_v52, 1e+30 }
0x1b7c   :  { %v4220_v33 = vsel %vm519_vm4, %v4219_v46, inf }
0x1b9c   :  { %4221 = vmin.xlane.f32.xlu1 %v4220_v33 }
0x1bea   :  { %v3959_v45 = vpop.permute.xlu1 %3958 }
0x1beb   :  { %v3961_v61 = vmul.f32 %v6454_v40, %v3959_v45 }
0x1bed   :  { %v3963_v62 = vrot.slane %v3961_v61, 4  ;;  %v4038_v10 = vmul.f32 %v3961_v61, %v3961_v61 }
0x1bef   :  { %v7278_v31 = vadd.f32 %v3963_v62, %v7181_v14  ;;  %3964 = vrot.lane.b32.xlu0 %v3963_v62, %s6541_s29  ;;  %v4116_v14 = vpop.f32.mrb[56].mxu1 }
0x1bf0   :  { %v5938_v39 = vpop.f32.mrb[57].mxu1  ;;  %v4123_v28 = vrot.slane %v4116_v14, %v6690_v22 }
0x1c29   :  { %v4222_v54 = vpop.xlane.xlu1 %4221 }
0x1c2a   :  { %vm4223_vm7 = vcmp.eq.f32.partialorder %v4219_v46, %v4222_v54 }
0x1c2b   :  { %v4224_v57 = vsel %vm4223_vm7, %v6642_v49, 128.0 }
0x1c2c   :  { %v4225_v60 = vsel %vm519_vm4, %v4224_v57, inf }
0x1c2d   :  { %4226 = vmin.xlane.f32.xlu0 %v4225_v60 }
0x1c43   :  { %4040 = vrot.lane.b32.xlu0 %v4038_v10, %s6541_s29 }
0x1c61   :  { %v7284_v15 = vpop.permute.xlu0 %3964 }
0x1c62   :  { %5926 = vmatmul.mubr.msk.f32.vlgmr.msra.gmra.mrb[24].mxu0 %vm243_vm15, %v7284_v15  ;;  %4235 = vxpose.xlu1.b32.start.end [1/1] (short) (narrow) %v7284_v15, 32 }
0x1c63   :  { %6258 = vmatpush3.bf16.xpose.msra.mxu0 %v6245_v18  ;;  %5947 = vmatprep.mubr.msk.f32.mxu0 %vm6537_vm3, %v6538_v8 }
0x1c64   :  { %6259 = vmatprep.subr.bf16.mxu0 %v6536_v7 }
0x1c6b   :  { %6261 = vmatpush3.bf16.xpose.msra.mxu0 %v6248_v30 }
0x1c6c   :  { %6274 = vmatprep.subr.bf16.mxu0 %v6536_v7 }
0x1cba   :  { %v4227_v44 = vpop.xlane.xlu0 %4226 }
0x1cbb   :  { %vm4228_vm10 = vcmp.eq.f32.partialorder %v6642_v49, %v4227_v44 }
0x1cbc   :  { %v5247_v32 = vsel %vm4228_vm10, 1.0, %v6538_v8 }
0x1cbd   :  { %v4232_v5 = vmul.f32 0.59868765, %v5247_v32 }
0x1cbe   :  { %v4041_v47 = vpop.permute.xlu0 %4040 }
0x1cbf   :  { %v4233_v11 = vadd.f32 %v4232_v5, %v4231_v13  ;;  %v4043_v1 = vsel %vm1625_vm6, %v4041_v47, 0.0 }
0x1cc0   :  { %4044 = vadd.xlane.f32.xlu1 %v4043_v1 }
0x1cc1   :  { %5950 = vmatprep.subr.msk.mxu1 %vm519_vm4, %v4233_v11 }
0x1cc2   :  { %5951 = vmatpush3.msk.msra.mxu1 %vm519_vm4, %v4233_v11 }
0x1cc3   :  { %6262 = vmatprep.subr.bf16.mxu1 %v6536_v7 }
0x1ce2   :  { %v4251_v18 = vpop.trf.xlu1 }
0x1ce3   :  { %5952 = vmatprep.mubr.msk.f32.mxu1 %vm571_vm5, %v4251_v18 }
0x1ce6   :  { %v4252_v49 = vpop.trf.xlu1 }
0x1ce7   :  { %5953 = vmatmul.mubr.msk.f32.vlgmr.msra.gmra.mrb[58].mxu1 %vm571_vm5, %v4252_v49 }
0x1cea   :  { %v4253_v19 = vpop.trf.xlu1 }
0x1ceb   :  { %5955 = vmatprep.mubr.msk.f32.mxu1 %vm571_vm5, %v4253_v19 }
0x1cee   :  { %v4254_v0 = vpop.trf.xlu1 }
0x1cef   :  { %5956 = vmatmul.mubr.msk.f32.gmra.mrb[60].mxu1 %vm571_vm5, %v4254_v0 }
0x1cf0   :  { %5966 = vmatprep.mubr.msk.f32.mxu1 %vm6537_vm3, %v6538_v8 }
0x1d35   :  { %v4034_v2 = vpop.f32.mrb[24].mxu0 }
0x1d36   :  { %v5927_v21 = vpop.f32.mrb[25].mxu0 }
0x1d4d   :  { %v4045_v55 = vpop.xlane.xlu1 %4044 }
0x1d4e   :  { %v4124_v30 = vmul.f32 %v4123_v28, %v4045_v55  ;;  %v4539_v55 = vrot.slane %v7270_v3, 6 }
0x1d50   :  { %6459 = vrsqrt.f32 %v4124_v30  ;;  %vm4127_vm6 = vcmp.eq.f32.partialorder %v4124_v30, inf  ;;  %v4130_v36 = vand.u32 2147483648, %v4124_v30  ;;  %vm4129_vm8 = vcmp.eq.f32.partialorder %v4124_v30, 0.0 }
0x1d5a   :  { %v6460_v29 = vpop.eup %6459 }
0x1d5b   :  { %v4126_v35 = vmul.f32 %v6460_v29, %v4124_v30 }
0x1d5d   :  { %v4128_v40 = vsel %vm4127_vm6, %v4124_v30, %v4126_v35 }
0x1d5e   :  { %v4131_v34 = vsel %vm4129_vm8, %v4130_v36, %v4128_v40 }
0x1d5f   :  { %v4132_v42 = vadd.f32 1e-08, %v4131_v34 }
0x1d61   :  { %v4134_v48 = vrot.slane %v4132_v42, 4 }
0x1d63   :  { %6461 = vrcp.f32 %v4134_v48 }
0x1d6d   :  { %v6462_v56 = vpop.eup %6461 }
0x1d6e   :  { %v7307_v50 = vmul.f32 %v6462_v56, %v4034_v2 }
0x1d70   :  { %v4138_v36 = vmul.f32 1.442695, %v7307_v50 }
0x1dba   :  { %v5954_v58 = vpop.f32.mrb[58].mxu1 }
0x1dbb   :  { %v4368_v51 = vadd.f32 %v5954_v58, %v7242_v37  ;;  %v4348_v59 = vpop.f32.mrb[59].mxu1 }
0x1dbc   :  { %v4367_v6 = vadd.f32 %v4348_v59, %v7240_v38 }
0x1dbd   :  { %v4372_v43 = vmul.f32 %v4368_v51, %v4368_v51 }
0x1dbe   :  { %v4371_v63 = vmul.f32 %v4367_v6, %v4367_v6 }
0x1dc0   :  { %v6263_v24 = vpack.c.bf16 %v4372_v43, %v4371_v63 }
0x1dc2   :  { %v5957_v53 = vpop.f32.mrb[60].mxu1  ;;  %6264 = vmatpush3.bf16.msra.mxu1 %v6263_v24 }
0x1dc3   :  { %v4370_v12 = vadd.f32 %v5957_v53, %v7246_v25  ;;  %v4358_v52 = vpop.f32.mrb[61].mxu1  ;;  %6265 = vmatprep.subr.bf16.mxu1 %v6536_v7 }
0x1dc4   :  { %v4369_v46 = vadd.f32 %v4358_v52, %v7244_v9 }
0x1dc5   :  { %v4374_v33 = vmul.f32 %v4370_v12, %v4370_v12 }
0x1dc6   :  { %v4373_v45 = vmul.f32 %v4369_v46, %v4369_v46 }
0x1dc8   :  { %v6266_v61 = vpack.c.bf16 %v4374_v33, %v4373_v45 }
0x1dca   :  { %6267 = vmatpush3.bf16.msra.mxu1 %v6266_v61 }
0x1dcb   :  { %6268 = vmatprep.subr.bf16.mxu1 %v6536_v7 }
0x1dcd   :  { %5967 = vmatmul.mubr.msk.f32.vlgmr.msra.gmra.mrb[62].mxu1 %vm243_vm15, %v6539_v26 }
0x1dce   :  { %6270 = vmatpush3.bf16.msra.mxu1 %v6600_v16  ;;  %5977 = vmatprep.mubr.msk.f32.mxu1 %vm6537_vm3, %v6538_v8 }
0x1dcf   :  { %6271 = vmatprep.subr.bf16.mxu1 %v6536_v7 }
0x1dd2   :  { %6273 = vmatpush3.bf16.msra.mxu1 %v6605_v20 }
0x1dd3   :  { %6280 = vmatprep.subr.bf16.mxu1 %v6536_v7 }
0x1dd5   :  { %5978 = vmatmul.mubr.msk.f32.vlgmr.msra.gmra.mrb[64].mxu1 %vm243_vm15, %v7284_v15 }
0x1dd6   :  { %5999 = vmatprep.mubr.msk.f32.mxu1 %vm6537_vm3, %v6538_v8 }
0x1ea0   :  { %v4441_v38 = vpop.f32.mrb[62].mxu1 }
0x1ea1   :  { %v4445_v37 = vmax.f32 %v4441_v38, 1e-24  ;;  %v5968_v9 = vpop.f32.mrb[63].mxu1 }
0x1ea3   :  { %6463 = vrsqrt.f32 %v4445_v37 }
0x1ea8   :  { %v4521_v16 = vpop.f32.mrb[64].mxu1 }
0x1ea9   :  { %v4526_v25 = vrot.slane %v4521_v16, 2  ;;  %v5979_v62 = vpop.f32.mrb[65].mxu1 }
0x1eab   :  { %v4528_v54 = vadd.f32 %v4526_v25, %v6617_v23 }
0x1ead   :  { %v6464_v57 = vpop.eup %6463  ;;  %v4529_v20 = vmul.f32 %v4528_v54, %v6624_v27 }
0x1eae   :  { %v4450_v60 = vrot.slane %v6464_v57, %v6690_v22 }
0x1eaf   :  { %v5255_v10 = vmul.f32 -1.442695, %v4529_v20 }
0x1eb0   :  { %v4451_v14 = vmul.f32 %v4450_v60, %v4367_v6  ;;  %v4452_v15 = vmul.f32 %v4450_v60, %v4368_v51  ;;  %v4453_v39 = vmul.f32 %v4450_v60, %v4369_v46  ;;  %v4454_v44 = vmul.f32 %v4450_v60, %v4370_v12 }
0x1eb1   :  { %6465 = vpow2.f32 %v5255_v10 }
0x1eb2   :  { %v4642_v32 = vmul.f32 %v4451_v14, %v4451_v14  ;;  %v4643_v13 = vmul.f32 %v4452_v15, %v4452_v15  ;;  %v6275_v5 = vpack.c.bf16 %v4452_v15, %v4451_v14  ;;  %v6278_v47 = vpack.c.bf16 %v4454_v44, %v4453_v39  ;;  %v4821_v15 = vld [vmem:[#allocation2 + $0x58] sm:$0xff] }
0x1eb3   :  { %v4644_v1 = vmul.f32 %v4453_v39, %v4453_v39  ;;  %v4645_v18 = vmul.f32 %v4454_v44, %v4454_v44  ;;  %v4822_v39 = vld [vmem:[#allocation2 + $0x60] sm:$0xff]  ;;  %v4823_v44 = vld [vmem:[#allocation2 + $0x68] sm:$0xff] }
0x1eb4   :  { %v6281_v11 = vpack.c.bf16 %v4643_v13, %v4642_v32  ;;  %v6293_v32 = vpack.c.bf16 %v4822_v39, %v4821_v15  ;;  %v4824_v13 = vld [vmem:[#allocation2 + $0x70] sm:$0xff] }
0x1eb5   :  { %v6284_v23 = vpack.c.bf16 %v4645_v18, %v4644_v1  ;;  %v4985_v1 = vld [vmem:[#allocation2 + $0xf0] sm:$0xff] }
0x1eb6   :  { %6282 = vmatpush3.bf16.msra.mxu1 %v6281_v11  ;;  %v4984_v11 = vld [vmem:[#allocation2 + $0xe8] sm:$0xff] }
0x1eb7   :  { %6283 = vmatprep.subr.bf16.mxu1 %v6536_v7  ;;  %v6305_v18 = vpack.c.bf16 %v4985_v1, %v4984_v11 }
0x1eba   :  { %6285 = vmatpush3.bf16.msra.mxu1 %v6284_v23 }
0x1ebb   :  { %v6466_v27 = vpop.eup %6465  ;;  %6292 = vmatprep.subr.bf16.mxu1 %v6536_v7 }
0x1ebc   :  { %v4533_v49 = vadd.f32 1.0, %v6466_v27  ;;  %v4986_v27 = vld [vmem:[#allocation2 + $0xf8] sm:$0xff] }
0x1ebd   :  { %6000 = vmatmul.mubr.msk.f32.vlgmr.msra.gmra.mrb[66].mxu1 %vm243_vm15, %v6539_v26 }
0x1ebe   :  { %6467 = vrcp.f32 %v4533_v49  ;;  %6021 = vmatprep.mubr.msk.f32.mxu1 %vm6537_vm3, %v6538_v8  ;;  %6294 = vmatpush3.bf16.msra.mxu1 %v6293_v32  ;;  %v4987_v49 = vld [vmem:[#allocation2 + $0x100] sm:$0x1f] }
0x1ebf   :  { %6295 = vmatprep.subr.bf16.mxu1 %v6536_v7 }
0x1ec8   :  { %v6468_v19 = vpop.eup %6467 }
0x1ec9   :  { %v4536_v0 = vmul.f32 2.0, %v6468_v19  ;;  %v4541_v30 = vmul.f32 %v6468_v19, %v4539_v55  ;;  %v4818_v55 = vld [vmem:[#allocation2 + $0x40] sm:$0xff] }
0x1ecb   :  { %v5256_v2 = vadd.f32 -1.0, %v4536_v0  ;;  %v6308_v0 = vpack.c.bf16 %v4987_v49, %v4986_v27 }
0x1ecd   :  { %4543 = vrot.lane.b32.xlu0 %v5256_v2, %s6540_s0 }
0x1f3f   :  { %v4544_v21 = vpop.permute.xlu0 %4543 }
0x1f40   :  { %v4546_v28 = vmul.f32 %v6468_v19, %v4544_v21 }
0x1f42   :  { %4548 = vrot.lane.b32.xlu0 %v4546_v28, %s6541_s29  ;;  %v4817_v28 = vld [vmem:[#allocation2 + $0x38] sm:$0xff] }
0x1f90   :  { %v4712_v59 = vpop.f32.mrb[66].mxu1 }
0x1f91   :  { %v6001_v6 = vpop.f32.mrb[67].mxu1  ;;  %v4719_v52 = vrot.slane %v4712_v59, %v6690_v22 }
0x1fb4   :  { %v4549_v29 = vpop.permute.xlu0 %4548 }
0x1fb5   :  { %v4551_v35 = vadd.f32 %v4549_v29, %v4541_v30  ;;  %v6299_v29 = vpack.c.bf16 %v4818_v55, %v4817_v28 }
0x1fb7   :  { %6469 = vtanh.f32 %v4551_v35 }
0x1fb8   :  { %6471 = vpow2.f32 %v4138_v36  ;;  %v4819_v36 = vld [vmem:[#allocation2 + $0x48] sm:$0xff] }
0x1fc1   :  { %v6470_v26 = vpop.eup %6469 }
0x1fc2   :  { %4554 = vrot.lane.b32.xlu0 %v6470_v26, %s6540_s0  ;;  %v6472_v40 = vpop.eup %6471 }
0x1fc3   :  { %v4140_v34 = vmul.f32 %v6472_v40, %v6696_v41  ;;  %v4820_v40 = vld [vmem:[#allocation2 + $0x50] sm:$0xff] }
0x1fc5   :  { %v4141_v42 = vsel %vm519_vm4, %v4140_v34, 0.0 }
0x1fe1   :  { %4142 = vadd.xlane.f32.xlu0 %v4141_v42 }
0x2034   :  { %v4555_v48 = vpop.permute.xlu0 %4554 }
0x2035   :  { %v4557_v56 = vmul.f32 %v6468_v19, %v4555_v48  ;;  %v5167_v19 = vld [vmem:[#allocation2 + $0xc0] ss:$0 sm:$0xff]  ;;  %v4980_v48 = vld [vmem:[#allocation2 + $0xc8] sm:$0xff] }
0x2036   :  { %v231_v2 = vadd.f32 %v5167_v19, %v6687_v17  ;;  %v6302_v17 = vpack.c.bf16 %v4820_v40, %v4819_v36 }
0x2037   :  { %v4559_v58 = vrot.slane %v4557_v56, 6  ;;  %v4634_v3 = vmul.f32 %v4557_v56, %v4557_v56  ;;  %v4981_v56 = vld [vmem:[#allocation2 + $0xd0] sm:$0xff] }
0x2038   :  { %v234_v21 = vmax.f32 %v231_v2, 0.0 }
0x2039   :  { %v4813_v51 = vadd.f32 %v4559_v58, %v7278_v31  ;;  %4636 = vrot.lane.b32.xlu1 %v4634_v3, %s6541_s29  ;;  %4560 = vrot.lane.b32.xlu0 %v4559_v58, %s6541_s29  ;;  %v6312_v58 = vpack.c.bf16 %v4981_v56, %v4980_v48  ;;  %v4982_v3 = vld [vmem:[#allocation2 + $0xd8] sm:$0xff] }
0x203b   :  { %v4815_v12 = vmul.f32 0.125, %v4813_v51  ;;  %v4983_v51 = vld [vmem:[#allocation2 + $0xe0] sm:$0xff] }
0x203c   :  { %v6315_v59 = vpack.c.bf16 %v4983_v51, %v4982_v3 }
0x206e   :  { %v4143_v50 = vpop.xlane.xlu0 %4142 }
0x206f   :  { %6473 = vrcp.f32 %v4143_v50 }
0x2079   :  { %v6474_v43 = vpop.eup %6473 }
0x207a   :  { %v4145_v63 = vmul.f32 %v6474_v43, %v4140_v34  ;;  %v5261_v43 = vld [vmem:[#allocation2 + $0x78] ss:$0 sm:$0xff] }
0x207c   :  { %5948 = vmatmul.mubr.f32.vlgmr.msra.gmra.mrb[12].mxu0 %v4145_v63 }
0x207d   :  { %6276 = vmatpush3.bf16.msra.mxu0 %v6275_v5  ;;  %5988 = vmatprep.mubr.msk.f32.mxu0 %vm6537_vm3, %v6538_v8 }
0x207e   :  { %6277 = vmatprep.subr.bf16.mxu0 %v6536_v7 }
0x2081   :  { %6279 = vmatpush3.bf16.msra.mxu0 %v6278_v47 }
0x2082   :  { %6286 = vmatprep.subr.bf16.mxu0 %v6536_v7 }
0x20ab   :  { %v4637_v31 = vpop.permute.xlu1 %4636  ;;  %v4561_v24 = vpop.permute.xlu0 %4560 }
0x20ac   :  { %v4639_v53 = vsel %vm2232_vm9, %v4637_v31, 0.0  ;;  %5989 = vmatmul.mubr.msk.f32.vlgmr.msra.gmra.mrb[26].mxu0 %vm243_vm15, %v4561_v24 }
0x20ad   :  { %6288 = vmatpush3.bf16.xpose.msra.mxu0 %v6275_v5  ;;  %4640 = vadd.xlane.f32.xlu0 %v4639_v53  ;;  %v6296_v5 = vpack.c.bf16 %v4824_v13, %v4823_v44 }
0x20ae   :  { %6289 = vmatprep.subr.bf16.mxu0 %v6536_v7  ;;  %6010 = vmatprep.mubr.msk.f32.mxu0 %vm6537_vm3, %v6538_v8 }
0x20af   :  { %6297 = vmatpush3.bf16.msra.mxu1 %v6296_v5 }
0x20b0   :  { %6298 = vmatprep.subr.bf16.mxu1 %v6536_v7 }
0x20b5   :  { %6291 = vmatpush3.bf16.xpose.msra.mxu0 %v6278_v47 }
0x20b6   :  { %6304 = vmatprep.subr.bf16.mxu0 %v6536_v7 }
0x20c3   :  { %4900 = vrot.lane.b32.xlu0 %v4815_v12, %s6541_s29 }
0x213a   :  { %v4641_v46 = vpop.xlane.xlu0 %4640 }
0x213b   :  { %v4720_v33 = vmul.f32 %v4719_v52, %v4641_v46 }
0x213d   :  { %6475 = vrsqrt.f32 %v4720_v33  ;;  %vm4723_vm5 = vcmp.eq.f32.partialorder %v4720_v33, inf  ;;  %v4726_v37 = vand.u32 2147483648, %v4720_v33  ;;  %vm4725_vm9 = vcmp.eq.f32.partialorder %v4720_v33, 0.0 }
0x213e   :  { %v4901_v42 = vpop.permute.xlu0 %4900 }
0x2147   :  { %v6476_v45 = vpop.eup %6475 }
0x2148   :  { %v4722_v61 = vmul.f32 %v6476_v45, %v4720_v33 }
0x214a   :  { %v4724_v38 = vsel %vm4723_vm5, %v4720_v33, %v4722_v61 }
0x214b   :  { %v4727_v9 = vsel %vm4725_vm9, %v4726_v37, %v4724_v38 }
0x214c   :  { %v4728_v16 = vadd.f32 1e-08, %v4727_v9 }
0x214e   :  { %v4730_v25 = vrot.slane %v4728_v16, 6 }
0x2150   :  { %6477 = vrcp.f32 %v4730_v25 }
0x215a   :  { %v6478_v62 = vpop.eup %6477 }
0x217f   :  { %v4630_v54 = vpop.f32.mrb[26].mxu0 }
0x2180   :  { %v4733_v57 = vmul.f32 %v6478_v62, %v4630_v54  ;;  %v5990_v20 = vpop.f32.mrb[27].mxu0 }
0x2182   :  { %v4734_v60 = vmul.f32 1.442695, %v4733_v57 }
0x2184   :  { %6479 = vpow2.f32 %v4734_v60 }
0x218e   :  { %v6480_v22 = vpop.eup %6479 }
0x218f   :  { %v4736_v10 = vmul.f32 %v6480_v22, %v6696_v41 }
0x2191   :  { %v4737_v14 = vsel %vm519_vm4, %v4736_v10, 0.0  ;;  %vm4989_vm4 = vcmask 236544  }
0x2192   :  { %4738 = vadd.xlane.f32.xlu1 %v4737_v14 }
0x221f   :  { %v4739_v47 = vpop.xlane.xlu1 %4738 }
0x2220   :  { %6481 = vrcp.f32 %v4739_v47 }
0x222a   :  { %v6482_v41 = vpop.eup %6481 }
0x222b   :  { %v4741_v23 = vmul.f32 %v6482_v41, %v4736_v10 }
0x222d   :  { %6011 = vmatmul.mubr.f32.vlgmr.msra.gmra.mrb[12].mxu0 %v4741_v23 }
0x222e   :  { %6306 = vmatpush3.bf16.msra.mxu0 %v6305_v18  ;;  %6043 = vmatprep.mubr.msk.f32.mxu0 %vm6537_vm3, %v6538_v8 }
0x222f   :  { %6307 = vmatprep.subr.bf16.mxu0 %v6536_v7 }
0x2232   :  { %6310 = vmatpush3.bf16.msk.msra.mxu0 %vm6580_vm2, %v6308_v0  ;;  %vm5144_vm2 = vcmask 9216  }
0x2235   :  { %6044 = vmatmul.mubr.msk.f32.vlgmr.msra.gmra.mrb[28].mxu0 %vm4989_vm4, %v234_v21 }
0x2300   :  { %v4808_v30 = vpop.f32.mrb[12].mxu0 }
0x2301   :  { %v4816_v35 = vmul.f32 0.125, %v4808_v30  ;;  %v6012_v26 = vpop.f32.mrb[13].mxu0 }
0x2303   :  { %6022 = vmatmul.mubr.msk.f32.vlgmr.msra.gmra.mrb[68].mxu1 %vm243_vm15, %v4816_v35 }
0x2304   :  { %6300 = vmatpush3.bf16.msra.mxu1 %v6299_v29  ;;  %6032 = vmatprep.mubr.msk.f32.mxu1 %vm6537_vm3, %v6538_v8 }
0x2305   :  { %6301 = vmatprep.subr.bf16.mxu1 %v6536_v7 }
0x2308   :  { %6303 = vmatpush3.bf16.msra.mxu1 %v6302_v17  ;;  %v5062_v4 = vpop.f32.mrb[28].mxu0 }
0x2309   :  { %v6045_v34 = vpop.f32.mrb[29].mxu0  ;;  %6311 = vmatprep.subr.bf16.mxu1 %v6536_v7 }
0x230b   :  { %6033 = vmatmul.mubr.msk.f32.vlgmr.msra.gmra.mrb[70].mxu1 %vm243_vm15, %v4901_v42 }
0x230c   :  { %6054 = vmatprep.mubr.msk.f32.mxu1 %vm6537_vm3, %v6538_v8  ;;  %6313 = vmatpush3.bf16.msra.mxu1 %v6312_v58  ;;  %v5265_v8 = vld [vmem:[#allocation2 + $0x108] ss:$0 sm:$0xff] }
0x230d   :  { %6314 = vmatprep.subr.bf16.mxu1 %v6536_v7 }
0x2310   :  { %6316 = vmatpush3.bf16.msra.mxu1 %v6315_v59 }
0x23d6   :  { %v4895_v6 = vpop.f32.mrb[68].mxu1 }
0x23d7   :  { %v6023_v50 = vpop.f32.mrb[69].mxu1 }
0x23de   :  { %v4970_v63 = vpop.f32.mrb[70].mxu1 }
0x23df   :  { %v4971_v31 = vadd.f32 %v4970_v63, %v4895_v6  ;;  %v6034_v24 = vpop.f32.mrb[71].mxu1 }
0x23e1   :  { %v4978_v53 = vadd.f32 %v5261_v43, %v4971_v31 }
0x23e3   :  { %v4979_v12 = vmax.f32 %v4978_v53, 0.0 }
0x23e5   :  { %6055 = vmatmul.mubr.msk.f32.vlgmr.msra.gmra.mrb[72].mxu1 %vm243_vm15, %v4979_v12 }
0x24b8   :  { %v5135_v52 = vpop.f32.mrb[72].mxu1 }
0x24b9   :  { %v5136_v46 = vadd.f32 %v5135_v52, %v5062_v4  ;;  %v6056_v7 = vpop.f32.mrb[73].mxu1 }
0x24bb   :  { %v5143_v33 = vadd.f32 %v5265_v8, %v5136_v46 }
0x24bd   :  { %5145 = vst.msk [vmem:[#allocation5] sm:$0x3] %vm5144_vm2, %v5143_v33 }
0x24be   :  { %6516 = shalt.err (!%p6513_p12)
}
0x24bf   :  { %s6517_s9 = scalar_lea.hbm %s7393_s3, 32 }
0x24c0   :  { %p6518_p13 = scmp.ne.s32.totalorder %s7393_s3, %s6517_s9  ;;  %p6521_p0 = scmp.lt.u32.totalorder %s6517_s9, %s7393_s3 }
0x24c2   :  { %p6523_p1 = pnand %p6521_p0, %p6518_p13 }
0x24c4   :  { %6526 = shalt.err (!%p6523_p1)
}
0x24c5   :  { %5155 = dma.vmem_to_hbm [thread:$0]  %s5153_s5, 32, %s7393_s3, [#allocation4]  }
0x24c6   :  { %6529 = dma.done.wait [#allocation4], 32  }
0x24c7   :  { %6530 = vsyncadd [#allocation4], 4294967264 }
0x24c8   :  { %5159 = vsyncpa [#allocation3], 1 }
0x24c9   :  { %5160 = vsyncpa [#allocation4], 1 }

</bundles_post_ra>
